<compile_context>
chip_gen: v7x
topology: tpu7x:2x2x1
jax: 0.10.0
libtpu: 0.0.40
codegen_flags: <defaults>
</compile_context>

<pallas_src>
import functools

import jax
import jax.numpy as jnp
from jax.experimental import pallas as pl


EMBED_DIM = 128
RNN_HIDDEN = 128
N_ACTIONS = 5
FLAT_DIM = 512          # 32 * 4 * 4 for the (6, 39, 39) branch
QPAD = 8                # fc2 output rows padded to one sublane tile


# ----------------------------------------------------------------------------
# Kernel 1: conv1 (6->16, 5x5, s2, p1) as a single lane-dense GEMM + ReLU.
# out(16, M) = W(16, 150) @ P1(150, M) + b, M = B*19*19 (lane axis, dense).
# ----------------------------------------------------------------------------
def _conv1_kernel(w_ref, p_ref, b_ref, o_ref):
    acc = jnp.dot(w_ref[...], p_ref[...], preferred_element_type=jnp.float32)
    o_ref[...] = jnp.maximum(acc + b_ref[...], 0.0)


# ----------------------------------------------------------------------------
# Kernel 2: conv2 + MaxPool2d(2) + conv3 + ReLU + Flatten/Linear + ReLU + fc1 +
# ReLU + GRUCell + fc2.  Orientation: features on sublanes, batch (B) on lanes.
# ----------------------------------------------------------------------------
def _tail_kernel(p2_ref, h_ref,
                 w2_ref, b2_ref, w3_ref, b3_ref,
                 wemb_ref, bemb_ref, wfc1_ref, bfc1_ref,
                 wrz_ref, brz_ref, win_ref, bin_ref, whn_ref, bhn_ref,
                 wfc2_ref, bfc2_ref,
                 q_ref, hout_ref, *, batch, blk):
    B = batch
    H = RNN_HIDDEN

    # conv2 (the reference applies NO ReLU before the MaxPool).  P2 columns are
    # ordered (h2%2, w2%2, i, j, b) with each parity block zero-padded to blk.
    o2 = jnp.dot(w2_ref[...], p2_ref[...], preferred_element_type=jnp.float32)
    o2 = o2 + b2_ref[...]                                        # (32, 4*blk)

    # MaxPool2d(2) == elementwise max of the 4 stride-parity blocks.
    pooled = jnp.maximum(jnp.maximum(o2[:, 0:blk], o2[:, blk:2 * blk]),
                         jnp.maximum(o2[:, 2 * blk:3 * blk], o2[:, 3 * blk:4 * blk]))
    # pooled lane m = (i*5 + j)*B + b for i, j in 0..4; lanes >= 25*B are pad.

    # conv3 (2x2, s1) patches: each tap (di, dj) is a shifted lane slice of
    # pooled (shift = (di*5 + dj)*B).  Columns with y == 4 or x == 4 are
    # over-computed and never read downstream.
    p3 = jnp.concatenate(
        [pooled[:, s:s + 25 * B] for s in (0, B, 5 * B, 6 * B)], axis=0)  # (128, 25B)
    c3 = jnp.dot(w3_ref[...], p3, preferred_element_type=jnp.float32) + b3_ref[...]
    c3 = jnp.maximum(c3, 0.0)                                    # (32, 25B)

    # Flatten + Linear(512 -> 128) as ONE K=512 matmul: stack the 16 valid
    # (y, x) batch columns of c3 along the K (sublane) axis; wemb columns were
    # pre-permuted to the matching (y, x, c) order.
    flat = jnp.concatenate(
        [c3[:, (y * 5 + x) * B:(y * 5 + x) * B + B]
         for y in range(4) for x in range(4)], axis=0)           # (512, B)
    e = jnp.dot(wemb_ref[...], flat, preferred_element_type=jnp.float32)
    e = jnp.maximum(e + bemb_ref[...], 0.0)                      # (128, B)

    # fc1 + ReLU
    x = jnp.dot(wfc1_ref[...], e, preferred_element_type=jnp.float32)
    x = jnp.maximum(x + bfc1_ref[...], 0.0)                      # (128, B)

    # GRUCell (PyTorch gate order r, z, n); r/z gates share one fused K=256
    # matmul over [x ; h].
    h = h_ref[...]                                               # (128, B)
    xh = jnp.concatenate([x, h], axis=0)                         # (256, B)
    rz = jax.nn.sigmoid(
        jnp.dot(wrz_ref[...], xh, preferred_element_type=jnp.float32) + brz_ref[...])
    r = rz[:H, :]
    z = rz[H:, :]
    gi_n = jnp.dot(win_ref[...], x, preferred_element_type=jnp.float32) + bin_ref[...]
    gh_n = jnp.dot(whn_ref[...], h, preferred_element_type=jnp.float32) + bhn_ref[...]
    n = jnp.tanh(gi_n + r * gh_n)
    h_new = (1.0 - z) * n + z * h

    # fc2 (rows padded to 8; real q = rows [:5], sliced outside).
    q_ref[...] = (jnp.dot(wfc2_ref[...], h_new, preferred_element_type=jnp.float32)
                  + bfc2_ref[...])
    hout_ref[...] = h_new


# ----------------------------------------------------------------------------
# XLA glue: the two im2col relayouts (small fused HLOs; see TODO above).
# ----------------------------------------------------------------------------
def _build_p1(x):
    """x: (B, 6, 39, 39) -> P1 (150, B*19*19); rows (c, ki, kj), cols (h, w, b)."""
    B = x.shape[0]
    xp = jnp.pad(x, ((0, 0), (0, 0), (1, 1), (1, 1)))            # (B, 6, 41, 41)
    taps = [xp[:, :, i:i + 38:2, j:j + 38:2]
            for i in range(5) for j in range(5)]                 # each (B, 6, 19, 19)
    p1 = jnp.stack(taps, axis=2)                                 # (B, 6, 25, 19, 19)
    p1 = p1.transpose(1, 2, 3, 4, 0)                             # (6, 25, 19, 19, B)
    return p1.reshape(6 * 25, 19 * 19 * B)


def _build_p2(o1, B):
    """o1: (16, B*19*19) with cols (h, w, b) -> P2 (400, 128*B).

    Rows ordered (c, ki, kj); columns ordered (h2%2, w2%2, i, j, b) with each
    of the 4 parity blocks zero-padded from 25*B to 32*B lanes, so the tail
    kernel's pool / conv3-patch steps are pure lane slices.
    """
    o1 = o1.reshape(16, 19, 19, B)
    o1p = jnp.pad(o1, ((0, 0), (2, 2), (2, 2), (0, 0)))          # conv2 padding=2
    taps = [o1p[:, i:i + 20:2, j:j + 20:2, :]
            for i in range(5) for j in range(5)]                 # each (16, 10, 10, B)
    p2 = jnp.stack(taps, axis=1)                                 # (16, 25, 10, 10, B)
    p2 = p2.reshape(16, 25, 5, 2, 5, 2, B)                       # (c, tap, i, hp, j, wp, b)
    p2 = p2.transpose(0, 1, 3, 5, 2, 4, 6)                       # (c, tap, hp, wp, i, j, b)
    p2 = p2.reshape(400, 4, 25 * B)
    p2 = jnp.pad(p2, ((0, 0), (0, 0), (0, 32 * B - 25 * B)))
    return p2.reshape(400, 128 * B)


# ----------------------------------------------------------------------------
# Parameters
# ----------------------------------------------------------------------------
def init_torch_like_params(key):
    """PyTorch-native shapes, as nn.Module would store them."""
    keys = jax.random.split(key, 16)
    k = iter(keys)

    def w(shape, scale=0.05):
        return (scale * jax.random.normal(next(k), shape)).astype(jnp.float32)

    return {
        "conv1_w": w((16, 6, 5, 5)), "conv1_b": w((16,)),
        "conv2_w": w((32, 16, 5, 5)), "conv2_b": w((32,)),
        "conv3_w": w((32, 32, 2, 2)), "conv3_b": w((32,)),
        "emb_w": w((EMBED_DIM, FLAT_DIM)), "emb_b": w((EMBED_DIM,)),
        "fc1_w": w((RNN_HIDDEN, EMBED_DIM)), "fc1_b": w((RNN_HIDDEN,)),
        "gru_wih": w((3 * RNN_HIDDEN, RNN_HIDDEN)), "gru_bih": w((3 * RNN_HIDDEN,)),
        "gru_whh": w((3 * RNN_HIDDEN, RNN_HIDDEN)), "gru_bhh": w((3 * RNN_HIDDEN,)),
        "fc2_w": w((N_ACTIONS, RNN_HIDDEN)), "fc2_b": w((N_ACTIONS,)),
    }


def prepare_params(p):
    """One-time layout pass: store every weight in kernel-ready layout."""
    H = RNN_HIDDEN
    wih, whh = p["gru_wih"], p["gru_whh"]                        # (384, 128) each
    # Fused r/z gates: rz = Wrz @ [x ; h], Wrz = [W_ih[:256] | W_hh[:256]].
    rz_w = jnp.concatenate([wih[:2 * H], whh[:2 * H]], axis=1)   # (256, 256)
    rz_b = (p["gru_bih"][:2 * H] + p["gru_bhh"][:2 * H])[:, None]
    # conv3 weight columns ordered (tap, c) to match the in-kernel patch stack.
    c3_w = p["conv3_w"].transpose(0, 2, 3, 1).reshape(32, 128)
    # emb weight columns permuted from PyTorch's NCHW flatten (c*16 + y*4 + x)
    # to the in-kernel (y, x, c) stacking order.
    emb_w = (p["emb_w"].reshape(EMBED_DIM, 32, 4, 4)
             .transpose(0, 2, 3, 1).reshape(EMBED_DIM, FLAT_DIM))
    fc2_w = jnp.zeros((QPAD, H), jnp.float32).at[:N_ACTIONS].set(p["fc2_w"])
    fc2_b = jnp.zeros((QPAD, 1), jnp.float32).at[:N_ACTIONS, 0].set(p["fc2_b"])
    return {
        "c1_w": p["conv1_w"].reshape(16, -1), "c1_b": p["conv1_b"][:, None],
        "c2_w": p["conv2_w"].reshape(32, -1), "c2_b": p["conv2_b"][:, None],
        "c3_w": c3_w, "c3_b": p["conv3_b"][:, None],
        "emb_w": emb_w, "emb_b": p["emb_b"][:, None],
        "fc1_w": p["fc1_w"], "fc1_b": p["fc1_b"][:, None],
        "rz_w": rz_w, "rz_b": rz_b,
        "in_w": wih[2 * H:], "in_b": p["gru_bih"][2 * H:][:, None],
        "hn_w": whh[2 * H:], "hn_b": p["gru_bhh"][2 * H:][:, None],
        "fc2_w": fc2_w, "fc2_b": fc2_b,
    }


# ----------------------------------------------------------------------------
# Forward (input_shape == (6, 39, 39) branch)
# ----------------------------------------------------------------------------
def crnn_forward(wp, inputs, hidden_state):
    """inputs: (B, 6, 39, 39) NCHW, hidden_state: (B, 128). Returns (q, h)."""
    B = inputs.shape[0]
    f32 = jnp.float32
    x = inputs.astype(f32)

    # conv1: single GEMM call, lane-dense output (16, B*19*19), ReLU fused.
    # At large batch, tile the M axis with a real grid (parallel) and set
    # vmem_limit_bytes; at B=2 a single full-array block is optimal.
    p1 = _build_p1(x)
    o1 = pl.pallas_call(
        _conv1_kernel,
        out_shape=jax.ShapeDtypeStruct((16, 19 * 19 * B), f32),
    )(wp["c1_w"], p1, wp["c1_b"])

    # conv2 im2col with parity-ordered columns (kept in XLA — see TODO above).
    p2 = _build_p2(o1, B)
    h_t = hidden_state.reshape(-1, RNN_HIDDEN).astype(f32).T     # (128, B)

    q_t, h_new_t = pl.pallas_call(
        functools.partial(_tail_kernel, batch=B, blk=32 * B),
        out_shape=(jax.ShapeDtypeStruct((QPAD, B), f32),
                   jax.ShapeDtypeStruct((RNN_HIDDEN, B), f32)),
        input_output_aliases={1: 1},     # hidden-state buffer reused for h_out
    )(p2, h_t,
      wp["c2_w"], wp["c2_b"], wp["c3_w"], wp["c3_b"],
      wp["emb_w"], wp["emb_b"], wp["fc1_w"], wp["fc1_b"],
      wp["rz_w"], wp["rz_b"], wp["in_w"], wp["in_b"], wp["hn_w"], wp["hn_b"],
      wp["fc2_w"], wp["fc2_b"])

    return q_t[:N_ACTIONS, :].T, h_new_t.T


if __name__ == "__main__":
    key = jax.random.PRNGKey(0)
    k_param, k_x, k_h = jax.random.split(key, 3)

    torch_params = init_torch_like_params(k_param)
    params = prepare_params(torch_params)      # one-time weight re-layout

    B = 2
    inputs = jax.random.normal(k_x, (B, 6, 39, 39), dtype=jnp.float32)
    hidden = jax.random.normal(k_h, (B, RNN_HIDDEN), dtype=jnp.float32)

    fwd = jax.jit(crnn_forward)
    q, h = fwd(params, inputs, hidden)
    q = jax.block_until_ready(q)
    h = jax.block_until_ready(h)

    assert q.shape == (B, N_ACTIONS)
    assert h.shape == (B, RNN_HIDDEN)
    print("KERNEL_OK")
</pallas_src>

<mosaic_0001>
module attributes {stable_mosaic.version = 11 : i64} {
  func.func @_conv1_kernel(%arg0: memref<16x150xf32, #tpu.memory_space<vmem>>, %arg1: memref<150x722xf32, #tpu.memory_space<vmem>>, %arg2: memref<16x1xf32, #tpu.memory_space<vmem>>, %arg3: memref<16x722xf32, #tpu.memory_space<vmem>>) attributes {dimension_semantics = [], scalar_prefetch = 0 : i64, scratch_operands = 0 : i64, tpu.core_type = #tpu.core_type<tc>} {
    %c0 = arith.constant 0 : index
    %c0_0 = arith.constant 0 : index
    %0 = vector.load %arg0[%c0, %c0_0] : memref<16x150xf32, #tpu.memory_space<vmem>>, vector<16x150xf32>
    %c0_1 = arith.constant 0 : index
    %c0_2 = arith.constant 0 : index
    %1 = vector.load %arg1[%c0_1, %c0_2] : memref<150x722xf32, #tpu.memory_space<vmem>>, vector<150x722xf32>
    %cst = arith.constant dense<0.000000e+00> : vector<16x722xf32>
    %2 = tpu.matmul %0, %1, %cst {dimension_numbers = #tpu.dot_dimension_numbers<[1], [0], [0], [1], [0, 0, 1, 1], [], []>} : vector<16x150xf32>, vector<150x722xf32>, vector<16x722xf32> -> vector<16x722xf32>
    %c0_3 = arith.constant 0 : index
    %c0_4 = arith.constant 0 : index
    %3 = vector.load %arg2[%c0_3, %c0_4] : memref<16x1xf32, #tpu.memory_space<vmem>>, vector<16x1xf32>
    %4 = vector.broadcast %3 : vector<16x1xf32> to vector<16x722xf32>
    %5 = arith.addf %2, %4 : vector<16x722xf32>
    %cst_5 = arith.constant 0.000000e+00 : f32
    %6 = vector.broadcast %cst_5 : f32 to vector<16x722xf32>
    %7 = arith.maximumf %5, %6 : vector<16x722xf32>
    %c0_6 = arith.constant 0 : index
    %c0_7 = arith.constant 0 : index
    %8 = vector.load %arg3[%c0_6, %c0_7] : memref<16x722xf32, #tpu.memory_space<vmem>>, vector<16x722xf32>
    tpu.vector_store %arg3[%c0_6, %c0_7], %7 {strides = array<i32>} : memref<16x722xf32, #tpu.memory_space<vmem>>, vector<16x722xf32>,
    return
  }
}

module attributes {stable_mosaic.version = 11 : i64} {
  func.func @_tail_kernel(%arg0: memref<400x256xf32, #tpu.memory_space<vmem>>, %arg1: memref<128x2xf32, #tpu.memory_space<vmem>>, %arg2: memref<32x400xf32, #tpu.memory_space<vmem>>, %arg3: memref<32x1xf32, #tpu.memory_space<vmem>>, %arg4: memref<32x128xf32, #tpu.memory_space<vmem>>, %arg5: memref<32x1xf32, #tpu.memory_space<vmem>>, %arg6: memref<128x512xf32, #tpu.memory_space<vmem>>, %arg7: memref<128x1xf32, #tpu.memory_space<vmem>>, %arg8: memref<128x128xf32, #tpu.memory_space<vmem>>, %arg9: memref<128x1xf32, #tpu.memory_space<vmem>>, %arg10: memref<256x256xf32, #tpu.memory_space<vmem>>, %arg11: memref<256x1xf32, #tpu.memory_space<vmem>>, %arg12: memref<128x128xf32, #tpu.memory_space<vmem>>, %arg13: memref<128x1xf32, #tpu.memory_space<vmem>>, %arg14: memref<128x128xf32, #tpu.memory_space<vmem>>, %arg15: memref<128x1xf32, #tpu.memory_space<vmem>>, %arg16: memref<8x128xf32, #tpu.memory_space<vmem>>, %arg17: memref<8x1xf32, #tpu.memory_space<vmem>>, %arg18: memref<8x2xf32, #tpu.memory_space<vmem>>, %arg19: memref<128x2xf32, #tpu.memory_space<vmem>>) attributes {dimension_semantics = [], scalar_prefetch = 0 : i64, scratch_operands = 0 : i64, tpu.core_type = #tpu.core_type<tc>} {
    %c0 = arith.constant 0 : index
    %c0_0 = arith.constant 0 : index
    %0 = vector.load %arg2[%c0, %c0_0] : memref<32x400xf32, #tpu.memory_space<vmem>>, vector<32x400xf32>
    %c0_1 = arith.constant 0 : index
    %c0_2 = arith.constant 0 : index
    %1 = vector.load %arg0[%c0_1, %c0_2] : memref<400x256xf32, #tpu.memory_space<vmem>>, vector<400x256xf32>
    %cst = arith.constant dense<0.000000e+00> : vector<32x256xf32>
    %2 = tpu.matmul %0, %1, %cst {dimension_numbers = #tpu.dot_dimension_numbers<[1], [0], [0], [1], [0, 0, 1, 1], [], []>} : vector<32x400xf32>, vector<400x256xf32>, vector<32x256xf32> -> vector<32x256xf32>
    %c0_3 = arith.constant 0 : index
    %c0_4 = arith.constant 0 : index
    %3 = vector.load %arg3[%c0_3, %c0_4] : memref<32x1xf32, #tpu.memory_space<vmem>>, vector<32x1xf32>
    %4 = vector.broadcast %3 : vector<32x1xf32> to vector<32x256xf32>
    %5 = arith.addf %2, %4 : vector<32x256xf32>
    %6 = vector.extract_strided_slice %5 {offsets = [0, 0], sizes = [32, 64], strides = [1, 1]} : vector<32x256xf32> to vector<32x64xf32>
    %7 = vector.extract_strided_slice %5 {offsets = [0, 64], sizes = [32, 64], strides = [1, 1]} : vector<32x256xf32> to vector<32x64xf32>
    %8 = arith.maximumf %6, %7 : vector<32x64xf32>
    %9 = vector.extract_strided_slice %5 {offsets = [0, 128], sizes = [32, 64], strides = [1, 1]} : vector<32x256xf32> to vector<32x64xf32>
    %10 = vector.extract_strided_slice %5 {offsets = [0, 192], sizes = [32, 64], strides = [1, 1]} : vector<32x256xf32> to vector<32x64xf32>
    %11 = arith.maximumf %9, %10 : vector<32x64xf32>
    %12 = arith.maximumf %8, %11 : vector<32x64xf32>
    %13 = vector.extract_strided_slice %12 {offsets = [0, 0], sizes = [32, 50], strides = [1, 1]} : vector<32x64xf32> to vector<32x50xf32>
    %14 = vector.extract_strided_slice %12 {offsets = [0, 2], sizes = [32, 50], strides = [1, 1]} : vector<32x64xf32> to vector<32x50xf32>
    %15 = vector.extract_strided_slice %12 {offsets = [0, 10], sizes = [32, 50], strides = [1, 1]} : vector<32x64xf32> to vector<32x50xf32>
    %16 = vector.extract_strided_slice %12 {offsets = [0, 12], sizes = [32, 50], strides = [1, 1]} : vector<32x64xf32> to vector<32x50xf32>
    %17 = tpu.concatenate %13, %14, %15, %16 in 0 : vector<32x50xf32>, vector<32x50xf32>, vector<32x50xf32>, vector<32x50xf32> -> vector<128x50xf32>
    %c0_5 = arith.constant 0 : index
    %c0_6 = arith.constant 0 : index
    %18 = vector.load %arg4[%c0_5, %c0_6] : memref<32x128xf32, #tpu.memory_space<vmem>>, vector<32x128xf32>
    %cst_7 = arith.constant dense<0.000000e+00> : vector<32x50xf32>
    %19 = tpu.matmul %18, %17, %cst_7 {dimension_numbers = #tpu.dot_dimension_numbers<[1], [0], [0], [1], [0, 0, 1, 1], [], []>} : vector<32x128xf32>, vector<128x50xf32>, vector<32x50xf32> -> vector<32x50xf32>
    %c0_8 = arith.constant 0 : index
    %c0_9 = arith.constant 0 : index
    %20 = vector.load %arg5[%c0_8, %c0_9] : memref<32x1xf32, #tpu.memory_space<vmem>>, vector<32x1xf32>
    %21 = vector.broadcast %20 : vector<32x1xf32> to vector<32x50xf32>
    %22 = arith.addf %19, %21 : vector<32x50xf32>
    %cst_10 = arith.constant 0.000000e+00 : f32
    %23 = vector.broadcast %cst_10 : f32 to vector<32x50xf32>
    %24 = arith.maximumf %22, %23 : vector<32x50xf32>
    %25 = vector.extract_strided_slice %24 {offsets = [0, 0], sizes = [32, 2], strides = [1, 1]} : vector<32x50xf32> to vector<32x2xf32>
    %26 = vector.extract_strided_slice %24 {offsets = [0, 2], sizes = [32, 2], strides = [1, 1]} : vector<32x50xf32> to vector<32x2xf32>
    %27 = vector.extract_strided_slice %24 {offsets = [0, 4], sizes = [32, 2], strides = [1, 1]} : vector<32x50xf32> to vector<32x2xf32>
    %28 = vector.extract_strided_slice %24 {offsets = [0, 6], sizes = [32, 2], strides = [1, 1]} : vector<32x50xf32> to vector<32x2xf32>
    %29 = vector.extract_strided_slice %24 {offsets = [0, 10], sizes = [32, 2], strides = [1, 1]} : vector<32x50xf32> to vector<32x2xf32>
    %30 = vector.extract_strided_slice %24 {offsets = [0, 12], sizes = [32, 2], strides = [1, 1]} : vector<32x50xf32> to vector<32x2xf32>
    %31 = vector.extract_strided_slice %24 {offsets = [0, 14], sizes = [32, 2], strides = [1, 1]} : vector<32x50xf32> to vector<32x2xf32>
    %32 = vector.extract_strided_slice %24 {offsets = [0, 16], sizes = [32, 2], strides = [1, 1]} : vector<32x50xf32> to vector<32x2xf32>
    %33 = vector.extract_strided_slice %24 {offsets = [0, 20], sizes = [32, 2], strides = [1, 1]} : vector<32x50xf32> to vector<32x2xf32>
    %34 = vector.extract_strided_slice %24 {offsets = [0, 22], sizes = [32, 2], strides = [1, 1]} : vector<32x50xf32> to vector<32x2xf32>
    %35 = vector.extract_strided_slice %24 {offsets = [0, 24], sizes = [32, 2], strides = [1, 1]} : vector<32x50xf32> to vector<32x2xf32>
    %36 = vector.extract_strided_slice %24 {offsets = [0, 26], sizes = [32, 2], strides = [1, 1]} : vector<32x50xf32> to vector<32x2xf32>
    %37 = vector.extract_strided_slice %24 {offsets = [0, 30], sizes = [32, 2], strides = [1, 1]} : vector<32x50xf32> to vector<32x2xf32>
    %38 = vector.extract_strided_slice %24 {offsets = [0, 32], sizes = [32, 2], strides = [1, 1]} : vector<32x50xf32> to vector<32x2xf32>
    %39 = vector.extract_strided_slice %24 {offsets = [0, 34], sizes = [32, 2], strides = [1, 1]} : vector<32x50xf32> to vector<32x2xf32>
    %40 = vector.extract_strided_slice %24 {offsets = [0, 36], sizes = [32, 2], strides = [1, 1]} : vector<32x50xf32> to vector<32x2xf32>
    %41 = tpu.concatenate %25, %26, %27, %28, %29, %30, %31, %32, %33, %34, %35, %36, %37, %38, %39, %40 in 0 : vector<32x2xf32>, vector<32x2xf32>, vector<32x2xf32>, vector<32x2xf32>, vector<32x2xf32>, vector<32x2xf32>, vector<32x2xf32>, vector<32x2xf32>, vector<32x2xf32>, vector<32x2xf32>, vector<32x2xf32>, vector<32x2xf32>, vector<32x2xf32>, vector<32x2xf32>, vector<32x2xf32>, vector<32x2xf32> -> vector<512x2xf32>
    %c0_11 = arith.constant 0 : index
    %c0_12 = arith.constant 0 : index
    %42 = vector.load %arg6[%c0_11, %c0_12] : memref<128x512xf32, #tpu.memory_space<vmem>>, vector<128x512xf32>
    %cst_13 = arith.constant dense<0.000000e+00> : vector<128x2xf32>
    %43 = tpu.matmul %42, %41, %cst_13 {dimension_numbers = #tpu.dot_dimension_numbers<[1], [0], [0], [1], [0, 0, 1, 1], [], []>} : vector<128x512xf32>, vector<512x2xf32>, vector<128x2xf32> -> vector<128x2xf32>
    %c0_14 = arith.constant 0 : index
    %c0_15 = arith.constant 0 : index
    %44 = vector.load %arg7[%c0_14, %c0_15] : memref<128x1xf32, #tpu.memory_space<vmem>>, vector<128x1xf32>
    %45 = vector.broadcast %44 : vector<128x1xf32> to vector<128x2xf32>
    %46 = arith.addf %43, %45 : vector<128x2xf32>
    %cst_16 = arith.constant 0.000000e+00 : f32
    %47 = vector.broadcast %cst_16 : f32 to vector<128x2xf32>
    %48 = arith.maximumf %46, %47 : vector<128x2xf32>
    %c0_17 = arith.constant 0 : index
    %c0_18 = arith.constant 0 : index
    %49 = vector.load %arg8[%c0_17, %c0_18] : memref<128x128xf32, #tpu.memory_space<vmem>>, vector<128x128xf32>
    %cst_19 = arith.constant dense<0.000000e+00> : vector<128x2xf32>
    %50 = tpu.matmul %49, %48, %cst_19 {dimension_numbers = #tpu.dot_dimension_numbers<[1], [0], [0], [1], [0, 0, 1, 1], [], []>} : vector<128x128xf32>, vector<128x2xf32>, vector<128x2xf32> -> vector<128x2xf32>
    %c0_20 = arith.constant 0 : index
    %c0_21 = arith.constant 0 : index
    %51 = vector.load %arg9[%c0_20, %c0_21] : memref<128x1xf32, #tpu.memory_space<vmem>>, vector<128x1xf32>
    %52 = vector.broadcast %51 : vector<128x1xf32> to vector<128x2xf32>
    %53 = arith.addf %50, %52 : vector<128x2xf32>
    %cst_22 = arith.constant 0.000000e+00 : f32
    %54 = vector.broadcast %cst_22 : f32 to vector<128x2xf32>
    %55 = arith.maximumf %53, %54 : vector<128x2xf32>
    %c0_23 = arith.constant 0 : index
    %c0_24 = arith.constant 0 : index
    %56 = vector.load %arg1[%c0_23, %c0_24] : memref<128x2xf32, #tpu.memory_space<vmem>>, vector<128x2xf32>
    %57 = tpu.concatenate %55, %56 in 0 : vector<128x2xf32>, vector<128x2xf32> -> vector<256x2xf32>
    %c0_25 = arith.constant 0 : index
    %c0_26 = arith.constant 0 : index
    %58 = vector.load %arg10[%c0_25, %c0_26] : memref<256x256xf32, #tpu.memory_space<vmem>>, vector<256x256xf32>
    %cst_27 = arith.constant dense<0.000000e+00> : vector<256x2xf32>
    %59 = tpu.matmul %58, %57, %cst_27 {dimension_numbers = #tpu.dot_dimension_numbers<[1], [0], [0], [1], [0, 0, 1, 1], [], []>} : vector<256x256xf32>, vector<256x2xf32>, vector<256x2xf32> -> vector<256x2xf32>
    %c0_28 = arith.constant 0 : index
    %c0_29 = arith.constant 0 : index
    %60 = vector.load %arg11[%c0_28, %c0_29] : memref<256x1xf32, #tpu.memory_space<vmem>>, vector<256x1xf32>
    %61 = vector.broadcast %60 : vector<256x1xf32> to vector<256x2xf32>
    %62 = arith.addf %59, %61 : vector<256x2xf32>
    %63 = arith.negf %62 : vector<256x2xf32>
    %64 = math.exp %63 : vector<256x2xf32>
    %cst_30 = arith.constant 1.000000e+00 : f32
    %65 = vector.broadcast %cst_30 : f32 to vector<256x2xf32>
    %66 = arith.addf %65, %64 : vector<256x2xf32>
    %67 = arith.divf %65, %66 : vector<256x2xf32>
    %68 = vector.extract_strided_slice %67 {offsets = [0, 0], sizes = [128, 2], strides = [1, 1]} : vector<256x2xf32> to vector<128x2xf32>
    %69 = vector.extract_strided_slice %67 {offsets = [128, 0], sizes = [128, 2], strides = [1, 1]} : vector<256x2xf32> to vector<128x2xf32>
    %c0_31 = arith.constant 0 : index
    %c0_32 = arith.constant 0 : index
    %70 = vector.load %arg12[%c0_31, %c0_32] : memref<128x128xf32, #tpu.memory_space<vmem>>, vector<128x128xf32>
    %cst_33 = arith.constant dense<0.000000e+00> : vector<128x2xf32>
    %71 = tpu.matmul %70, %55, %cst_33 {dimension_numbers = #tpu.dot_dimension_numbers<[1], [0], [0], [1], [0, 0, 1, 1], [], []>} : vector<128x128xf32>, vector<128x2xf32>, vector<128x2xf32> -> vector<128x2xf32>
    %c0_34 = arith.constant 0 : index
    %c0_35 = arith.constant 0 : index
    %72 = vector.load %arg13[%c0_34, %c0_35] : memref<128x1xf32, #tpu.memory_space<vmem>>, vector<128x1xf32>
    %73 = vector.broadcast %72 : vector<128x1xf32> to vector<128x2xf32>
    %74 = arith.addf %71, %73 : vector<128x2xf32>
    %c0_36 = arith.constant 0 : index
    %c0_37 = arith.constant 0 : index
    %75 = vector.load %arg14[%c0_36, %c0_37] : memref<128x128xf32, #tpu.memory_space<vmem>>, vector<128x128xf32>
    %cst_38 = arith.constant dense<0.000000e+00> : vector<128x2xf32>
    %76 = tpu.matmul %75, %56, %cst_38 {dimension_numbers = #tpu.dot_dimension_numbers<[1], [0], [0], [1], [0, 0, 1, 1], [], []>} : vector<128x128xf32>, vector<128x2xf32>, vector<128x2xf32> -> vector<128x2xf32>
    %c0_39 = arith.constant 0 : index
    %c0_40 = arith.constant 0 : index
    %77 = vector.load %arg15[%c0_39, %c0_40] : memref<128x1xf32, #tpu.memory_space<vmem>>, vector<128x1xf32>
    %78 = vector.broadcast %77 : vector<128x1xf32> to vector<128x2xf32>
    %79 = arith.addf %76, %78 : vector<128x2xf32>
    %80 = arith.mulf %68, %79 : vector<128x2xf32>
    %81 = arith.addf %74, %80 : vector<128x2xf32>
    %82 = math.tanh %81 : vector<128x2xf32>
    %cst_41 = arith.constant 1.000000e+00 : f32
    %83 = vector.broadcast %cst_41 : f32 to vector<128x2xf32>
    %84 = arith.subf %83, %69 : vector<128x2xf32>
    %85 = arith.mulf %84, %82 : vector<128x2xf32>
    %86 = arith.mulf %69, %56 : vector<128x2xf32>
    %87 = arith.addf %85, %86 : vector<128x2xf32>
    %c0_42 = arith.constant 0 : index
    %c0_43 = arith.constant 0 : index
    %88 = vector.load %arg16[%c0_42, %c0_43] : memref<8x128xf32, #tpu.memory_space<vmem>>, vector<8x128xf32>
    %cst_44 = arith.constant dense<0.000000e+00> : vector<8x2xf32>
    %89 = tpu.matmul %88, %87, %cst_44 {dimension_numbers = #tpu.dot_dimension_numbers<[1], [0], [0], [1], [0, 0, 1, 1], [], []>} : vector<8x128xf32>, vector<128x2xf32>, vector<8x2xf32> -> vector<8x2xf32>
    %c0_45 = arith.constant 0 : index
    %c0_46 = arith.constant 0 : index
    %90 = vector.load %arg17[%c0_45, %c0_46] : memref<8x1xf32, #tpu.memory_space<vmem>>, vector<8x1xf32>
    %91 = vector.broadcast %90 : vector<8x1xf32> to vector<8x2xf32>
    %92 = arith.addf %89, %91 : vector<8x2xf32>
    %c0_47 = arith.constant 0 : index
    %c0_48 = arith.constant 0 : index
    %93 = vector.load %arg18[%c0_47, %c0_48] : memref<8x2xf32, #tpu.memory_space<vmem>>, vector<8x2xf32>
    tpu.vector_store %arg18[%c0_47, %c0_48], %92 {strides = array<i32>} : memref<8x2xf32, #tpu.memory_space<vmem>>, vector<8x2xf32>,
    %c0_49 = arith.constant 0 : index
    %c0_50 = arith.constant 0 : index
    %94 = vector.load %arg19[%c0_49, %c0_50] : memref<128x2xf32, #tpu.memory_space<vmem>>, vector<128x2xf32>
    tpu.vector_store %arg19[%c0_49, %c0_50], %87 {strides = array<i32>} : memref<128x2xf32, #tpu.memory_space<vmem>>, vector<128x2xf32>,
    return
  }
}

</mosaic_0001>

<bundles_post_ra>
// kernel: crnn_forward.2
= control target key start
LH: loop header
LB: loop body
LE: loop exit
PB: predicated region body
PF: predicated region fallthrough
CT: control target
= control target key end

     0   :  { %v572_v3 = vmov 0   ;;  %vm144_vm0 = vcmask 179200   ;;  %vm151_vm1 = vcmask 1045504   ;;  %vm418_vm2 = vcmask 670720   ;;  %s1018_s1 = inlined_call_operand.vmem [shape: f32[150,722], index: 1, kind: input, shape index: {}]   ;;  %s1019_s0 = inlined_call_operand.vmem [shape: f32[16,150], index: 0, kind: input, shape index: {}]   ;;  %s1020_s2 = inlined_call_operand.vmem [shape: f32[16,1], index: 2, kind: input, shape index: {}]   ;;  %s1021_s3 = inlined_call_operand.vmem [shape: f32[16,722], index: 3, kind: output, shape index: {}]  }
   0x1   :  { %v19_v0 = vld [vmem:[%s1018_s1 + $0x8] sm:$0xff]  ;;  %v25_v1 = vld [vmem:[%s1018_s1 + $0x38] sm:$0xff]  ;;  %571 = vset.pattern.permute.xlu0 %v572_v3  ;;  %v18_v6 = vld [vmem:[%s1018_s1] sm:$0xff] }
   0x2   :  { %v21_v2 = vld [vmem:[%s1018_s1 + $0x18] sm:$0xff]  ;;  %v442_v4 = vpack.c.bf16 %v25_v1, %v19_v0  ;;  %v27_v5 = vld [vmem:[%s1018_s1 + $0x48] sm:$0xff]  ;;  %v24_v7 = vld [vmem:[%s1018_s1 + $0x30] sm:$0xff] }
   0x3   :  { %v478_v8 = vpack.c.bf16 %v27_v5, %v21_v2  ;;  %v444_v9 = vpack.c.bf16 %v24_v7, %v18_v6  ;;  %v20_v10 = vld [vmem:[%s1018_s1 + $0x10] sm:$0xff]  ;;  %v26_v11 = vld [vmem:[%s1018_s1 + $0x40] sm:$0xff]  ;;  %v31_v12 = vld [vmem:[%s1018_s1 + $0x68] sm:$0xff] }
   0x4   :  { %443 = vmatprep.subr.bf16.mxu0 %v442_v4  ;;  %v480_v13 = vpack.c.bf16 %v26_v11, %v20_v10  ;;  %v37_v14 = vld [vmem:[%s1018_s1 + $0x98] sm:$0xff]  ;;  %v39_v16 = vld [vmem:[%s1018_s1 + $0xa8] sm:$0xff]  ;;  %v30_v19 = vld [vmem:[%s1018_s1 + $0x60] sm:$0xff] }
   0x5   :  { %v33_v15 = vld [vmem:[%s1018_s1 + $0x78] sm:$0xff]  ;;  %479 = vmatprep.subr.bf16.mxu1 %v478_v8  ;;  %445 = vmatpush1.bf16.msra.mxu0 %v444_v9  ;;  %v446_v17 = vpack.c.bf16 %v37_v14, %v31_v12  ;;  %v36_v20 = vld [vmem:[%s1018_s1 + $0x90] sm:$0xff]  ;;  %v38_v23 = vld [vmem:[%s1018_s1 + $0xa0] sm:$0xff] }
   0x6   :  { %v482_v18 = vpack.c.bf16 %v39_v16, %v33_v15  ;;  %v32_v21 = vld [vmem:[%s1018_s1 + $0x70] sm:$0xff]  ;;  %481 = vmatpush1.bf16.msra.mxu1 %v480_v13  ;;  %v448_v22 = vpack.c.bf16 %v36_v20, %v30_v19  ;;  %v43_v24 = vld [vmem:[%s1018_s1 + $0xc8] sm:$0xff]  ;;  %v49_v25 = vld [vmem:[%s1018_s1 + $0xf8] sm:$0xff] }
   0x7   :  { %447 = vmatprep.subr.bf16.mxu0 %v446_v17  ;;  %v484_v26 = vpack.c.bf16 %v38_v23, %v32_v21  ;;  %v450_v27 = vpack.c.bf16 %v49_v25, %v43_v24  ;;  %v45_v28 = vld [vmem:[%s1018_s1 + $0xd8] sm:$0xff]  ;;  %v51_v29 = vld [vmem:[%s1018_s1 + $0x108] sm:$0xff]  ;;  %v42_v30 = vld [vmem:[%s1018_s1 + $0xc0] sm:$0xff] }
   0x8   :  { %483 = vmatprep.subr.bf16.mxu1 %v482_v18  ;;  %v486_v31 = vpack.c.bf16 %v51_v29, %v45_v28  ;;  %v48_v32 = vld [vmem:[%s1018_s1 + $0xf0] sm:$0xff]  ;;  %v50_v34 = vld [vmem:[%s1018_s1 + $0x100] sm:$0xff]  ;;  %v55_v36 = vld [vmem:[%s1018_s1 + $0x128] sm:$0xff] }
   0x9   :  { %v44_v33 = vld [vmem:[%s1018_s1 + $0xd0] sm:$0xff]  ;;  %449 = vmatpush1.bf16.msra.mxu0 %v448_v22  ;;  %v452_v35 = vpack.c.bf16 %v48_v32, %v42_v30  ;;  %v61_v37 = vld [vmem:[%s1018_s1 + $0x158] sm:$0xff]  ;;  %v63_v41 = vld [vmem:[%s1018_s1 + $0x168] sm:$0xff] }
   0xa   :  { %v57_v38 = vld [vmem:[%s1018_s1 + $0x138] sm:$0xff]  ;;  %485 = vmatpush1.bf16.msra.mxu1 %v484_v26  ;;  %451 = vmatprep.subr.bf16.mxu0 %v450_v27  ;;  %v488_v39 = vpack.c.bf16 %v50_v34, %v44_v33  ;;  %v454_v40 = vpack.c.bf16 %v61_v37, %v55_v36  ;;  %v54_v42 = vld [vmem:[%s1018_s1 + $0x120] sm:$0xff]  ;;  %v60_v43 = vld [vmem:[%s1018_s1 + $0x150] sm:$0xff] }
   0xb   :  { %487 = vmatprep.subr.bf16.mxu1 %v486_v31  ;;  %v490_v44 = vpack.c.bf16 %v63_v41, %v57_v38  ;;  %v56_v45 = vld [vmem:[%s1018_s1 + $0x130] sm:$0xff]  ;;  %v62_v46 = vld [vmem:[%s1018_s1 + $0x160] sm:$0xff]  ;;  %v67_v47 = vld [vmem:[%s1018_s1 + $0x188] sm:$0xff]  ;;  %v456_v51 = vpack.c.bf16 %v60_v43, %v54_v42 }
   0xc   :  { %v73_v48 = vld [vmem:[%s1018_s1 + $0x1b8] sm:$0xff]  ;;  %v75_v50 = vld [vmem:[%s1018_s1 + $0x1c8] sm:$0xff]  ;;  %v492_v52 = vpack.c.bf16 %v62_v46, %v56_v45  ;;  %v66_v54 = vld [vmem:[%s1018_s1 + $0x180] sm:$0xff] }
   0xd   :  { %v69_v49 = vld [vmem:[%s1018_s1 + $0x198] sm:$0xff]  ;;  %453 = vmatpush1.bf16.msra.mxu0 %v452_v35  ;;  %v458_v53 = vpack.c.bf16 %v73_v48, %v67_v47  ;;  %v72_v55 = vld [vmem:[%s1018_s1 + $0x1b0] sm:$0xff]  ;;  %v74_v58 = vld [vmem:[%s1018_s1 + $0x1c0] sm:$0xff] }
   0xe   :  { %489 = vmatpush1.bf16.msra.mxu1 %v488_v39  ;;  %455 = vmatprep.subr.bf16.mxu0 %v454_v40  ;;  %v68_v56 = vld [vmem:[%s1018_s1 + $0x190] sm:$0xff]  ;;  %v494_v57 = vpack.c.bf16 %v75_v50, %v69_v49  ;;  %v79_v59 = vld [vmem:[%s1018_s1 + $0x1e8] sm:$0xff]  ;;  %v85_v60 = vld [vmem:[%s1018_s1 + $0x218] sm:$0xff]  ;;  %v460_v63 = vpack.c.bf16 %v72_v55, %v66_v54 }
   0xf   :  { %491 = vmatprep.subr.bf16.mxu1 %v490_v44  ;;  %v81_v61 = vld [vmem:[%s1018_s1 + $0x1f8] sm:$0xff]  ;;  %v87_v62 = vld [vmem:[%s1018_s1 + $0x228] sm:$0xff]  ;;  %v496_v0 = vpack.c.bf16 %v74_v58, %v68_v56  ;;  %v462_v1 = vpack.c.bf16 %v85_v60, %v79_v59  ;;  %v78_v2 = vld [vmem:[%s1018_s1 + $0x1e0] sm:$0xff] }
  0x10   :  { %v84_v3 = vld [vmem:[%s1018_s1 + $0x210] sm:$0xff]  ;;  %v498_v5 = vpack.c.bf16 %v87_v62, %v81_v61  ;;  %v86_v6 = vld [vmem:[%s1018_s1 + $0x220] sm:$0xff]  ;;  %v91_v7 = vld [vmem:[%s1018_s1 + $0x248] sm:$0xff] }
  0x11   :  { %457 = vmatpush1.bf16.msra.mxu0 %v456_v51  ;;  %v80_v4 = vld [vmem:[%s1018_s1 + $0x1f0] sm:$0xff]  ;;  %v97_v8 = vld [vmem:[%s1018_s1 + $0x278] sm:$0xff]  ;;  %v99_v10 = vld [vmem:[%s1018_s1 + $0x288] sm:$0xff]  ;;  %v464_v11 = vpack.c.bf16 %v84_v3, %v78_v2 }
  0x12   :  { %493 = vmatpush1.bf16.msra.mxu1 %v492_v52  ;;  %459 = vmatprep.subr.bf16.mxu0 %v458_v53  ;;  %v93_v9 = vld [vmem:[%s1018_s1 + $0x258] sm:$0xff]  ;;  %v500_v12 = vpack.c.bf16 %v86_v6, %v80_v4  ;;  %v466_v13 = vpack.c.bf16 %v97_v8, %v91_v7  ;;  %v90_v14 = vld [vmem:[%s1018_s1 + $0x240] sm:$0xff]  ;;  %v96_v15 = vld [vmem:[%s1018_s1 + $0x270] sm:$0xff] }
  0x13   :  { %495 = vmatprep.subr.bf16.mxu1 %v494_v57  ;;  %v92_v16 = vld [vmem:[%s1018_s1 + $0x250] sm:$0xff]  ;;  %v502_v17 = vpack.c.bf16 %v99_v10, %v93_v9  ;;  %v98_v18 = vld [vmem:[%s1018_s1 + $0x280] sm:$0xff]  ;;  %v103_v19 = vld [vmem:[%s1018_s1 + $0x2a8] sm:$0xff]  ;;  %v468_v23 = vpack.c.bf16 %v96_v15, %v90_v14 }
  0x14   :  { %v109_v20 = vld [vmem:[%s1018_s1 + $0x2d8] sm:$0xff]  ;;  %v111_v22 = vld [vmem:[%s1018_s1 + $0x2e8] sm:$0xff]  ;;  %v102_v24 = vld [vmem:[%s1018_s1 + $0x2a0] sm:$0xff]  ;;  %v504_v25 = vpack.c.bf16 %v98_v18, %v92_v16 }
  0x15   :  { %461 = vmatpush1.bf16.msra.mxu0 %v460_v63  ;;  %v105_v21 = vld [vmem:[%s1018_s1 + $0x2b8] sm:$0xff]  ;;  %v470_v26 = vpack.c.bf16 %v109_v20, %v103_v19  ;;  %v108_v27 = vld [vmem:[%s1018_s1 + $0x2d0] sm:$0xff]  ;;  %v785_v29 = vld [vmem:[%s1019_s0 + $0x8] sm:$0xff] }
  0x16   :  { %497 = vmatpush1.bf16.msra.mxu1 %v496_v0  ;;  %463 = vmatprep.subr.bf16.mxu0 %v462_v1  ;;  %v104_v28 = vld [vmem:[%s1018_s1 + $0x2b0] sm:$0xff]  ;;  %v506_v30 = vpack.c.bf16 %v111_v22, %v105_v21  ;;  %v110_v31 = vld [vmem:[%s1018_s1 + $0x2e0] sm:$0xff]  ;;  %v115_v32 = vld [vmem:[%s1018_s1 + $0x308] sm:$0xff]  ;;  %v472_v36 = vpack.c.bf16 %v108_v27, %v102_v24 }
  0x17   :  { %499 = vmatprep.subr.bf16.mxu1 %v498_v5  ;;  %v121_v33 = vld [vmem:[%s1018_s1 + $0x338] sm:$0xff]  ;;  %432 = vmatprep.mubr.msk.f32.mxu0 %vm144_vm0, %v785_v29  ;;  %v123_v35 = vld [vmem:[%s1018_s1 + $0x348] sm:$0xff]  ;;  %v508_v37 = vpack.c.bf16 %v110_v31, %v104_v28  ;;  %v114_v39 = vld [vmem:[%s1018_s1 + $0x300] sm:$0xff] }
  0x18   :  { %v117_v34 = vld [vmem:[%s1018_s1 + $0x318] sm:$0xff]  ;;  %436 = vmatprep.mubr.msk.f32.mxu1 %vm144_vm0, %v785_v29  ;;  %v474_v38 = vpack.c.bf16 %v121_v33, %v115_v32  ;;  %v120_v40 = vld [vmem:[%s1018_s1 + $0x330] sm:$0xff]  ;;  %v122_v43 = vld [vmem:[%s1018_s1 + $0x340] sm:$0xff] }
  0x19   :  { %465 = vmatpush1.bf16.msra.mxu0 %v464_v11  ;;  %v510_v41 = vpack.c.bf16 %v123_v35, %v117_v34  ;;  %v116_v42 = vld [vmem:[%s1018_s1 + $0x310] sm:$0xff]  ;;  %v476_v44 = vpack.c.bf16 %v120_v40, %v114_v39  ;;  %v127_v46 = vld [vmem:[%s1018_s1 + $0x368] sm:$0x3f]  ;;  %v129_v47 = vld [vmem:[%s1018_s1 + $0x378] sm:$0x3f] }
  0x1a   :  { %501 = vmatpush1.bf16.msra.mxu1 %v500_v12  ;;  %467 = vmatprep.subr.bf16.mxu0 %v466_v13  ;;  %v512_v45 = vpack.c.bf16 %v122_v43, %v116_v42  ;;  %v23_v48 = vld [vmem:[%s1018_s1 + $0x28] sm:$0xff]  ;;  %v29_v49 = vld [vmem:[%s1018_s1 + $0x58] sm:$0xff]  ;;  %v22_v50 = vld [vmem:[%s1018_s1 + $0x20] sm:$0xff] }
  0x1b   :  { %503 = vmatprep.subr.bf16.mxu1 %v502_v17  ;;  %v28_v51 = vld [vmem:[%s1018_s1 + $0x50] sm:$0xff]  ;;  %v126_v52 = vld [vmem:[%s1018_s1 + $0x360] sm:$0x3f]  ;;  %v35_v53 = vld [vmem:[%s1018_s1 + $0x88] sm:$0xff]  ;;  %v514_v57 = vpack.c.bf16 %v29_v49, %v23_v48 }
  0x1c   :  { %v41_v54 = vld [vmem:[%s1018_s1 + $0xb8] sm:$0xff]  ;;  %v128_v55 = vld [vmem:[%s1018_s1 + $0x370] sm:$0x3f]  ;;  %v853_v56 = vld [vmem:[%s1019_s0] sm:$0xff]  ;;  %v516_v58 = vpack.c.bf16 %v28_v51, %v22_v50 }
  0x1d   :  { %469 = vmatpush1.bf16.msra.mxu0 %v468_v23  ;;  %v132_v59 = vld [vmem:[%s1020_s2] sm:$0xff]  ;;  %v518_v60 = vpack.c.bf16 %v41_v54, %v35_v53  ;;  %v40_v62 = vld [vmem:[%s1018_s1 + $0xb0] sm:$0xff]  ;;  %v47_v63 = vld [vmem:[%s1018_s1 + $0xe8] sm:$0xff] }
  0x1e   :  { %505 = vmatpush1.bf16.msra.mxu1 %v504_v25  ;;  %471 = vmatprep.subr.bf16.mxu0 %v470_v26  ;;  %v34_v61 = vld [vmem:[%s1018_s1 + $0x80] sm:$0xff]  ;;  %v53_v0 = vld [vmem:[%s1018_s1 + $0x118] sm:$0xff]  ;;  %v880_v3 = vld [vmem:[%s1019_s0 + $0x10] sm:$0xff] }
  0x1f   :  { %507 = vmatprep.subr.bf16.mxu1 %v506_v30  ;;  %136 = vperm.xlu0 %571, %v132_v59   ;;  %v17_v1 = vld [vmem:[%s1019_s0 + $0x18] sm:$0xff]  ;;  %v520_v2 = vpack.c.bf16 %v40_v62, %v34_v61  ;;  %v522_v4 = vpack.c.bf16 %v53_v0, %v47_v63  ;;  %v46_v5 = vld [vmem:[%s1018_s1 + $0xe0] sm:$0xff]  ;;  %v52_v6 = vld [vmem:[%s1018_s1 + $0x110] sm:$0xff] }
  0x20   :  { %v59_v7 = vld [vmem:[%s1018_s1 + $0x148] sm:$0xff]  ;;  %v65_v8 = vld [vmem:[%s1018_s1 + $0x178] sm:$0xff]  ;;  %v524_v9 = vpack.c.bf16 %v52_v6, %v46_v5  ;;  %v58_v12 = vld [vmem:[%s1018_s1 + $0x140] sm:$0xff] }
  0x21   :  { %473 = vmatpush1.bf16.msra.mxu0 %v472_v36  ;;  %v133_v10 = vld [vmem:[%s1020_s2 + $0x8] sm:$0xff]  ;;  %v526_v11 = vpack.c.bf16 %v65_v8, %v59_v7  ;;  %v64_v13 = vld [vmem:[%s1018_s1 + $0x170] sm:$0xff]  ;;  %v77_v15 = vld [vmem:[%s1018_s1 + $0x1d8] sm:$0xff] }
  0x22   :  { %509 = vmatpush1.bf16.msra.mxu1 %v508_v37  ;;  %475 = vmatprep.subr.bf16.mxu0 %v474_v38  ;;  %v71_v14 = vld [vmem:[%s1018_s1 + $0x1a8] sm:$0xff]  ;;  %v528_v16 = vpack.c.bf16 %v64_v13, %v58_v12  ;;  %v70_v18 = vld [vmem:[%s1018_s1 + $0x1a0] sm:$0xff]  ;;  %v76_v19 = vld [vmem:[%s1018_s1 + $0x1d0] sm:$0xff] }
  0x23   :  { %511 = vmatprep.subr.bf16.mxu1 %v510_v41  ;;  %141 = vperm.xlu0 %571, %v133_v10   ;;  %v530_v17 = vpack.c.bf16 %v77_v15, %v71_v14  ;;  %v83_v20 = vld [vmem:[%s1018_s1 + $0x208] sm:$0xff]  ;;  %v89_v21 = vld [vmem:[%s1018_s1 + $0x238] sm:$0xff]  ;;  %v532_v22 = vpack.c.bf16 %v76_v19, %v70_v18  ;;  %v82_v24 = vld [vmem:[%s1018_s1 + $0x200] sm:$0xff] }
  0x24   :  { %v534_v23 = vpack.c.bf16 %v89_v21, %v83_v20  ;;  %v88_v25 = vld [vmem:[%s1018_s1 + $0x230] sm:$0xff]  ;;  %v95_v26 = vld [vmem:[%s1018_s1 + $0x268] sm:$0xff]  ;;  %v101_v27 = vld [vmem:[%s1018_s1 + $0x298] sm:$0xff] }
  0x25   :  { %477 = vmatpush1.bf16.msra.mxu0 %v476_v44  ;;  %v536_v28 = vpack.c.bf16 %v88_v25, %v82_v24  ;;  %v94_v30 = vld [vmem:[%s1018_s1 + $0x260] sm:$0xff]  ;;  %v100_v31 = vld [vmem:[%s1018_s1 + $0x290] sm:$0xff]  ;;  %v107_v32 = vld [vmem:[%s1018_s1 + $0x2c8] sm:$0xff] }
  0x26   :  { %513 = vmatpush1.bf16.msra.mxu1 %v512_v45  ;;  %430 = vmatprep.subr.msk.mxu0 %vm151_vm1, %v127_v46  ;;  %v113_v33 = vld [vmem:[%s1018_s1 + $0x2f8] sm:$0xff]  ;;  %v540_v34 = vpack.c.bf16 %v100_v31, %v94_v30  ;;  %v106_v36 = vld [vmem:[%s1018_s1 + $0x2c0] sm:$0xff]  ;;  %v112_v37 = vld [vmem:[%s1018_s1 + $0x2f0] sm:$0xff] }
  0x27   :  { %434 = vmatprep.subr.msk.mxu1 %vm151_vm1, %v129_v47  ;;  %v542_v35 = vpack.c.bf16 %v113_v33, %v107_v32  ;;  %v119_v38 = vld [vmem:[%s1018_s1 + $0x328] sm:$0xff]  ;;  %v125_v39 = vld [vmem:[%s1018_s1 + $0x358] sm:$0xff]  ;;  %v544_v40 = vpack.c.bf16 %v112_v37, %v106_v36  ;;  %v118_v42 = vld [vmem:[%s1018_s1 + $0x320] sm:$0xff] }
  0x28   :  { %v546_v41 = vpack.c.bf16 %v125_v39, %v119_v38  ;;  %v124_v43 = vld [vmem:[%s1018_s1 + $0x350] sm:$0xff]  ;;  %v131_v45 = vld [vmem:[%s1018_s1 + $0x388] sm:$0x3f]  ;;  %v130_v46 = vld [vmem:[%s1018_s1 + $0x380] sm:$0x3f] }
  0x29   :  { %431 = vmatpush1.msk.msra.mxu0 %vm151_vm1, %v126_v52  ;;  %v548_v44 = vpack.c.bf16 %v124_v43, %v118_v42 }
  0x2a   :  { %435 = vmatpush1.msk.msra.mxu1 %vm151_vm1, %v128_v55  ;;  %235 = vmatmul.mubr.f32.vlgmr.msra.gmra.mrb[0].mxu0 %v853_v56 }
  0x2b   :  { %312 = vmatmul.mubr.f32.vlgmr.msra.gmra.mrb[0].mxu1 %v853_v56  ;;  %515 = vmatprep.subr.bf16.mxu0 %v514_v57 }
  0x2c   :  { %550 = vmatprep.subr.bf16.mxu1 %v514_v57  ;;  %517 = vmatpush1.bf16.msra.mxu0 %v516_v58 }
  0x2d   :  { %560 = vmatpush1.bf16.msra.mxu1 %v516_v58  ;;  %519 = vmatprep.subr.bf16.mxu0 %v518_v60 }
  0x2e   :  { %551 = vmatprep.subr.bf16.mxu1 %v518_v60  ;;  %433 = vmatprep.mubr.msk.f32.mxu0 %vm144_vm0, %v17_v1 }
  0x2f   :  { %437 = vmatprep.mubr.msk.f32.mxu1 %vm144_vm0, %v17_v1  ;;  %241 = vmatmul.mubr.f32.gmra.mrb[2].mxu0 %v880_v3 }
  0x30   :  { %521 = vmatpush1.bf16.msra.mxu0 %v520_v2  ;;  %318 = vmatmul.mubr.f32.gmra.mrb[2].mxu1 %v880_v3 }
  0x31   :  { %561 = vmatpush1.bf16.msra.mxu1 %v520_v2  ;;  %523 = vmatprep.subr.bf16.mxu0 %v522_v4 }
  0x32   :  { %552 = vmatprep.subr.bf16.mxu1 %v522_v4  ;;  %440 = vmatprep.mubr.msk.f32.mxu0 %vm144_vm0, %v785_v29  ;;  %v538_v29 = vpack.c.bf16 %v101_v27, %v95_v26 }
  0x33   :  { %441 = vmatprep.mubr.msk.f32.mxu1 %vm144_vm0, %v17_v1 }
  0x34   :  { %525 = vmatpush1.bf16.msra.mxu0 %v524_v9 }
  0x35   :  { %562 = vmatpush1.bf16.msra.mxu1 %v524_v9  ;;  %527 = vmatprep.subr.bf16.mxu0 %v526_v11 }
  0x36   :  { %553 = vmatprep.subr.bf16.mxu1 %v526_v11 }
  0x38   :  { %529 = vmatpush1.bf16.msra.mxu0 %v528_v16 }
  0x39   :  { %563 = vmatpush1.bf16.msra.mxu1 %v528_v16  ;;  %531 = vmatprep.subr.bf16.mxu0 %v530_v17 }
  0x3a   :  { %554 = vmatprep.subr.bf16.mxu1 %v530_v17 }
  0x3c   :  { %533 = vmatpush1.bf16.msra.mxu0 %v532_v22 }
  0x3d   :  { %564 = vmatpush1.bf16.msra.mxu1 %v532_v22  ;;  %535 = vmatprep.subr.bf16.mxu0 %v534_v23 }
  0x3e   :  { %555 = vmatprep.subr.bf16.mxu1 %v534_v23 }
  0x40   :  { %537 = vmatpush1.bf16.msra.mxu0 %v536_v28 }
  0x41   :  { %565 = vmatpush1.bf16.msra.mxu1 %v536_v28  ;;  %539 = vmatprep.subr.bf16.mxu0 %v538_v29 }
  0x42   :  { %556 = vmatprep.subr.bf16.mxu1 %v538_v29 }
  0x44   :  { %541 = vmatpush1.bf16.msra.mxu0 %v540_v34 }
  0x45   :  { %566 = vmatpush1.bf16.msra.mxu1 %v540_v34  ;;  %543 = vmatprep.subr.bf16.mxu0 %v542_v35 }
  0x46   :  { %557 = vmatprep.subr.bf16.mxu1 %v542_v35 }
  0x48   :  { %545 = vmatpush1.bf16.msra.mxu0 %v544_v40 }
  0x49   :  { %567 = vmatpush1.bf16.msra.mxu1 %v544_v40  ;;  %547 = vmatprep.subr.bf16.mxu0 %v546_v41 }
  0x4a   :  { %558 = vmatprep.subr.bf16.mxu1 %v546_v41 }
  0x4c   :  { %549 = vmatpush1.bf16.msra.mxu0 %v548_v44 }
  0x4d   :  { %568 = vmatpush1.bf16.msra.mxu1 %v548_v44  ;;  %438 = vmatprep.subr.msk.mxu0 %vm151_vm1, %v131_v45 }
  0x4e   :  { %559 = vmatprep.subr.msk.mxu1 %vm151_vm1, %v131_v45 }
  0x50   :  { %439 = vmatpush1.msk.msra.mxu0 %vm151_vm1, %v130_v46 }
  0x51   :  { %569 = vmatpush1.msk.msra.mxu1 %vm151_vm1, %v130_v46  ;;  %389 = vmatmul.mubr.f32.vlgmr.msra.gmra.mrb[4].mxu0 %v853_v56 }
  0x52   :  { %395 = vmatmul.mubr.f32.vlgmr.msra.gmra.mrb[4].mxu1 %v880_v3 }
  0x9e   :  { %v137_v47 = vpop.permute.xlu0 %136 }
  0xa2   :  { %v142_v58 = vpop.permute.xlu0 %141 }
  0xfd   :  { %v236_v48 = vpop.f32.mrb[0].mxu0 }
  0xfe   :  { %v313_v49 = vpop.f32.mrb[0].mxu1  ;;  %v237_v50 = vadd.f32 %v236_v48, %v137_v47  ;;  %v238_v51 = vpop.f32.mrb[1].mxu0 }
  0xff   :  { %v314_v52 = vadd.f32 %v313_v49, %v137_v47  ;;  %v239_v53 = vadd.f32 %v238_v51, %v137_v47  ;;  %v315_v54 = vpop.f32.mrb[1].mxu1 }
 0x100   :  { %v401_v55 = vmax.f32 %v237_v50, 0.0  ;;  %v316_v57 = vadd.f32 %v315_v54, %v137_v47 }
 0x101   :  { %v403_v59 = vmax.f32 %v314_v52, 0.0  ;;  %v402_v60 = vmax.f32 %v239_v53, 0.0 }
 0x102   :  { %413 = vst [vmem:[%s1021_s3] sm:$0xff] %v401_v55  ;;  %v404_v56 = vmax.f32 %v316_v57, 0.0  ;;  %v242_v61 = vpop.f32.mrb[2].mxu0 }
 0x103   :  { %415 = vst [vmem:[%s1021_s3 + $0x10] sm:$0xff] %v403_v59  ;;  %414 = vst [vmem:[%s1021_s3 + $0x8] sm:$0xff] %v402_v60  ;;  %v319_v62 = vpop.f32.mrb[2].mxu1  ;;  %v243_v63 = vadd.f32 %v242_v61, %v142_v58  ;;  %v244_v0 = vpop.f32.mrb[3].mxu0 }
 0x104   :  { %416 = vst [vmem:[%s1021_s3 + $0x18] sm:$0xff] %v404_v56  ;;  %v320_v1 = vadd.f32 %v319_v62, %v142_v58  ;;  %v245_v2 = vadd.f32 %v244_v0, %v142_v58  ;;  %v321_v3 = vpop.f32.mrb[3].mxu1 }
 0x105   :  { %v407_v4 = vmax.f32 %v243_v63, 0.0  ;;  %v322_v5 = vadd.f32 %v321_v3, %v142_v58 }
 0x106   :  { %v409_v6 = vmax.f32 %v320_v1, 0.0  ;;  %v408_v7 = vmax.f32 %v245_v2, 0.0 }
 0x107   :  { %420 = vst [vmem:[%s1021_s3 + $0x30] sm:$0xff] %v407_v4  ;;  %v410_v8 = vmax.f32 %v322_v5, 0.0 }
 0x108   :  { %422 = vst [vmem:[%s1021_s3 + $0x40] sm:$0xff] %v409_v6  ;;  %421 = vst [vmem:[%s1021_s3 + $0x38] sm:$0xff] %v408_v7 }
 0x109   :  { %423 = vst [vmem:[%s1021_s3 + $0x48] sm:$0xff] %v410_v8 }
 0x124   :  { %v390_v9 = vpop.f32.mrb[4].mxu0 }
 0x125   :  { %v391_v10 = vadd.f32 %v390_v9, %v137_v47  ;;  %v396_v11 = vpop.f32.mrb[4].mxu1  ;;  %v392_v12 = vpop.f32.mrb[5].mxu0 }
 0x126   :  { %v397_v13 = vadd.f32 %v396_v11, %v142_v58  ;;  %v393_v14 = vadd.f32 %v392_v12, %v137_v47  ;;  %v398_v15 = vpop.f32.mrb[5].mxu1 }
 0x127   :  { %v405_v16 = vmax.f32 %v391_v10, 0.0  ;;  %v399_v17 = vadd.f32 %v398_v15, %v142_v58 }
 0x128   :  { %v411_v18 = vmax.f32 %v397_v13, 0.0  ;;  %v406_v19 = vmax.f32 %v393_v14, 0.0 }
 0x129   :  { %417 = vst [vmem:[%s1021_s3 + $0x20] sm:$0xff] %v405_v16  ;;  %v412_v20 = vmax.f32 %v399_v17, 0.0 }
 0x12a   :  { %424 = vst [vmem:[%s1021_s3 + $0x50] sm:$0xff] %v411_v18  ;;  %419 = vst.msk [vmem:[%s1021_s3 + $0x28] sm:$0xff] %vm418_vm2, %v406_v19 }
 0x12b   :  { %425 = vst.msk [vmem:[%s1021_s3 + $0x58] sm:$0xff] %vm418_vm2, %v412_v20 }

// kernel: crnn_forward.3
= control target key start
LH: loop header
LB: loop body
LE: loop exit
PB: predicated region body
PF: predicated region fallthrough
CT: control target
= control target key end

     0   :  { %v4282_v3 = vmov 0   ;;  %vm201_vm0 = vcmask 130048   ;;  %s4283_s22 = smov 64   ;;  %s4286_s23 = smov 116   ;;  %vm4300_vm1 = vmmov 0   ;;  %vm2908_vm2 = vcmask 15360   ;;  %s6142_s0 = inlined_call_operand.vmem [shape: f32[400,256], index: 0, kind: input, shape index: {}]   ;;  %s6143_s2 = inlined_call_operand.vmem [shape: f32[32,400], index: 2, kind: input, shape index: {}]   ;;  %s6144_s3 = inlined_call_operand.vmem [shape: f32[32,1], index: 3, kind: input, shape index: {}]   ;;  %s6145_s5 = inlined_call_operand.vmem [shape: f32[32,1], index: 5, kind: input, shape index: {}]   ;;  %s6146_s4 = inlined_call_operand.vmem [shape: f32[32,128], index: 4, kind: input, shape index: {}]   ;;  %s6147_s6 = inlined_call_operand.vmem [shape: f32[128,512], index: 6, kind: input, shape index: {}]   ;;  %s6148_s7 = inlined_call_operand.vmem [shape: f32[128,1], index: 7, kind: input, shape index: {}]   ;;  %s6149_s9 = inlined_call_operand.vmem [shape: f32[128,1], index: 9, kind: input, shape index: {}]   ;;  %s6150_s11 = inlined_call_operand.vmem [shape: f32[256,1], index: 11, kind: input, shape index: {}]   ;;  %s6151_s15 = inlined_call_operand.vmem [shape: f32[128,1], index: 15, kind: input, shape index: {}]   ;;  %s6152_s13 = inlined_call_operand.vmem [shape: f32[128,1], index: 13, kind: input, shape index: {}]   ;;  %s6153_s17 = inlined_call_operand.vmem [shape: f32[8,1], index: 17, kind: input, shape index: {}]   ;;  %s6154_s8 = inlined_call_operand.vmem [shape: f32[128,128], index: 8, kind: input, shape index: {}]   ;;  %s6155_s12 = inlined_call_operand.vmem [shape: f32[128,128], index: 12, kind: input, shape index: {}]   ;;  %s6156_s10 = inlined_call_operand.vmem [shape: f32[256,256], index: 10, kind: input, shape index: {}]   ;;  %s6157_s1 = inlined_call_operand.vmem [shape: f32[128,2], index: 1, kind: input, shape index: {}, may-alias: {1,19}]   ;;  %s6158_s14 = inlined_call_operand.vmem [shape: f32[128,128], index: 14, kind: input, shape index: {}]   ;;  %s6159_s19 = inlined_call_operand.vmem [shape: f32[128,2], index: 19, kind: output, shape index: {1}, may-alias: {1,19}]   ;;  %s6160_s16 = inlined_call_operand.vmem [shape: f32[8,128], index: 16, kind: input, shape index: {}]   ;;  %s6161_s18 = inlined_call_operand.vmem [shape: f32[8,2], index: 18, kind: output, shape index: {0}]  }
   0x1   :  { %6168 = sst [smem:[#allocation20_spill]] %s6142_s0  ;;  %3904 = vset.pattern.permute.xlu0 %v4282_v3  ;;  %3905 = vset.pattern.permute.xlu1 %v4282_v3  ;;  %s4288_s26 = smov 124  }
   0x2   :  { %6169 = sst [smem:[#allocation21_spill]] %s6143_s2  ;;  %s6172_s20 = sld [smem:[#allocation20_spill]] }
   0x3   :  { %6170 = sst [smem:[#allocation22_spill]] %s6144_s3  ;;  %s6173_s21 = sld [smem:[#allocation21_spill]] }
   0x4   :  { %6171 = sst [smem:[#allocation23_spill]] %s6145_s5  ;;  %s6174_s30 = sld [smem:[#allocation22_spill]] }
   0x5   :  { %s4285_s3 = smov 118   ;;  %s6175_s25 = sld [smem:[#allocation23_spill]] }
   0x6   :  { %s4289_s27 = smov 112   ;;  %s4290_s29 = smov 122  }
   0x7   :  { %s4293_s0 = smov 96   ;;  %s4294_s2 = smov 106  }
   0x8   :  { %v78_v0 = vld [vmem:[%s6172_s20 + $0x8] sm:$0xff]  ;;  %v80_v1 = vld [vmem:[%s6172_s20 + $0x18] sm:$0xff]  ;;  %v77_v2 = vld [vmem:[%s6172_s20] sm:$0xff]  ;;  %s4296_s24 = smov 104  }
   0x9   :  { %v3504_v4 = vpack.c.bf16 %v80_v1, %v78_v0  ;;  %v79_v5 = vld [vmem:[%s6172_s20 + $0x10] sm:$0xff]  ;;  %v82_v6 = vld [vmem:[%s6172_s20 + $0x28] sm:$0xff]  ;;  %v84_v7 = vld [vmem:[%s6172_s20 + $0x38] sm:$0xff] }
   0xa   :  { %v3506_v8 = vpack.c.bf16 %v79_v5, %v77_v2  ;;  %v3508_v9 = vpack.c.bf16 %v84_v7, %v82_v6  ;;  %v81_v10 = vld [vmem:[%s6172_s20 + $0x20] sm:$0xff]  ;;  %v83_v11 = vld [vmem:[%s6172_s20 + $0x30] sm:$0xff]  ;;  %v86_v12 = vld [vmem:[%s6172_s20 + $0x48] sm:$0xff] }
   0xb   :  { %3505 = vmatprep.subr.bf16.mxu0 %v3504_v4  ;;  %v88_v13 = vld [vmem:[%s6172_s20 + $0x58] sm:$0xff]  ;;  %v3510_v14 = vpack.c.bf16 %v83_v11, %v81_v10  ;;  %v85_v16 = vld [vmem:[%s6172_s20 + $0x40] sm:$0xff]  ;;  %v87_v17 = vld [vmem:[%s6172_s20 + $0x50] sm:$0xff] }
   0xc   :  { %3507 = vmatpush1.bf16.msra.mxu0 %v3506_v8  ;;  %v3512_v15 = vpack.c.bf16 %v88_v13, %v86_v12  ;;  %v90_v18 = vld [vmem:[%s6172_s20 + $0x68] sm:$0xff]  ;;  %v92_v19 = vld [vmem:[%s6172_s20 + $0x78] sm:$0xff]  ;;  %v3514_v20 = vpack.c.bf16 %v87_v17, %v85_v16  ;;  %v89_v22 = vld [vmem:[%s6172_s20 + $0x60] sm:$0xff] }
   0xd   :  { %3509 = vmatprep.subr.bf16.mxu0 %v3508_v9  ;;  %v3516_v21 = vpack.c.bf16 %v92_v19, %v90_v18  ;;  %v91_v23 = vld [vmem:[%s6172_s20 + $0x70] sm:$0xff]  ;;  %v94_v24 = vld [vmem:[%s6172_s20 + $0x88] sm:$0xff]  ;;  %v96_v25 = vld [vmem:[%s6172_s20 + $0x98] sm:$0xff] }
   0xe   :  { %v3518_v26 = vpack.c.bf16 %v91_v23, %v89_v22  ;;  %v3520_v27 = vpack.c.bf16 %v96_v25, %v94_v24  ;;  %v93_v28 = vld [vmem:[%s6172_s20 + $0x80] sm:$0xff]  ;;  %v95_v29 = vld [vmem:[%s6172_s20 + $0x90] sm:$0xff]  ;;  %v98_v30 = vld [vmem:[%s6172_s20 + $0xa8] sm:$0xff] }
   0xf   :  { %v100_v31 = vld [vmem:[%s6172_s20 + $0xb8] sm:$0xff]  ;;  %v3522_v32 = vpack.c.bf16 %v95_v29, %v93_v28  ;;  %v97_v34 = vld [vmem:[%s6172_s20 + $0xa0] sm:$0xff]  ;;  %v99_v35 = vld [vmem:[%s6172_s20 + $0xb0] sm:$0xff] }
  0x10   :  { %3511 = vmatpush1.bf16.msra.mxu0 %v3510_v14  ;;  %v3524_v33 = vpack.c.bf16 %v100_v31, %v98_v30  ;;  %v102_v36 = vld [vmem:[%s6172_s20 + $0xc8] sm:$0xff]  ;;  %v104_v37 = vld [vmem:[%s6172_s20 + $0xd8] sm:$0xff]  ;;  %v3526_v38 = vpack.c.bf16 %v99_v35, %v97_v34  ;;  %v101_v40 = vld [vmem:[%s6172_s20 + $0xc0] sm:$0xff] }
  0x11   :  { %3513 = vmatprep.subr.bf16.mxu0 %v3512_v15  ;;  %v3528_v39 = vpack.c.bf16 %v104_v37, %v102_v36  ;;  %v103_v41 = vld [vmem:[%s6172_s20 + $0xd0] sm:$0xff]  ;;  %v62_v42 = vld [vmem:[%s6173_s21 + $0x8] sm:$0xff]  ;;  %v108_v44 = vld [vmem:[%s6172_s20 + $0xf8] sm:$0xff] }
  0x12   :  { %v106_v43 = vld [vmem:[%s6172_s20 + $0xe8] sm:$0xff]  ;;  %278 = vmatprep.mubr.f32.mxu0 %v62_v42  ;;  %v3530_v45 = vpack.c.bf16 %v103_v41, %v101_v40  ;;  %v105_v47 = vld [vmem:[%s6172_s20 + $0xe0] sm:$0xff]  ;;  %v107_v48 = vld [vmem:[%s6172_s20 + $0xf0] sm:$0xff] }
  0x13   :  { %v3532_v46 = vpack.c.bf16 %v108_v44, %v106_v43  ;;  %v110_v49 = vld [vmem:[%s6172_s20 + $0x108] sm:$0xff]  ;;  %v112_v50 = vld [vmem:[%s6172_s20 + $0x118] sm:$0xff]  ;;  %v3534_v51 = vpack.c.bf16 %v107_v48, %v105_v47  ;;  %v109_v53 = vld [vmem:[%s6172_s20 + $0x100] sm:$0xff] }
  0x14   :  { %3515 = vmatpush1.bf16.msra.mxu0 %v3514_v20  ;;  %v3536_v52 = vpack.c.bf16 %v112_v50, %v110_v49  ;;  %v111_v54 = vld [vmem:[%s6172_s20 + $0x110] sm:$0xff]  ;;  %v114_v55 = vld [vmem:[%s6172_s20 + $0x128] sm:$0xff]  ;;  %v116_v56 = vld [vmem:[%s6172_s20 + $0x138] sm:$0xff] }
  0x15   :  { %3517 = vmatprep.subr.bf16.mxu0 %v3516_v21  ;;  %v3538_v57 = vpack.c.bf16 %v111_v54, %v109_v53  ;;  %v3540_v58 = vpack.c.bf16 %v116_v56, %v114_v55  ;;  %v113_v59 = vld [vmem:[%s6172_s20 + $0x120] sm:$0xff]  ;;  %v115_v60 = vld [vmem:[%s6172_s20 + $0x130] sm:$0xff]  ;;  %v118_v61 = vld [vmem:[%s6172_s20 + $0x148] sm:$0xff] }
  0x16   :  { %v120_v62 = vld [vmem:[%s6172_s20 + $0x158] sm:$0xff]  ;;  %v3542_v63 = vpack.c.bf16 %v115_v60, %v113_v59  ;;  %v117_v1 = vld [vmem:[%s6172_s20 + $0x140] sm:$0xff]  ;;  %v119_v2 = vld [vmem:[%s6172_s20 + $0x150] sm:$0xff] }
  0x17   :  { %v3544_v0 = vpack.c.bf16 %v120_v62, %v118_v61  ;;  %v122_v3 = vld [vmem:[%s6172_s20 + $0x168] sm:$0xff]  ;;  %v124_v4 = vld [vmem:[%s6172_s20 + $0x178] sm:$0xff]  ;;  %v177_v5 = vld [vmem:[%s6174_s30] sm:$0xff]  ;;  %v3546_v7 = vpack.c.bf16 %v119_v2, %v117_v1 }
  0x18   :  { %3519 = vmatpush1.bf16.msra.mxu0 %v3518_v26  ;;  %183 = vperm.xlu0 %3904, %v177_v5   ;;  %v179_v6 = vld [vmem:[%s6174_s30 + $0x10] sm:$0xff]  ;;  %v178_v8 = vld [vmem:[%s6174_s30 + $0x8] sm:$0xff]  ;;  %v3548_v9 = vpack.c.bf16 %v124_v4, %v122_v3  ;;  %v121_v10 = vld [vmem:[%s6172_s20 + $0x160] sm:$0xff] }
  0x19   :  { %3521 = vmatprep.subr.bf16.mxu0 %v3520_v27  ;;  %193 = vperm.xlu1 %3905, %v179_v6   ;;  %v123_v11 = vld [vmem:[%s6172_s20 + $0x170] sm:$0xff]  ;;  %v180_v12 = vld [vmem:[%s6174_s30 + $0x18] sm:$0xff]  ;;  %v126_v13 = vld [vmem:[%s6172_s20 + $0x188] sm:$0xff]  ;;  %s4297_s30 = smov 92  }
  0x1a   :  { %v128_v14 = vld [vmem:[%s6172_s20 + $0x198] sm:$0xff]  ;;  %v3550_v15 = vpack.c.bf16 %v123_v11, %v121_v10  ;;  %v125_v17 = vld [vmem:[%s6172_s20 + $0x180] sm:$0xff]  ;;  %v127_v18 = vld [vmem:[%s6172_s20 + $0x190] sm:$0xff] }
  0x1b   :  { %v3552_v16 = vpack.c.bf16 %v128_v14, %v126_v13  ;;  %v130_v19 = vld [vmem:[%s6172_s20 + $0x1a8] sm:$0xff]  ;;  %v132_v20 = vld [vmem:[%s6172_s20 + $0x1b8] sm:$0xff]  ;;  %v3554_v21 = vpack.c.bf16 %v127_v18, %v125_v17  ;;  %v129_v23 = vld [vmem:[%s6172_s20 + $0x1a0] sm:$0xff] }
  0x1c   :  { %3523 = vmatpush1.bf16.msra.mxu0 %v3522_v32  ;;  %188 = vperm.xlu0 %3904, %v178_v8   ;;  %v3556_v22 = vpack.c.bf16 %v132_v20, %v130_v19  ;;  %v131_v24 = vld [vmem:[%s6172_s20 + $0x1b0] sm:$0xff]  ;;  %v134_v25 = vld [vmem:[%s6172_s20 + $0x1c8] sm:$0xff]  ;;  %v136_v26 = vld [vmem:[%s6172_s20 + $0x1d8] sm:$0xff] }
  0x1d   :  { %3525 = vmatprep.subr.bf16.mxu0 %v3524_v33  ;;  %198 = vperm.xlu1 %3905, %v180_v12   ;;  %v3558_v27 = vpack.c.bf16 %v131_v24, %v129_v23  ;;  %v3560_v28 = vpack.c.bf16 %v136_v26, %v134_v25  ;;  %v133_v29 = vld [vmem:[%s6172_s20 + $0x1c0] sm:$0xff]  ;;  %v135_v30 = vld [vmem:[%s6172_s20 + $0x1d0] sm:$0xff]  ;;  %v138_v31 = vld [vmem:[%s6172_s20 + $0x1e8] sm:$0xff] }
  0x1e   :  { %v140_v32 = vld [vmem:[%s6172_s20 + $0x1f8] sm:$0xff]  ;;  %v3562_v33 = vpack.c.bf16 %v135_v30, %v133_v29  ;;  %v137_v35 = vld [vmem:[%s6172_s20 + $0x1e0] sm:$0xff]  ;;  %v139_v36 = vld [vmem:[%s6172_s20 + $0x1f0] sm:$0xff] }
  0x1f   :  { %v3564_v34 = vpack.c.bf16 %v140_v32, %v138_v31  ;;  %v142_v37 = vld [vmem:[%s6172_s20 + $0x208] sm:$0xff]  ;;  %v141_v41 = vld [vmem:[%s6172_s20 + $0x200] sm:$0xff]  ;;  %v143_v42 = vld [vmem:[%s6172_s20 + $0x210] sm:$0xff] }
  0x20   :  { %3527 = vmatpush1.bf16.msra.mxu0 %v3526_v38  ;;  %v144_v38 = vld [vmem:[%s6172_s20 + $0x218] sm:$0xff]  ;;  %v146_v43 = vld [vmem:[%s6172_s20 + $0x228] sm:$0xff]  ;;  %v145_v48 = vld [vmem:[%s6172_s20 + $0x220] sm:$0xff] }
  0x21   :  { %3529 = vmatprep.subr.bf16.mxu0 %v3528_v39  ;;  %v3566_v39 = vpack.c.bf16 %v139_v36, %v137_v35  ;;  %v3568_v40 = vpack.c.bf16 %v144_v38, %v142_v37  ;;  %v148_v44 = vld [vmem:[%s6172_s20 + $0x238] sm:$0xff]  ;;  %v147_v49 = vld [vmem:[%s6172_s20 + $0x230] sm:$0xff]  ;;  %v66_v50 = vld [vmem:[%s6173_s21 + $0x28] sm:$0xff] }
  0x22   :  { %v3572_v47 = vpack.c.bf16 %v148_v44, %v146_v43  ;;  %v3574_v53 = vpack.c.bf16 %v147_v49, %v145_v48  ;;  %v65_v54 = vld [vmem:[%s6173_s21 + $0x20] sm:$0xff]  ;;  %v154_v59 = vld [vmem:[%s6172_s20 + $0x268] sm:$0xff]  ;;  %v156_v60 = vld [vmem:[%s6172_s20 + $0x278] sm:$0xff] }
  0x23   :  { %v149_v56 = vld [vmem:[%s6172_s20 + $0x240] sm:$0xff]  ;;  %v155_v1 = vld [vmem:[%s6172_s20 + $0x270] sm:$0xff]  ;;  %v74_v2 = vld [vmem:[%s6173_s21 + $0x68] sm:$0xff] }
  0x24   :  { %3531 = vmatpush1.bf16.msra.mxu0 %v3530_v45  ;;  %v61_v45 = vld [vmem:[%s6173_s21] sm:$0xff]  ;;  %v158_v3 = vld [vmem:[%s6172_s20 + $0x288] sm:$0xff]  ;;  %v160_v4 = vld [vmem:[%s6172_s20 + $0x298] sm:$0xff] }
  0x25   :  { %3533 = vmatprep.subr.bf16.mxu0 %v3532_v46  ;;  %v3570_v46 = vpack.c.bf16 %v143_v42, %v141_v41  ;;  %v69_v62 = vld [vmem:[%s6173_s21 + $0x40] sm:$0xff]  ;;  %v64_v10 = vld [vmem:[%s6173_s21 + $0x18] sm:$0xff]  ;;  %v162_v11 = vld [vmem:[%s6172_s20 + $0x2a8] sm:$0xff] }
  0x26   :  { %v73_v6 = vld [vmem:[%s6173_s21 + $0x60] sm:$0xff]  ;;  %v164_v12 = vld [vmem:[%s6172_s20 + $0x2b8] sm:$0xff]  ;;  %v166_v17 = vld [vmem:[%s6172_s20 + $0x2c8] sm:$0xff] }
  0x27   :  { %v157_v8 = vld [vmem:[%s6172_s20 + $0x280] sm:$0xff]  ;;  %v3588_v14 = vpack.c.bf16 %v164_v12, %v162_v11  ;;  %v168_v18 = vld [vmem:[%s6172_s20 + $0x2d8] sm:$0xff]  ;;  %v170_v23 = vld [vmem:[%s6172_s20 + $0x2e8] sm:$0xff] }
  0x28   :  { %3535 = vmatpush1.bf16.msra.mxu0 %v3534_v51  ;;  %v150_v51 = vld [vmem:[%s6172_s20 + $0x248] sm:$0xff]  ;;  %v3592_v20 = vpack.c.bf16 %v168_v18, %v166_v17  ;;  %v172_v24 = vld [vmem:[%s6172_s20 + $0x2f8] sm:$0xff]  ;;  %v63_v36 = vld [vmem:[%s6173_s21 + $0x10] sm:$0xff] }
  0x29   :  { %3537 = vmatprep.subr.bf16.mxu0 %v3536_v52  ;;  %v152_v52 = vld [vmem:[%s6172_s20 + $0x258] sm:$0xff]  ;;  %v3596_v26 = vpack.c.bf16 %v172_v24, %v170_v23  ;;  %v174_v29 = vld [vmem:[%s6172_s20 + $0x308] sm:$0xff]  ;;  %v67_v38 = vld [vmem:[%s6173_s21 + $0x30] sm:$0xff] }
  0x2a   :  { %v3576_v55 = vpack.c.bf16 %v152_v52, %v150_v51  ;;  %v176_v30 = vld [vmem:[%s6172_s20 + $0x318] sm:$0xff]  ;;  %v75_v42 = vld [vmem:[%s6173_s21 + $0x70] sm:$0xff] }
  0x2b   :  { %v3600_v32 = vpack.c.bf16 %v176_v30, %v174_v29  ;;  %v68_v37 = vld [vmem:[%s6173_s21 + $0x38] sm:$0xff] }
  0x2c   :  { %3539 = vmatpush1.bf16.msra.mxu0 %v3538_v57  ;;  %v151_v57 = vld [vmem:[%s6172_s20 + $0x250] sm:$0xff]  ;;  %v76_v41 = vld [vmem:[%s6173_s21 + $0x78] sm:$0xff] }
  0x2d   :  { %3541 = vmatprep.subr.bf16.mxu0 %v3540_v58  ;;  %v70_v58 = vld [vmem:[%s6173_s21 + $0x48] sm:$0xff]  ;;  %v3578_v61 = vpack.c.bf16 %v151_v57, %v149_v56 }
  0x30   :  { %3543 = vmatpush1.bf16.msra.mxu0 %v3542_v63  ;;  %v3580_v63 = vpack.c.bf16 %v156_v60, %v154_v59 }
  0x31   :  { %3545 = vmatprep.subr.bf16.mxu0 %v3544_v0  ;;  %v153_v0 = vld [vmem:[%s6172_s20 + $0x260] sm:$0xff] }
  0x32   :  { %v3582_v5 = vpack.c.bf16 %v155_v1, %v153_v0 }
  0x34   :  { %3547 = vmatpush1.bf16.msra.mxu0 %v3546_v7  ;;  %v3584_v7 = vpack.c.bf16 %v160_v4, %v158_v3 }
  0x35   :  { %3549 = vmatprep.subr.bf16.mxu0 %v3548_v9  ;;  %v159_v9 = vld [vmem:[%s6172_s20 + $0x290] sm:$0xff] }
  0x36   :  { %v3586_v13 = vpack.c.bf16 %v159_v9, %v157_v8 }
  0x38   :  { %3551 = vmatpush1.bf16.msra.mxu0 %v3550_v15  ;;  %v161_v15 = vld [vmem:[%s6172_s20 + $0x2a0] sm:$0xff] }
  0x39   :  { %3553 = vmatprep.subr.bf16.mxu0 %v3552_v16  ;;  %v163_v16 = vld [vmem:[%s6172_s20 + $0x2b0] sm:$0xff] }
  0x3a   :  { %v3590_v19 = vpack.c.bf16 %v163_v16, %v161_v15 }
  0x3c   :  { %3555 = vmatpush1.bf16.msra.mxu0 %v3554_v21  ;;  %v165_v21 = vld [vmem:[%s6172_s20 + $0x2c0] sm:$0xff] }
  0x3d   :  { %3557 = vmatprep.subr.bf16.mxu0 %v3556_v22  ;;  %v167_v22 = vld [vmem:[%s6172_s20 + $0x2d0] sm:$0xff] }
  0x3e   :  { %v3594_v25 = vpack.c.bf16 %v167_v22, %v165_v21 }
  0x40   :  { %3559 = vmatpush1.bf16.msra.mxu0 %v3558_v27  ;;  %v169_v27 = vld [vmem:[%s6172_s20 + $0x2e0] sm:$0xff] }
  0x41   :  { %3561 = vmatprep.subr.bf16.mxu0 %v3560_v28  ;;  %v171_v28 = vld [vmem:[%s6172_s20 + $0x2f0] sm:$0xff] }
  0x42   :  { %v3598_v31 = vpack.c.bf16 %v171_v28, %v169_v27 }
  0x44   :  { %3563 = vmatpush1.bf16.msra.mxu0 %v3562_v33  ;;  %v173_v33 = vld [vmem:[%s6172_s20 + $0x300] sm:$0xff] }
  0x45   :  { %3565 = vmatprep.subr.bf16.mxu0 %v3564_v34  ;;  %v175_v34 = vld [vmem:[%s6172_s20 + $0x310] sm:$0xff] }
  0x46   :  { %v3602_v35 = vpack.c.bf16 %v175_v34, %v173_v33  ;;  %v481_v33 = vld [vmem:[%s6175_s25 + $0x8] sm:$0xff]  ;;  %v476_v34 = vld [vmem:[%s6146_s4] sm:$0xff] }
  0x48   :  { %3567 = vmatpush1.bf16.msra.mxu0 %v3566_v39  ;;  %v72_v39 = vld [vmem:[%s6173_s21 + $0x58] sm:$0xff] }
  0x49   :  { %3569 = vmatprep.subr.bf16.mxu0 %v3568_v40  ;;  %v71_v40 = vld [vmem:[%s6173_s21 + $0x50] sm:$0xff]  ;;  %s4284_s21 = smov 126  }
  0x4b   :  { %279 = vmatmul.mubr.f32.vlgmr.msra.gmra.mrb[0].mxu0 %v61_v45 }
  0x4c   :  { %3571 = vmatpush1.bf16.msra.mxu0 %v3570_v46  ;;  %284 = vmatprep.mubr.f32.mxu0 %v66_v50 }
  0x4d   :  { %3573 = vmatprep.subr.bf16.mxu0 %v3572_v47 }
  0x4f   :  { %285 = vmatmul.mubr.f32.gmra.mrb[2].mxu0 %v65_v54 }
  0x50   :  { %3575 = vmatpush1.bf16.msra.mxu0 %v3574_v53  ;;  %290 = vmatprep.mubr.f32.mxu0 %v70_v58 }
  0x51   :  { %3577 = vmatprep.subr.bf16.mxu0 %v3576_v55 }
  0x53   :  { %291 = vmatmul.mubr.f32.gmra.mrb[4].mxu0 %v69_v62 }
  0x54   :  { %3579 = vmatpush1.bf16.msra.mxu0 %v3578_v61  ;;  %296 = vmatprep.mubr.f32.mxu0 %v74_v2 }
  0x55   :  { %3581 = vmatprep.subr.bf16.mxu0 %v3580_v63 }
  0x57   :  { %297 = vmatmul.mubr.f32.gmra.mrb[6].mxu0 %v73_v6 }
  0x58   :  { %3583 = vmatpush1.bf16.msra.mxu0 %v3582_v5  ;;  %2934 = vmatprep.mubr.msk.f32.mxu0 %vm201_vm0, %v64_v10 }
  0x59   :  { %3585 = vmatprep.subr.bf16.mxu0 %v3584_v7 }
  0x5c   :  { %3587 = vmatpush1.bf16.msra.mxu0 %v3586_v13 }
  0x5d   :  { %3589 = vmatprep.subr.bf16.mxu0 %v3588_v14 }
  0x60   :  { %3591 = vmatpush1.bf16.msra.mxu0 %v3590_v19 }
  0x61   :  { %3593 = vmatprep.subr.bf16.mxu0 %v3592_v20 }
  0x64   :  { %3595 = vmatpush1.bf16.msra.mxu0 %v3594_v25 }
  0x65   :  { %3597 = vmatprep.subr.bf16.mxu0 %v3596_v26 }
  0x68   :  { %3599 = vmatpush1.bf16.msra.mxu0 %v3598_v31  ;;  %v480_v31 = vld [vmem:[%s6175_s25] sm:$0xff] }
  0x69   :  { %3601 = vmatprep.subr.bf16.mxu0 %v3600_v32  ;;  %v482_v32 = vld [vmem:[%s6175_s25 + $0x10] sm:$0xff] }
  0x6c   :  { %3603 = vmatpush1.bf16.msra.mxu0 %v3602_v35  ;;  %v483_v35 = vld [vmem:[%s6175_s25 + $0x18] sm:$0xff]  ;;  %s4298_s25 = smov 102  }
  0x6f   :  { %368 = vmatmul.mubr.f32.vlgmr.msra.gmra.mrb[0].mxu0 %v63_v36 }
  0x70   :  { %2935 = vmatprep.mubr.msk.f32.mxu0 %vm201_vm0, %v68_v37 }
  0x73   :  { %374 = vmatmul.mubr.f32.gmra.mrb[2].mxu0 %v67_v38 }
  0x74   :  { %2936 = vmatprep.mubr.msk.f32.mxu0 %vm201_vm0, %v72_v39 }
  0x77   :  { %380 = vmatmul.mubr.f32.gmra.mrb[4].mxu0 %v71_v40 }
  0x78   :  { %2937 = vmatprep.mubr.msk.f32.mxu0 %vm201_vm0, %v76_v41 }
  0x7b   :  { %386 = vmatmul.mubr.f32.gmra.mrb[6].mxu0 %v75_v42 }
  0x7c   :  { %3295 = vmatprep.mubr.f32.mxu0 %v476_v34  ;;  %v855_v34 = vld [vmem:[%s6148_s7 + $0x70] sm:$0xff] }
  0x97   :  { %v184_v43 = vpop.permute.xlu0 %183 }
  0x98   :  { %v194_v52 = vpop.permute.xlu1 %193 }
  0x9b   :  { %v189_v46 = vpop.permute.xlu0 %188 }
  0x9c   :  { %v199_v58 = vpop.permute.xlu1 %198 }
 0x142   :  { %v369_v44 = vpop.f32.mrb[0].mxu0 }
 0x143   :  { %v371_v45 = vpop.f32.mrb[1].mxu0  ;;  %v3868_v48 = vadd.f32 %v369_v44, %v184_v43 }
 0x144   :  { %v3869_v51 = vadd.f32 %v371_v45, %v184_v43 }
 0x146   :  { %v375_v47 = vpop.f32.mrb[2].mxu0 }
 0x147   :  { %v3870_v49 = vadd.f32 %v375_v47, %v189_v46  ;;  %v377_v50 = vpop.f32.mrb[3].mxu0 }
 0x148   :  { %v3871_v53 = vadd.f32 %v377_v50, %v189_v46 }
 0x149   :  { %v3906_v54 = vpack.i.bf16 %v3870_v49, %v3868_v48 }
 0x14a   :  { %v3911_v55 = vpack.i.bf16 %v3871_v53, %v3869_v51  ;;  %v381_v56 = vpop.f32.mrb[4].mxu0 }
 0x14b   :  { %v383_v57 = vpop.f32.mrb[5].mxu0  ;;  %3907 = vrot.lane.b32.xlu0 %v3906_v54, %s4283_s22  ;;  %v3872_v60 = vadd.f32 %v381_v56, %v194_v52 }
 0x14c   :  { %3912 = vrot.lane.b32.xlu1 %v3911_v55, %s4283_s22  ;;  %v3873_v63 = vadd.f32 %v383_v57, %v194_v52 }
 0x14e   :  { %v387_v59 = vpop.f32.mrb[6].mxu0 }
 0x14f   :  { %v3874_v61 = vadd.f32 %v387_v59, %v199_v58  ;;  %v389_v62 = vpop.f32.mrb[7].mxu0 }
 0x150   :  { %v3875_v0 = vadd.f32 %v389_v62, %v199_v58  ;;  %v479_v62 = vld [vmem:[%s6146_s4 + $0x18] sm:$0xff] }
 0x151   :  { %v3916_v1 = vpack.i.bf16 %v3874_v61, %v3872_v60 }
 0x152   :  { %v3921_v2 = vpack.i.bf16 %v3875_v0, %v3873_v63 }
 0x153   :  { %3917 = vrot.lane.b32.xlu0 %v3916_v1, %s4283_s22 }
 0x154   :  { %3922 = vrot.lane.b32.xlu1 %v3921_v2, %s4283_s22  ;;  %s4295_s22 = smov 94  }
 0x1bd   :  { %v3908_v3 = vpop.permute.xlu0 %3907 }
 0x1be   :  { %v3910_v4 = vunpack.i.h.bf16 %v3908_v3  ;;  %v3909_v5 = vunpack.i.l.bf16 %v3908_v3  ;;  %v3913_v6 = vpop.permute.xlu1 %3912 }
 0x1bf   :  { %v3915_v7 = vunpack.i.h.bf16 %v3913_v6  ;;  %v3914_v8 = vunpack.i.l.bf16 %v3913_v6 }
 0x1c0   :  { %v409_v9 = vmax.f32 %v3870_v49, %v3910_v4  ;;  %v408_v10 = vmax.f32 %v3868_v48, %v3909_v5 }
 0x1c1   :  { %v429_v11 = vmax.f32 %v3871_v53, %v3915_v7  ;;  %v428_v12 = vmax.f32 %v3869_v51, %v3914_v8 }
 0x1c3   :  { %v432_v13 = vmax.f32 %v408_v10, %v428_v12  ;;  %v433_v14 = vmax.f32 %v409_v9, %v429_v11 }
 0x1c5   :  { %v3918_v15 = vpop.permute.xlu0 %3917  ;;  %v3926_v16 = vpack.i.bf16 %v433_v14, %v432_v13  ;;  %v3604_v17 = vpack.c.bf16 %v433_v14, %v432_v13 }
 0x1c6   :  { %v3920_v18 = vunpack.i.h.bf16 %v3918_v15  ;;  %v3919_v19 = vunpack.i.l.bf16 %v3918_v15  ;;  %v3923_v20 = vpop.permute.xlu1 %3922 }
 0x1c7   :  { %v3925_v21 = vunpack.i.h.bf16 %v3923_v20  ;;  %v3924_v22 = vunpack.i.l.bf16 %v3923_v20  ;;  %3927 = vrot.lane.b32.xlu0 %v3926_v16, %s4284_s21  ;;  %3605 = vmatprep.subr.bf16.mxu0 %v3604_v17  ;;  %v841_v20 = vld [vmem:[%s6148_s7] sm:$0xff] }
 0x1c8   :  { %v411_v23 = vmax.f32 %v3874_v61, %v3920_v18  ;;  %v410_v24 = vmax.f32 %v3872_v60, %v3919_v19  ;;  %3607 = vmatpush3.bf16.msra.mxu0 %v3604_v17  ;;  %v477_v60 = vld [vmem:[%s6146_s4 + $0x8] sm:$0xff]  ;;  %v478_v61 = vld [vmem:[%s6146_s4 + $0x10] sm:$0xff]  ;;  %s4287_s4 = smov 114  }
 0x1c9   :  { %v431_v25 = vmax.f32 %v3875_v0, %v3925_v21  ;;  %v430_v26 = vmax.f32 %v3873_v63, %v3924_v22  ;;  %v778_v19 = vld [vmem:[%s6147_s6 + $0x8] sm:$0xff]  ;;  %v843_v22 = vld [vmem:[%s6148_s7 + $0x10] sm:$0xff] }
 0x1ca   :  { %1001 = vmatprep.mubr.f32.mxu1 %v778_v19  ;;  %v842_v21 = vld [vmem:[%s6148_s7 + $0x8] sm:$0xff] }
 0x1cb   :  { %v434_v27 = vmax.f32 %v410_v24, %v430_v26  ;;  %v435_v28 = vmax.f32 %v411_v23, %v431_v25  ;;  %3937 = vrot.lane.b32.xlu0 %v3926_v16, %s4285_s3  ;;  %v844_v23 = vld [vmem:[%s6148_s7 + $0x18] sm:$0xff]  ;;  %v845_v24 = vld [vmem:[%s6148_s7 + $0x20] sm:$0xff]  ;;  %v846_v25 = vld [vmem:[%s6148_s7 + $0x28] sm:$0xff] }
 0x1cc   :  { %v847_v26 = vld [vmem:[%s6148_s7 + $0x30] sm:$0xff] }
 0x1cd   :  { %v3931_v29 = vpack.i.bf16 %v435_v28, %v434_v27  ;;  %v3608_v30 = vpack.c.bf16 %v435_v28, %v434_v27  ;;  %v848_v27 = vld [vmem:[%s6148_s7 + $0x38] sm:$0xff]  ;;  %v849_v28 = vld [vmem:[%s6148_s7 + $0x40] sm:$0xff] }
 0x1cf   :  { %3932 = vrot.lane.b32.xlu1 %v3931_v29, %s4284_s21  ;;  %3947 = vrot.lane.b32.xlu0 %v3926_v16, %s4286_s23 }
 0x1d0   :  { %3609 = vmatprep.subr.bf16.mxu0 %v3608_v30 }
 0x1d1   :  { %3611 = vmatpush3.bf16.msra.mxu0 %v3608_v30  ;;  %v851_v30 = vld [vmem:[%s6148_s7 + $0x50] sm:$0xff] }
 0x1d3   :  { %3942 = vrot.lane.b32.xlu1 %v3931_v29, %s4285_s3  ;;  %486 = vperm.xlu0 %3904, %v480_v31   ;;  %v852_v31 = vld [vmem:[%s6148_s7 + $0x58] sm:$0xff] }
 0x1d7   :  { %3952 = vrot.lane.b32.xlu1 %v3931_v29, %s4286_s23  ;;  %496 = vperm.xlu0 %3904, %v482_v32   ;;  %v850_v29 = vld [vmem:[%s6148_s7 + $0x48] sm:$0xff]  ;;  %v853_v32 = vld [vmem:[%s6148_s7 + $0x60] sm:$0xff] }
 0x1db   :  { %491 = vperm.xlu1 %3905, %v481_v33   ;;  %v854_v33 = vld [vmem:[%s6148_s7 + $0x68] sm:$0xff] }
 0x1df   :  { %501 = vperm.xlu1 %3905, %v483_v35   ;;  %v856_v35 = vld [vmem:[%s6148_s7 + $0x78] sm:$0xff] }
 0x239   :  { %v3928_v36 = vpop.permute.xlu0 %3927 }
 0x23a   :  { %v3930_v37 = vunpack.i.h.bf16 %v3928_v36  ;;  %v3929_v38 = vunpack.i.l.bf16 %v3928_v36  ;;  %v1259_v36 = vld [vmem:[%s6149_s9] sm:$0xff] }
 0x23c   :  { %v3612_v39 = vpack.c.bf16 %v3930_v37, %v3929_v38  ;;  %v1260_v37 = vld [vmem:[%s6149_s9 + $0x8] sm:$0xff]  ;;  %v1261_v38 = vld [vmem:[%s6149_s9 + $0x10] sm:$0xff] }
 0x23d   :  { %v3938_v40 = vpop.permute.xlu0 %3937 }
 0x23e   :  { %3613 = vmatprep.subr.bf16.mxu0 %v3612_v39  ;;  %v3940_v42 = vunpack.i.h.bf16 %v3938_v40  ;;  %v3939_v43 = vunpack.i.l.bf16 %v3938_v40  ;;  %v1263_v40 = vld [vmem:[%s6149_s9 + $0x20] sm:$0xff] }
 0x23f   :  { %3615 = vmatpush3.bf16.msra.mxu0 %v3612_v39  ;;  %v1262_v39 = vld [vmem:[%s6149_s9 + $0x18] sm:$0xff] }
 0x240   :  { %v3620_v50 = vpack.c.bf16 %v3940_v42, %v3939_v43  ;;  %v1265_v42 = vld [vmem:[%s6149_s9 + $0x30] sm:$0xff]  ;;  %v1266_v43 = vld [vmem:[%s6149_s9 + $0x38] sm:$0xff] }
 0x241   :  { %v3933_v41 = vpop.permute.xlu1 %3932  ;;  %v3948_v51 = vpop.permute.xlu0 %3947 }
 0x242   :  { %v3935_v44 = vunpack.i.h.bf16 %v3933_v41  ;;  %v3934_v45 = vunpack.i.l.bf16 %v3933_v41  ;;  %v3950_v52 = vunpack.i.h.bf16 %v3948_v51  ;;  %v3949_v53 = vunpack.i.l.bf16 %v3948_v51  ;;  %v1264_v41 = vld [vmem:[%s6149_s9 + $0x28] sm:$0xff] }
 0x244   :  { %v3616_v46 = vpack.c.bf16 %v3935_v44, %v3934_v45  ;;  %v3628_v58 = vpack.c.bf16 %v3950_v52, %v3949_v53  ;;  %v1267_v44 = vld [vmem:[%s6149_s9 + $0x40] sm:$0xff]  ;;  %v1268_v45 = vld [vmem:[%s6149_s9 + $0x48] sm:$0xff] }
 0x245   :  { %v3943_v47 = vpop.permute.xlu1 %3942  ;;  %v1272_v53 = vld [vmem:[%s6149_s9 + $0x68] sm:$0xff] }
 0x246   :  { %v3945_v48 = vunpack.i.h.bf16 %v3943_v47  ;;  %v3944_v49 = vunpack.i.l.bf16 %v3943_v47  ;;  %3617 = vmatprep.subr.bf16.mxu0 %v3616_v46  ;;  %v1270_v47 = vld [vmem:[%s6149_s9 + $0x58] sm:$0xff] }
 0x247   :  { %3619 = vmatpush3.bf16.msra.mxu0 %v3616_v46  ;;  %v1269_v46 = vld [vmem:[%s6149_s9 + $0x50] sm:$0xff] }
 0x248   :  { %3621 = vmatprep.subr.bf16.mxu0 %v3620_v50  ;;  %v3624_v54 = vpack.c.bf16 %v3945_v48, %v3944_v49  ;;  %v1271_v48 = vld [vmem:[%s6149_s9 + $0x60] sm:$0xff] }
 0x249   :  { %v3953_v55 = vpop.permute.xlu1 %3952 }
 0x24a   :  { %v3955_v56 = vunpack.i.h.bf16 %v3953_v55  ;;  %v3954_v57 = vunpack.i.l.bf16 %v3953_v55 }
 0x24b   :  { %3623 = vmatpush3.bf16.msra.mxu0 %v3620_v50 }
 0x24c   :  { %3625 = vmatprep.subr.bf16.mxu0 %v3624_v54  ;;  %v3632_v59 = vpack.c.bf16 %v3955_v56, %v3954_v57 }
 0x24f   :  { %3627 = vmatpush3.bf16.msra.mxu0 %v3624_v54  ;;  %v1273_v54 = vld [vmem:[%s6149_s9 + $0x70] sm:$0xff] }
 0x250   :  { %3629 = vmatprep.subr.bf16.mxu0 %v3628_v58 }
 0x252   :  { %v487_v0 = vpop.permute.xlu0 %486 }
 0x253   :  { %3631 = vmatpush3.bf16.msra.mxu0 %v3628_v58 }
 0x254   :  { %3633 = vmatprep.subr.bf16.mxu0 %v3632_v59 }
 0x256   :  { %v497_v9 = vpop.permute.xlu0 %496 }
 0x257   :  { %3635 = vmatpush3.bf16.msra.mxu0 %v3632_v59 }
 0x25a   :  { %3296 = vmatmul.mubr.f32.vlgmr.msra.gmra.mrb[8].mxu0 %v477_v60  ;;  %v492_v63 = vpop.permute.xlu1 %491 }
 0x25b   :  { %3298 = vmatprep.mubr.f32.mxu0 %v478_v61 }
 0x25e   :  { %3299 = vmatmul.mubr.f32.gmra.mrb[10].mxu0 %v479_v62  ;;  %v502_v6 = vpop.permute.xlu1 %501  ;;  %v1274_v62 = vld [vmem:[%s6149_s9 + $0x78] sm:$0xff] }
 0x32d   :  { %v3297_v1 = vpop.f32.mrb[8].mxu0 }
 0x32e   :  { %v576_v2 = vadd.f32 %v3297_v1, %v492_v63  ;;  %v570_v3 = vpop.f32.mrb[9].mxu0  ;;  %v1596_v63 = vld [vmem:[%s6150_s11] sm:$0xff] }
 0x32f   :  { %v571_v4 = vadd.f32 %v570_v3, %v487_v0 }
 0x330   :  { %v590_v5 = vmax.f32 %v576_v2, 0.0 }
 0x331   :  { %v589_v7 = vmax.f32 %v571_v4, 0.0  ;;  %v3300_v8 = vpop.f32.mrb[10].mxu0 }
 0x332   :  { %v586_v10 = vadd.f32 %v3300_v8, %v502_v6  ;;  %v580_v11 = vpop.f32.mrb[11].mxu0  ;;  %v1598_v8 = vld [vmem:[%s6150_s11 + $0x10] sm:$0xff] }
 0x333   :  { %v581_v12 = vadd.f32 %v580_v11, %v497_v9  ;;  %v3956_v13 = vpack.i.bf16 %v590_v5, %v589_v7  ;;  %v4799_v17 = vpack.c.bf16 %v590_v5, %v589_v7  ;;  %v1597_v7 = vld [vmem:[%s6150_s11 + $0x8] sm:$0xff] }
 0x334   :  { %v592_v14 = vmax.f32 %v586_v10, 0.0 }
 0x335   :  { %v591_v15 = vmax.f32 %v581_v12, 0.0  ;;  %3957 = vrot.lane.b32.xlu0 %v3956_v13, %s4285_s3 }
 0x337   :  { %v3961_v16 = vpack.i.bf16 %v592_v14, %v591_v15  ;;  %v4801_v18 = vpack.c.bf16 %v592_v14, %v591_v15 }
 0x339   :  { %3962 = vrot.lane.b32.xlu1 %v3961_v16, %s4285_s3  ;;  %3967 = vrot.lane.b32.xlu0 %v3956_v13, %s4286_s23 }
 0x33d   :  { %3972 = vrot.lane.b32.xlu1 %v3956_v13, %s4284_s21  ;;  %3977 = vrot.lane.b32.xlu0 %v3961_v16, %s4286_s23  ;;  %s4291_s23 = smov 98  }
 0x341   :  { %3987 = vrot.lane.b32.xlu1 %v3961_v16, %s4284_s21  ;;  %3982 = vrot.lane.b32.xlu0 %v3956_v13, %s4287_s4  ;;  %s4292_s21 = smov 108  }
 0x345   :  { %3992 = vrot.lane.b32.xlu1 %v3956_v13, %s4288_s26  ;;  %3997 = vrot.lane.b32.xlu0 %v3961_v16, %s4287_s4 }
 0x349   :  { %4007 = vrot.lane.b32.xlu1 %v3961_v16, %s4288_s26  ;;  %4002 = vrot.lane.b32.xlu0 %v3956_v13, %s4289_s27 }
 0x34d   :  { %4012 = vrot.lane.b32.xlu1 %v3956_v13, %s4290_s29  ;;  %4017 = vrot.lane.b32.xlu0 %v3961_v16, %s4289_s27 }
 0x351   :  { %4022 = vrot.lane.b32.xlu1 %v3961_v16, %s4290_s29  ;;  %4027 = vrot.lane.b32.xlu0 %v3956_v13, %s4291_s23 }
 0x355   :  { %4032 = vrot.lane.b32.xlu1 %v3956_v13, %s4292_s21  ;;  %4037 = vrot.lane.b32.xlu0 %v3961_v16, %s4291_s23 }
 0x359   :  { %4047 = vrot.lane.b32.xlu1 %v3961_v16, %s4292_s21  ;;  %4042 = vrot.lane.b32.xlu0 %v3956_v13, %s4293_s0 }
 0x35d   :  { %4052 = vrot.lane.b32.xlu1 %v3956_v13, %s4294_s2  ;;  %4057 = vrot.lane.b32.xlu0 %v3961_v16, %s4293_s0 }
 0x361   :  { %4067 = vrot.lane.b32.xlu1 %v3961_v16, %s4294_s2  ;;  %4062 = vrot.lane.b32.xlu0 %v3956_v13, %s4295_s22 }
 0x365   :  { %4072 = vrot.lane.b32.xlu1 %v3956_v13, %s4296_s24  ;;  %4077 = vrot.lane.b32.xlu0 %v3961_v16, %s4295_s22 }
 0x369   :  { %4087 = vrot.lane.b32.xlu1 %v3961_v16, %s4296_s24  ;;  %4082 = vrot.lane.b32.xlu0 %v3956_v13, %s4297_s30 }
 0x36d   :  { %4092 = vrot.lane.b32.xlu1 %v3956_v13, %s4298_s25  ;;  %4097 = vrot.lane.b32.xlu0 %v3961_v16, %s4297_s30 }
 0x371   :  { %4102 = vrot.lane.b32.xlu1 %v3961_v16, %s4298_s25  ;;  %859 = vperm.xlu0 %3904, %v841_v20  }
 0x375   :  { %864 = vperm.xlu1 %3905, %v842_v21   ;;  %869 = vperm.xlu0 %3904, %v843_v22  }
 0x379   :  { %874 = vperm.xlu1 %3905, %v844_v23   ;;  %879 = vperm.xlu0 %3904, %v845_v24  }
 0x37d   :  { %884 = vperm.xlu1 %3905, %v846_v25   ;;  %889 = vperm.xlu0 %3904, %v847_v26  }
 0x381   :  { %894 = vperm.xlu1 %3905, %v848_v27   ;;  %899 = vperm.xlu0 %3904, %v849_v28   ;;  %v1601_v27 = vld [vmem:[%s6150_s11 + $0x28] sm:$0xff]  ;;  %v1602_v28 = vld [vmem:[%s6150_s11 + $0x30] sm:$0xff] }
 0x385   :  { %904 = vperm.xlu1 %3905, %v850_v29   ;;  %909 = vperm.xlu0 %3904, %v851_v30  }
 0x389   :  { %914 = vperm.xlu1 %3905, %v852_v31   ;;  %919 = vperm.xlu0 %3904, %v853_v32  }
 0x38d   :  { %924 = vperm.xlu1 %3905, %v854_v33   ;;  %929 = vperm.xlu0 %3904, %v855_v34  }
 0x391   :  { %934 = vperm.xlu1 %3905, %v856_v35   ;;  %1277 = vperm.xlu0 %3904, %v1259_v36  }
 0x395   :  { %1282 = vperm.xlu1 %3905, %v1260_v37   ;;  %1287 = vperm.xlu0 %3904, %v1261_v38   ;;  %v1603_v37 = vld [vmem:[%s6150_s11 + $0x38] sm:$0xff]  ;;  %v1612_v38 = vld [vmem:[%s6150_s11 + $0x80] sm:$0xff] }
 0x399   :  { %1292 = vperm.xlu1 %3905, %v1262_v39   ;;  %1297 = vperm.xlu0 %3904, %v1263_v40  }
 0x39d   :  { %1302 = vperm.xlu1 %3905, %v1264_v41   ;;  %1307 = vperm.xlu0 %3904, %v1265_v42  }
 0x3a1   :  { %1312 = vperm.xlu1 %3905, %v1266_v43   ;;  %1317 = vperm.xlu0 %3904, %v1267_v44  }
 0x3a5   :  { %1322 = vperm.xlu1 %3905, %v1268_v45   ;;  %1327 = vperm.xlu0 %3904, %v1269_v46  }
 0x3a7   :  { %v3958_v49 = vpop.permute.xlu0 %3957 }
 0x3a8   :  { %v3960_v50 = vunpack.i.h.bf16 %v3958_v49  ;;  %v3959_v51 = vunpack.i.l.bf16 %v3958_v49 }
 0x3a9   :  { %1332 = vperm.xlu1 %3905, %v1270_v47   ;;  %1337 = vperm.xlu0 %3904, %v1271_v48   ;;  %v1613_v47 = vld [vmem:[%s6150_s11 + $0x88] sm:$0xff]  ;;  %v1604_v48 = vld [vmem:[%s6150_s11 + $0x40] sm:$0xff] }
 0x3aa   :  { %v3636_v52 = vpack.c.bf16 %v3960_v50, %v3959_v51 }
 0x3ab   :  { %v3963_v55 = vpop.permute.xlu1 %3962  ;;  %v3968_v56 = vpop.permute.xlu0 %3967 }
 0x3ac   :  { %v3965_v57 = vunpack.i.h.bf16 %v3963_v55  ;;  %v3964_v58 = vunpack.i.l.bf16 %v3963_v55  ;;  %3637 = vmatprep.subr.bf16.mxu1 %v3636_v52  ;;  %v3970_v59 = vunpack.i.h.bf16 %v3968_v56  ;;  %v3969_v60 = vunpack.i.l.bf16 %v3968_v56 }
 0x3ad   :  { %1342 = vperm.xlu1 %3905, %v1272_v53   ;;  %1347 = vperm.xlu0 %3904, %v1273_v54  }
 0x3ae   :  { %3639 = vmatpush3.bf16.msra.mxu1 %v4799_v17  ;;  %v3640_v61 = vpack.c.bf16 %v3965_v57, %v3964_v58  ;;  %v3644_v6 = vpack.c.bf16 %v3970_v59, %v3969_v60  ;;  %v1599_v17 = vld [vmem:[%s6150_s11 + $0x18] sm:$0xff]  ;;  %v1605_v57 = vld [vmem:[%s6150_s11 + $0x48] sm:$0xff]  ;;  %v1614_v58 = vld [vmem:[%s6150_s11 + $0x90] sm:$0xff] }
 0x3af   :  { %v3973_v0 = vpop.permute.xlu1 %3972  ;;  %v3978_v1 = vpop.permute.xlu0 %3977 }
 0x3b0   :  { %v3975_v2 = vunpack.i.h.bf16 %v3973_v0  ;;  %v3974_v3 = vunpack.i.l.bf16 %v3973_v0  ;;  %3641 = vmatprep.subr.bf16.mxu1 %v3640_v61  ;;  %v3980_v4 = vunpack.i.h.bf16 %v3978_v1  ;;  %v3979_v5 = vunpack.i.l.bf16 %v3978_v1 }
 0x3b1   :  { %1352 = vperm.xlu1 %3905, %v1274_v62   ;;  %1630 = vperm.xlu0 %3904, %v1596_v63  }
 0x3b2   :  { %3643 = vmatpush3.bf16.msra.mxu1 %v4801_v18  ;;  %v3646_v9 = vpack.c.bf16 %v3975_v2, %v3974_v3  ;;  %v3648_v16 = vpack.c.bf16 %v3980_v4, %v3979_v5  ;;  %v1600_v18 = vld [vmem:[%s6150_s11 + $0x20] sm:$0xff]  ;;  %v1615_v5 = vld [vmem:[%s6150_s11 + $0x98] sm:$0xff] }
 0x3b3   :  { %3645 = vmatprep.subr.bf16.mxu1 %v3644_v6  ;;  %v3988_v10 = vpop.permute.xlu1 %3987  ;;  %v3983_v11 = vpop.permute.xlu0 %3982  ;;  %v777_v4 = vld [vmem:[%s6147_s6] sm:$0xff] }
 0x3b4   :  { %v3990_v12 = vunpack.i.h.bf16 %v3988_v10  ;;  %v3989_v13 = vunpack.i.l.bf16 %v3988_v10  ;;  %v3985_v14 = vunpack.i.h.bf16 %v3983_v11  ;;  %v3984_v15 = vunpack.i.l.bf16 %v3983_v11  ;;  %v782_v11 = vld [vmem:[%s6147_s6 + $0x28] sm:$0xff] }
 0x3b5   :  { %1635 = vperm.xlu1 %3905, %v1597_v7   ;;  %1640 = vperm.xlu0 %3904, %v1598_v8   ;;  %v1606_v8 = vld [vmem:[%s6150_s11 + $0x50] sm:$0xff] }
 0x3b6   :  { %3647 = vmatpush3.bf16.msra.mxu1 %v3646_v9  ;;  %v3650_v19 = vpack.c.bf16 %v3990_v12, %v3989_v13  ;;  %v3652_v26 = vpack.c.bf16 %v3985_v14, %v3984_v15 }
 0x3b7   :  { %3649 = vmatprep.subr.bf16.mxu1 %v3648_v16  ;;  %v3993_v20 = vpop.permute.xlu1 %3992  ;;  %v3998_v21 = vpop.permute.xlu0 %3997  ;;  %v781_v16 = vld [vmem:[%s6147_s6 + $0x20] sm:$0xff] }
 0x3b8   :  { %v3995_v22 = vunpack.i.h.bf16 %v3993_v20  ;;  %v3994_v23 = vunpack.i.l.bf16 %v3993_v20  ;;  %v4000_v24 = vunpack.i.h.bf16 %v3998_v21  ;;  %v3999_v25 = vunpack.i.l.bf16 %v3998_v21  ;;  %v1616_v20 = vld [vmem:[%s6150_s11 + $0xa0] sm:$0xff] }
 0x3b9   :  { %1645 = vperm.xlu1 %3905, %v1599_v17   ;;  %1650 = vperm.xlu0 %3904, %v1600_v18   ;;  %v1607_v17 = vld [vmem:[%s6150_s11 + $0x58] sm:$0xff] }
 0x3ba   :  { %3651 = vmatpush3.bf16.msra.mxu1 %v3650_v19  ;;  %v3654_v29 = vpack.c.bf16 %v3995_v22, %v3994_v23  ;;  %v3656_v36 = vpack.c.bf16 %v4000_v24, %v3999_v25  ;;  %v786_v23 = vld [vmem:[%s6147_s6 + $0x48] sm:$0xff] }
 0x3bb   :  { %3653 = vmatprep.subr.bf16.mxu1 %v3652_v26  ;;  %v4008_v30 = vpop.permute.xlu1 %4007  ;;  %v4003_v31 = vpop.permute.xlu0 %4002 }
 0x3bc   :  { %v4010_v32 = vunpack.i.h.bf16 %v4008_v30  ;;  %v4009_v33 = vunpack.i.l.bf16 %v4008_v30  ;;  %v4005_v34 = vunpack.i.h.bf16 %v4003_v31  ;;  %v4004_v35 = vunpack.i.l.bf16 %v4003_v31 }
 0x3bd   :  { %1655 = vperm.xlu1 %3905, %v1601_v27   ;;  %1660 = vperm.xlu0 %3904, %v1602_v28   ;;  %v785_v28 = vld [vmem:[%s6147_s6 + $0x40] sm:$0xff] }
 0x3be   :  { %3655 = vmatpush3.bf16.msra.mxu1 %v3654_v29  ;;  %v3658_v39 = vpack.c.bf16 %v4010_v32, %v4009_v33  ;;  %v3660_v46 = vpack.c.bf16 %v4005_v34, %v4004_v35  ;;  %v1617_v29 = vld [vmem:[%s6150_s11 + $0xa8] sm:$0xff]  ;;  %v1608_v32 = vld [vmem:[%s6150_s11 + $0x60] sm:$0xff] }
 0x3bf   :  { %3657 = vmatprep.subr.bf16.mxu1 %v3656_v36  ;;  %v4013_v40 = vpop.permute.xlu1 %4012  ;;  %v4018_v41 = vpop.permute.xlu0 %4017  ;;  %v790_v35 = vld [vmem:[%s6147_s6 + $0x68] sm:$0xff] }
 0x3c0   :  { %v4015_v42 = vunpack.i.h.bf16 %v4013_v40  ;;  %v4014_v43 = vunpack.i.l.bf16 %v4013_v40  ;;  %v4020_v44 = vunpack.i.h.bf16 %v4018_v41  ;;  %v4019_v45 = vunpack.i.l.bf16 %v4018_v41  ;;  %v789_v40 = vld [vmem:[%s6147_s6 + $0x60] sm:$0xff]  ;;  %v1609_v41 = vld [vmem:[%s6150_s11 + $0x68] sm:$0xff] }
 0x3c1   :  { %1665 = vperm.xlu1 %3905, %v1603_v37   ;;  %1710 = vperm.xlu0 %3904, %v1612_v38  }
 0x3c2   :  { %3659 = vmatpush3.bf16.msra.mxu1 %v3658_v39  ;;  %v3662_v49 = vpack.c.bf16 %v4015_v42, %v4014_v43  ;;  %v3664_v56 = vpack.c.bf16 %v4020_v44, %v4019_v45  ;;  %v1618_v44 = vld [vmem:[%s6150_s11 + $0xb0] sm:$0xff] }
 0x3c3   :  { %3661 = vmatprep.subr.bf16.mxu1 %v3660_v46  ;;  %v4023_v50 = vpop.permute.xlu1 %4022  ;;  %v4028_v51 = vpop.permute.xlu0 %4027 }
 0x3c4   :  { %v4025_v52 = vunpack.i.h.bf16 %v4023_v50  ;;  %v4024_v53 = vunpack.i.l.bf16 %v4023_v50  ;;  %v4030_v54 = vunpack.i.h.bf16 %v4028_v51  ;;  %v4029_v55 = vunpack.i.l.bf16 %v4028_v51 }
 0x3c5   :  { %1715 = vperm.xlu1 %3905, %v1613_v47   ;;  %1670 = vperm.xlu0 %3904, %v1604_v48   ;;  %v794_v47 = vld [vmem:[%s6147_s6 + $0x88] sm:$0xff] }
 0x3c6   :  { %3663 = vmatpush3.bf16.msra.mxu1 %v3662_v49  ;;  %v3666_v59 = vpack.c.bf16 %v4025_v52, %v4024_v53  ;;  %v3668_v2 = vpack.c.bf16 %v4030_v54, %v4029_v55  ;;  %v793_v52 = vld [vmem:[%s6147_s6 + $0x80] sm:$0xff]  ;;  %v1619_v53 = vld [vmem:[%s6150_s11 + $0xb8] sm:$0xff] }
 0x3c7   :  { %3665 = vmatprep.subr.bf16.mxu1 %v3664_v56  ;;  %v4033_v60 = vpop.permute.xlu1 %4032  ;;  %v4038_v61 = vpop.permute.xlu0 %4037  ;;  %v2478_v56 = vld [vmem:[%s6151_s15] sm:$0xff] }
 0x3c8   :  { %v4035_v62 = vunpack.i.h.bf16 %v4033_v60  ;;  %v4034_v63 = vunpack.i.l.bf16 %v4033_v60  ;;  %v4040_v0 = vunpack.i.h.bf16 %v4038_v61  ;;  %v4039_v1 = vunpack.i.l.bf16 %v4038_v61 }
 0x3c9   :  { %1675 = vperm.xlu1 %3905, %v1605_v57   ;;  %1720 = vperm.xlu0 %3904, %v1614_v58  }
 0x3ca   :  { %v3670_v3 = vpack.c.bf16 %v4035_v62, %v4034_v63  ;;  %3667 = vmatpush3.bf16.msra.mxu1 %v3666_v59  ;;  %v3672_v14 = vpack.c.bf16 %v4040_v0, %v4039_v1  ;;  %v798_v59 = vld [vmem:[%s6147_s6 + $0xa8] sm:$0xff]  ;;  %v797_v0 = vld [vmem:[%s6147_s6 + $0xa0] sm:$0xff] }
 0x3cb   :  { %3669 = vmatprep.subr.bf16.mxu1 %v3668_v2  ;;  %v4048_v6 = vpop.permute.xlu1 %4047  ;;  %v4043_v7 = vpop.permute.xlu0 %4042  ;;  %v2479_v1 = vld [vmem:[%s6151_s15 + $0x8] sm:$0xff] }
 0x3cc   :  { %v4050_v9 = vunpack.i.h.bf16 %v4048_v6  ;;  %v4049_v10 = vunpack.i.l.bf16 %v4048_v6  ;;  %v4045_v12 = vunpack.i.h.bf16 %v4043_v7  ;;  %v4044_v13 = vunpack.i.l.bf16 %v4043_v7  ;;  %v802_v7 = vld [vmem:[%s6147_s6 + $0xc8] sm:$0xff] }
 0x3cd   :  { %1002 = vmatmul.mubr.f32.vlgmr.msra.gmra.mrb[0].mxu1 %v777_v4  ;;  %1725 = vperm.xlu1 %3905, %v1615_v5   ;;  %v1610_v4 = vld [vmem:[%s6150_s11 + $0x70] sm:$0xff] }
 0x3ce   :  { %v3674_v15 = vpack.c.bf16 %v4050_v9, %v4049_v10  ;;  %1680 = vperm.xlu0 %3904, %v1606_v8   ;;  %3671 = vmatpush3.bf16.msra.mxu1 %v3670_v3  ;;  %v3676_v26 = vpack.c.bf16 %v4045_v12, %v4044_v13  ;;  %v801_v12 = vld [vmem:[%s6147_s6 + $0xc0] sm:$0xff]  ;;  %v1611_v13 = vld [vmem:[%s6150_s11 + $0x78] sm:$0xff] }
 0x3cf   :  { %3673 = vmatprep.subr.bf16.mxu1 %v3672_v14  ;;  %v4053_v18 = vpop.permute.xlu1 %4052  ;;  %v4058_v19 = vpop.permute.xlu0 %4057  ;;  %1006 = vmatprep.mubr.f32.mxu1 %v782_v11 }
 0x3d0   :  { %v4055_v21 = vunpack.i.h.bf16 %v4053_v18  ;;  %v4054_v22 = vunpack.i.l.bf16 %v4053_v18  ;;  %v4060_v24 = vunpack.i.h.bf16 %v4058_v19  ;;  %v4059_v25 = vunpack.i.l.bf16 %v4058_v19  ;;  %v806_v18 = vld [vmem:[%s6147_s6 + $0xe8] sm:$0xff] }
 0x3d1   :  { %1007 = vmatmul.mubr.f32.gmra.mrb[2].mxu1 %v781_v16  ;;  %1685 = vperm.xlu1 %3905, %v1607_v17  }
 0x3d2   :  { %v3678_v27 = vpack.c.bf16 %v4055_v21, %v4054_v22  ;;  %1730 = vperm.xlu0 %3904, %v1616_v20   ;;  %3675 = vmatpush3.bf16.msra.mxu1 %v3674_v15  ;;  %v3680_v38 = vpack.c.bf16 %v4060_v24, %v4059_v25  ;;  %v2221_v15 = vld [vmem:[%s6152_s13] sm:$0xff]  ;;  %v2222_v22 = vld [vmem:[%s6152_s13 + $0x8] sm:$0xff] }
 0x3d3   :  { %3677 = vmatprep.subr.bf16.mxu1 %v3676_v26  ;;  %v4068_v30 = vpop.permute.xlu1 %4067  ;;  %v4063_v31 = vpop.permute.xlu0 %4062  ;;  %1011 = vmatprep.mubr.f32.mxu1 %v786_v23  ;;  %v805_v21 = vld [vmem:[%s6147_s6 + $0xe0] sm:$0xff]  ;;  %v810_v24 = vld [vmem:[%s6147_s6 + $0x108] sm:$0xff] }
 0x3d4   :  { %v4070_v33 = vunpack.i.h.bf16 %v4068_v30  ;;  %v4069_v34 = vunpack.i.l.bf16 %v4068_v30  ;;  %v4065_v36 = vunpack.i.h.bf16 %v4063_v31  ;;  %v4064_v37 = vunpack.i.l.bf16 %v4063_v31  ;;  %v1620_v23 = vld [vmem:[%s6150_s11 + $0xc0] sm:$0xff]  ;;  %v1621_v26 = vld [vmem:[%s6150_s11 + $0xc8] sm:$0xff]  ;;  %v2481_v30 = vld [vmem:[%s6151_s15 + $0x18] sm:$0xff] }
 0x3d5   :  { %1012 = vmatmul.mubr.f32.gmra.mrb[4].mxu1 %v785_v28  ;;  %1735 = vperm.xlu1 %3905, %v1617_v29   ;;  %v809_v25 = vld [vmem:[%s6147_s6 + $0x100] sm:$0xff]  ;;  %v814_v28 = vld [vmem:[%s6147_s6 + $0x128] sm:$0xff]  ;;  %v2223_v31 = vld [vmem:[%s6152_s13 + $0x10] sm:$0xff] }
 0x3d6   :  { %v3682_v39 = vpack.c.bf16 %v4070_v33, %v4069_v34  ;;  %1690 = vperm.xlu0 %3904, %v1608_v32   ;;  %3679 = vmatpush3.bf16.msra.mxu1 %v3678_v27  ;;  %v3684_v50 = vpack.c.bf16 %v4065_v36, %v4064_v37  ;;  %v2480_v27 = vld [vmem:[%s6151_s15 + $0x10] sm:$0xff]  ;;  %v813_v29 = vld [vmem:[%s6147_s6 + $0x120] sm:$0xff]  ;;  %v818_v32 = vld [vmem:[%s6147_s6 + $0x148] sm:$0xff] }
 0x3d7   :  { %3681 = vmatprep.subr.bf16.mxu1 %v3680_v38  ;;  %v4073_v42 = vpop.permute.xlu1 %4072  ;;  %v4078_v43 = vpop.permute.xlu0 %4077  ;;  %1016 = vmatprep.mubr.f32.mxu1 %v790_v35  ;;  %v817_v33 = vld [vmem:[%s6147_s6 + $0x140] sm:$0xff]  ;;  %v2224_v34 = vld [vmem:[%s6152_s13 + $0x18] sm:$0xff]  ;;  %v1622_v35 = vld [vmem:[%s6150_s11 + $0xd0] sm:$0xff] }
 0x3d8   :  { %v4075_v45 = vunpack.i.h.bf16 %v4073_v42  ;;  %v4074_v46 = vunpack.i.l.bf16 %v4073_v42  ;;  %v4080_v48 = vunpack.i.h.bf16 %v4078_v43  ;;  %v4079_v49 = vunpack.i.l.bf16 %v4078_v43  ;;  %v822_v36 = vld [vmem:[%s6147_s6 + $0x168] sm:$0xff]  ;;  %v821_v37 = vld [vmem:[%s6147_s6 + $0x160] sm:$0xff]  ;;  %v1623_v38 = vld [vmem:[%s6150_s11 + $0xd8] sm:$0xff] }
 0x3d9   :  { %1017 = vmatmul.mubr.f32.gmra.mrb[6].mxu1 %v789_v40  ;;  %1695 = vperm.xlu1 %3905, %v1609_v41   ;;  %v826_v40 = vld [vmem:[%s6147_s6 + $0x188] sm:$0xff]  ;;  %v825_v41 = vld [vmem:[%s6147_s6 + $0x180] sm:$0xff] }
 0x3da   :  { %v3686_v51 = vpack.c.bf16 %v4075_v45, %v4074_v46  ;;  %1740 = vperm.xlu0 %3904, %v1618_v44   ;;  %3683 = vmatpush3.bf16.msra.mxu1 %v3682_v39  ;;  %v3688_v62 = vpack.c.bf16 %v4080_v48, %v4079_v49  ;;  %v2482_v39 = vld [vmem:[%s6151_s15 + $0x20] sm:$0xff]  ;;  %v2483_v42 = vld [vmem:[%s6151_s15 + $0x28] sm:$0xff] }
 0x3db   :  { %3685 = vmatprep.subr.bf16.mxu1 %v3684_v50  ;;  %v4088_v54 = vpop.permute.xlu1 %4087  ;;  %v4083_v55 = vpop.permute.xlu0 %4082  ;;  %1021 = vmatprep.mubr.f32.mxu1 %v794_v47  ;;  %v2225_v43 = vld [vmem:[%s6152_s13 + $0x20] sm:$0xff]  ;;  %v830_v44 = vld [vmem:[%s6147_s6 + $0x1a8] sm:$0xff] }
 0x3dc   :  { %v4090_v57 = vunpack.i.h.bf16 %v4088_v54  ;;  %v4089_v58 = vunpack.i.l.bf16 %v4088_v54  ;;  %v4085_v60 = vunpack.i.h.bf16 %v4083_v55  ;;  %v4084_v61 = vunpack.i.l.bf16 %v4083_v55  ;;  %v829_v45 = vld [vmem:[%s6147_s6 + $0x1a0] sm:$0xff]  ;;  %v2226_v46 = vld [vmem:[%s6152_s13 + $0x28] sm:$0xff]  ;;  %v2485_v54 = vld [vmem:[%s6151_s15 + $0x38] sm:$0xff] }
 0x3dd   :  { %1022 = vmatmul.mubr.f32.gmra.mrb[8].mxu1 %v793_v52  ;;  %1745 = vperm.xlu1 %3905, %v1619_v53   ;;  %v1624_v47 = vld [vmem:[%s6150_s11 + $0xe0] sm:$0xff]  ;;  %v834_v48 = vld [vmem:[%s6147_s6 + $0x1c8] sm:$0xff]  ;;  %v2227_v55 = vld [vmem:[%s6152_s13 + $0x30] sm:$0xff] }
 0x3de   :  { %v3690_v63 = vpack.c.bf16 %v4090_v57, %v4089_v58  ;;  %2496 = vperm.xlu0 %3904, %v2478_v56   ;;  %3687 = vmatpush3.bf16.msra.mxu1 %v3686_v51  ;;  %v3692_v10 = vpack.c.bf16 %v4085_v60, %v4084_v61  ;;  %v833_v49 = vld [vmem:[%s6147_s6 + $0x1c0] sm:$0xff]  ;;  %v1625_v50 = vld [vmem:[%s6150_s11 + $0xe8] sm:$0xff]  ;;  %v2484_v51 = vld [vmem:[%s6151_s15 + $0x30] sm:$0xff] }
 0x3df   :  { %3689 = vmatprep.subr.bf16.mxu1 %v3688_v62  ;;  %v4093_v2 = vpop.permute.xlu1 %4092  ;;  %v4098_v3 = vpop.permute.xlu0 %4097  ;;  %1026 = vmatprep.mubr.f32.mxu1 %v798_v59  ;;  %v838_v52 = vld [vmem:[%s6147_s6 + $0x1e8] sm:$0xff]  ;;  %v837_v53 = vld [vmem:[%s6147_s6 + $0x1e0] sm:$0xff]  ;;  %v780_v56 = vld [vmem:[%s6147_s6 + $0x18] sm:$0xff] }
 0x3e0   :  { %v4095_v5 = vunpack.i.h.bf16 %v4093_v2  ;;  %v4094_v6 = vunpack.i.l.bf16 %v4093_v2  ;;  %v4100_v8 = vunpack.i.h.bf16 %v4098_v3  ;;  %v4099_v9 = vunpack.i.l.bf16 %v4098_v3  ;;  %v779_v57 = vld [vmem:[%s6147_s6 + $0x10] sm:$0xff]  ;;  %v2228_v58 = vld [vmem:[%s6152_s13 + $0x38] sm:$0xff]  ;;  %v2487_v2 = vld [vmem:[%s6151_s15 + $0x48] sm:$0xff] }
 0x3e1   :  { %1027 = vmatmul.mubr.f32.gmra.mrb[10].mxu1 %v797_v0  ;;  %2501 = vperm.xlu1 %3905, %v2479_v1   ;;  %v1626_v59 = vld [vmem:[%s6150_s11 + $0xf0] sm:$0xff]  ;;  %v784_v60 = vld [vmem:[%s6147_s6 + $0x38] sm:$0xff]  ;;  %v2229_v3 = vld [vmem:[%s6152_s13 + $0x40] sm:$0xff] }
 0x3e2   :  { %v3694_v11 = vpack.c.bf16 %v4095_v5, %v4094_v6  ;;  %1700 = vperm.xlu0 %3904, %v1610_v4   ;;  %3691 = vmatpush3.bf16.msra.mxu1 %v3690_v63  ;;  %v3696_v19 = vpack.c.bf16 %v4100_v8, %v4099_v9  ;;  %v783_v61 = vld [vmem:[%s6147_s6 + $0x30] sm:$0xff]  ;;  %v1627_v62 = vld [vmem:[%s6150_s11 + $0xf8] sm:$0xff]  ;;  %v2486_v63 = vld [vmem:[%s6151_s15 + $0x40] sm:$0xff] }
 0x3e3   :  { %3693 = vmatprep.subr.bf16.mxu1 %v3692_v10  ;;  %v4103_v14 = vpop.permute.xlu1 %4102  ;;  %1031 = vmatprep.mubr.f32.mxu1 %v802_v7  ;;  %v788_v0 = vld [vmem:[%s6147_s6 + $0x58] sm:$0xff]  ;;  %v787_v1 = vld [vmem:[%s6147_s6 + $0x50] sm:$0xff]  ;;  %v2230_v6 = vld [vmem:[%s6152_s13 + $0x48] sm:$0xff] }
 0x3e4   :  { %v4105_v16 = vunpack.i.h.bf16 %v4103_v14  ;;  %v4104_v17 = vunpack.i.l.bf16 %v4103_v14  ;;  %v792_v4 = vld [vmem:[%s6147_s6 + $0x78] sm:$0xff]  ;;  %v791_v5 = vld [vmem:[%s6147_s6 + $0x70] sm:$0xff] }
 0x3e5   :  { %1032 = vmatmul.mubr.f32.gmra.mrb[12].mxu1 %v801_v12  ;;  %1705 = vperm.xlu1 %3905, %v1611_v13   ;;  %v2488_v7 = vld [vmem:[%s6151_s15 + $0x50] sm:$0xff]  ;;  %v796_v8 = vld [vmem:[%s6147_s6 + $0x98] sm:$0xff] }
 0x3e6   :  { %v3698_v20 = vpack.c.bf16 %v4105_v16, %v4104_v17  ;;  %2239 = vperm.xlu0 %3904, %v2221_v15   ;;  %3695 = vmatpush3.bf16.msra.mxu1 %v3694_v11  ;;  %v795_v9 = vld [vmem:[%s6147_s6 + $0x90] sm:$0xff]  ;;  %v2489_v10 = vld [vmem:[%s6151_s15 + $0x58] sm:$0xff]  ;;  %v2490_v15 = vld [vmem:[%s6151_s15 + $0x60] sm:$0xff] }
 0x3e7   :  { %3697 = vmatprep.subr.bf16.mxu1 %v3696_v19  ;;  %1036 = vmatprep.mubr.f32.mxu1 %v806_v18  ;;  %v2231_v11 = vld [vmem:[%s6152_s13 + $0x50] sm:$0xff]  ;;  %v800_v12 = vld [vmem:[%s6147_s6 + $0xb8] sm:$0xff]  ;;  %v2491_v18 = vld [vmem:[%s6151_s15 + $0x68] sm:$0xff] }
 0x3e8   :  { %v799_v13 = vld [vmem:[%s6147_s6 + $0xb0] sm:$0xff]  ;;  %v2232_v14 = vld [vmem:[%s6152_s13 + $0x58] sm:$0xff]  ;;  %v2233_v19 = vld [vmem:[%s6152_s13 + $0x60] sm:$0xff] }
 0x3e9   :  { %1037 = vmatmul.mubr.f32.gmra.mrb[14].mxu1 %v805_v21  ;;  %2244 = vperm.xlu1 %3905, %v2222_v22   ;;  %v804_v16 = vld [vmem:[%s6147_s6 + $0xd8] sm:$0xff]  ;;  %v803_v17 = vld [vmem:[%s6147_s6 + $0xd0] sm:$0xff]  ;;  %v2234_v22 = vld [vmem:[%s6152_s13 + $0x68] sm:$0xff] }
 0x3ea   :  { %1750 = vperm.xlu0 %3904, %v1620_v23   ;;  %3699 = vmatpush3.bf16.msra.mxu1 %v3698_v20  ;;  %v808_v20 = vld [vmem:[%s6147_s6 + $0xf8] sm:$0xff]  ;;  %v807_v21 = vld [vmem:[%s6147_s6 + $0xf0] sm:$0xff] }
 0x3eb   :  { %1041 = vmatprep.mubr.f32.mxu1 %v810_v24  ;;  %v2492_v23 = vld [vmem:[%s6151_s15 + $0x70] sm:$0xff]  ;;  %v812_v24 = vld [vmem:[%s6147_s6 + $0x118] sm:$0xff] }
 0x3ed   :  { %1042 = vmatmul.mubr.f32.gmra.mrb[16].mxu1 %v809_v25  ;;  %1755 = vperm.xlu1 %3905, %v1621_v26   ;;  %v811_v25 = vld [vmem:[%s6147_s6 + $0x110] sm:$0xff]  ;;  %v2493_v26 = vld [vmem:[%s6151_s15 + $0x78] sm:$0xff] }
 0x3ee   :  { %2506 = vperm.xlu0 %3904, %v2480_v27   ;;  %1046 = vmatprep.mubr.f32.mxu1 %v814_v28  ;;  %v2235_v27 = vld [vmem:[%s6152_s13 + $0x70] sm:$0xff]  ;;  %v816_v28 = vld [vmem:[%s6147_s6 + $0x138] sm:$0xff] }
 0x3f1   :  { %1047 = vmatmul.mubr.f32.gmra.mrb[18].mxu1 %v813_v29  ;;  %2511 = vperm.xlu1 %3905, %v2481_v30   ;;  %v815_v29 = vld [vmem:[%s6147_s6 + $0x130] sm:$0xff]  ;;  %v2236_v30 = vld [vmem:[%s6152_s13 + $0x78] sm:$0xff] }
 0x3f2   :  { %2249 = vperm.xlu0 %3904, %v2223_v31   ;;  %1051 = vmatprep.mubr.f32.mxu1 %v818_v32  ;;  %v2832_v31 = vld [vmem:[%s6153_s17] sm:$0xff]  ;;  %v820_v32 = vld [vmem:[%s6147_s6 + $0x158] sm:$0xff] }
 0x3f5   :  { %1052 = vmatmul.mubr.f32.gmra.mrb[20].mxu1 %v817_v33  ;;  %2254 = vperm.xlu1 %3905, %v2224_v34   ;;  %v819_v33 = vld [vmem:[%s6147_s6 + $0x150] sm:$0xff]  ;;  %v824_v34 = vld [vmem:[%s6147_s6 + $0x178] sm:$0xff] }
 0x3f6   :  { %1760 = vperm.xlu0 %3904, %v1622_v35   ;;  %1056 = vmatprep.mubr.f32.mxu1 %v822_v36  ;;  %v823_v35 = vld [vmem:[%s6147_s6 + $0x170] sm:$0xff]  ;;  %v828_v36 = vld [vmem:[%s6147_s6 + $0x198] sm:$0xff] }
 0x3f9   :  { %1057 = vmatmul.mubr.f32.gmra.mrb[22].mxu1 %v821_v37  ;;  %1765 = vperm.xlu1 %3905, %v1623_v38   ;;  %v827_v37 = vld [vmem:[%s6147_s6 + $0x190] sm:$0xff]  ;;  %v832_v38 = vld [vmem:[%s6147_s6 + $0x1b8] sm:$0xff] }
 0x3fa   :  { %2516 = vperm.xlu0 %3904, %v2482_v39   ;;  %1061 = vmatprep.mubr.f32.mxu1 %v826_v40  ;;  %v831_v39 = vld [vmem:[%s6147_s6 + $0x1b0] sm:$0xff]  ;;  %v836_v40 = vld [vmem:[%s6147_s6 + $0x1d8] sm:$0xff] }
 0x3fd   :  { %1062 = vmatmul.mubr.f32.gmra.mrb[24].mxu1 %v825_v41  ;;  %2521 = vperm.xlu1 %3905, %v2483_v42   ;;  %v835_v41 = vld [vmem:[%s6147_s6 + $0x1d0] sm:$0xff]  ;;  %v840_v42 = vld [vmem:[%s6147_s6 + $0x1f8] sm:$0xff] }
 0x3fe   :  { %2259 = vperm.xlu0 %3904, %v2225_v43   ;;  %1066 = vmatprep.mubr.f32.mxu1 %v830_v44  ;;  %v839_v43 = vld [vmem:[%s6147_s6 + $0x1f0] sm:$0xff] }
 0x401   :  { %1067 = vmatmul.mubr.f32.gmra.mrb[26].mxu1 %v829_v45  ;;  %2264 = vperm.xlu1 %3905, %v2226_v46  }
 0x402   :  { %1770 = vperm.xlu0 %3904, %v1624_v47   ;;  %1071 = vmatprep.mubr.f32.mxu1 %v834_v48 }
 0x405   :  { %1072 = vmatmul.mubr.f32.gmra.mrb[28].mxu1 %v833_v49  ;;  %1775 = vperm.xlu1 %3905, %v1625_v50  }
 0x406   :  { %2526 = vperm.xlu0 %3904, %v2484_v51   ;;  %1076 = vmatprep.mubr.f32.mxu1 %v838_v52  ;;  %v1243_v51 = vld [vmem:[%s6154_s8] sm:$0xff] }
 0x407   :  { %3333 = vmatprep.mubr.f32.mxu0 %v1243_v51 }
 0x409   :  { %1077 = vmatmul.mubr.f32.gmra.mrb[30].mxu1 %v837_v53  ;;  %2531 = vperm.xlu1 %3905, %v2485_v54  }
 0x40a   :  { %2269 = vperm.xlu0 %3904, %v2227_v55   ;;  %1146 = vmatprep.mubr.f32.mxu1 %v780_v56 }
 0x40d   :  { %1147 = vmatmul.mubr.f32.vlgmr.msra.gmra.mrb[32].mxu1 %v779_v57  ;;  %2274 = vperm.xlu1 %3905, %v2228_v58  }
 0x40e   :  { %1780 = vperm.xlu0 %3904, %v1626_v59   ;;  %1151 = vmatprep.mubr.f32.mxu1 %v784_v60 }
 0x411   :  { %1152 = vmatmul.mubr.f32.gmra.mrb[34].mxu1 %v783_v61  ;;  %1785 = vperm.xlu1 %3905, %v1627_v62  }
 0x412   :  { %2536 = vperm.xlu0 %3904, %v2486_v63   ;;  %1156 = vmatprep.mubr.f32.mxu1 %v788_v0 }
 0x415   :  { %1157 = vmatmul.mubr.f32.gmra.mrb[36].mxu1 %v787_v1  ;;  %2541 = vperm.xlu1 %3905, %v2487_v2  }
 0x416   :  { %2279 = vperm.xlu0 %3904, %v2229_v3   ;;  %1161 = vmatprep.mubr.f32.mxu1 %v792_v4 }
 0x419   :  { %1162 = vmatmul.mubr.f32.gmra.mrb[38].mxu1 %v791_v5  ;;  %2284 = vperm.xlu1 %3905, %v2230_v6  }
 0x41a   :  { %2546 = vperm.xlu0 %3904, %v2488_v7   ;;  %1166 = vmatprep.mubr.f32.mxu1 %v796_v8 }
 0x41d   :  { %1167 = vmatmul.mubr.f32.gmra.mrb[40].mxu1 %v795_v9  ;;  %2551 = vperm.xlu1 %3905, %v2489_v10  }
 0x41e   :  { %2289 = vperm.xlu0 %3904, %v2231_v11   ;;  %1171 = vmatprep.mubr.f32.mxu1 %v800_v12 }
 0x421   :  { %1172 = vmatmul.mubr.f32.gmra.mrb[42].mxu1 %v799_v13  ;;  %2294 = vperm.xlu1 %3905, %v2232_v14  }
 0x422   :  { %2556 = vperm.xlu0 %3904, %v2490_v15   ;;  %1176 = vmatprep.mubr.f32.mxu1 %v804_v16 }
 0x425   :  { %1177 = vmatmul.mubr.f32.gmra.mrb[44].mxu1 %v803_v17  ;;  %2561 = vperm.xlu1 %3905, %v2491_v18  }
 0x426   :  { %2299 = vperm.xlu0 %3904, %v2233_v19   ;;  %1181 = vmatprep.mubr.f32.mxu1 %v808_v20 }
 0x429   :  { %1182 = vmatmul.mubr.f32.gmra.mrb[46].mxu1 %v807_v21  ;;  %2304 = vperm.xlu1 %3905, %v2234_v22  }
 0x42a   :  { %2566 = vperm.xlu0 %3904, %v2492_v23   ;;  %1186 = vmatprep.mubr.f32.mxu1 %v812_v24 }
 0x42d   :  { %1187 = vmatmul.mubr.f32.gmra.mrb[48].mxu1 %v811_v25  ;;  %2571 = vperm.xlu1 %3905, %v2493_v26  }
 0x42e   :  { %2309 = vperm.xlu0 %3904, %v2235_v27   ;;  %1191 = vmatprep.mubr.f32.mxu1 %v816_v28 }
 0x431   :  { %1192 = vmatmul.mubr.f32.gmra.mrb[50].mxu1 %v815_v29  ;;  %2314 = vperm.xlu1 %3905, %v2236_v30   ;;  %v860_v30 = vpop.permute.xlu0 %859 }
 0x432   :  { %2835 = vperm.xlu0 %3904, %v2832_v31   ;;  %1196 = vmatprep.mubr.f32.mxu1 %v820_v32 }
 0x435   :  { %1197 = vmatmul.mubr.f32.gmra.mrb[52].mxu1 %v819_v33 }
 0x436   :  { %1201 = vmatprep.mubr.f32.mxu1 %v824_v34 }
 0x439   :  { %1202 = vmatmul.mubr.f32.gmra.mrb[54].mxu1 %v823_v35 }
 0x43a   :  { %1206 = vmatprep.mubr.f32.mxu1 %v828_v36  ;;  %v865_v36 = vpop.permute.xlu1 %864 }
 0x43d   :  { %1207 = vmatmul.mubr.f32.gmra.mrb[56].mxu1 %v827_v37 }
 0x43e   :  { %1211 = vmatprep.mubr.f32.mxu1 %v832_v38 }
 0x441   :  { %1212 = vmatmul.mubr.f32.gmra.mrb[58].mxu1 %v831_v39 }
 0x442   :  { %1216 = vmatprep.mubr.f32.mxu1 %v836_v40 }
 0x445   :  { %1217 = vmatmul.mubr.f32.gmra.mrb[60].mxu1 %v835_v41 }
 0x446   :  { %1221 = vmatprep.mubr.f32.mxu1 %v840_v42  ;;  %v870_v42 = vpop.permute.xlu0 %869 }
 0x449   :  { %1222 = vmatmul.mubr.f32.gmra.mrb[62].mxu1 %v839_v43 }
 0x4a0   :  { %v3022_v44 = vpop.f32.mrb[0].mxu1 }
 0x4a1   :  { %v3023_v45 = vpop.f32.mrb[1].mxu1 }
 0x4a2   :  { %v3024_v46 = vadd.f32 %v3023_v45, %v3022_v44 }
 0x4a4   :  { %v3025_v47 = vpop.f32.mrb[2].mxu1  ;;  %v1004_v32 = vadd.f32 %v3024_v46, %v860_v30 }
 0x4a5   :  { %v3026_v48 = vpop.f32.mrb[3].mxu1 }
 0x4a6   :  { %v3027_v49 = vadd.f32 %v3026_v48, %v3025_v47 }
 0x4a8   :  { %v3028_v50 = vpop.f32.mrb[4].mxu1  ;;  %v1009_v38 = vadd.f32 %v3027_v49, %v865_v36 }
 0x4a9   :  { %v3029_v52 = vpop.f32.mrb[5].mxu1 }
 0x4aa   :  { %v3030_v53 = vadd.f32 %v3029_v52, %v3028_v50 }
 0x4ac   :  { %v3031_v54 = vpop.f32.mrb[6].mxu1  ;;  %v1014_v44 = vadd.f32 %v3030_v53, %v870_v42 }
 0x4ad   :  { %v3032_v55 = vpop.f32.mrb[7].mxu1 }
 0x4ae   :  { %v3033_v56 = vadd.f32 %v3032_v55, %v3031_v54  ;;  %v875_v54 = vpop.permute.xlu1 %874 }
 0x4b0   :  { %v3034_v57 = vpop.f32.mrb[8].mxu1  ;;  %v1019_v55 = vadd.f32 %v3033_v56, %v875_v54 }
 0x4b1   :  { %v3035_v58 = vpop.f32.mrb[9].mxu1 }
 0x4b2   :  { %v5294_v59 = vadd.f32 %v3035_v58, %v3034_v57 }
 0x4b4   :  { %v3037_v60 = vpop.f32.mrb[10].mxu1 }
 0x4b5   :  { %v3038_v61 = vpop.f32.mrb[11].mxu1 }
 0x4b6   :  { %v5296_v62 = vadd.f32 %v3038_v61, %v3037_v60  ;;  %v880_v60 = vpop.permute.xlu0 %879 }
 0x4b8   :  { %v3040_v63 = vpop.f32.mrb[12].mxu1 }
 0x4b9   :  { %v3041_v0 = vpop.f32.mrb[13].mxu1 }
 0x4ba   :  { %v5298_v1 = vadd.f32 %v3041_v0, %v3040_v63  ;;  %v1024_v63 = vadd.f32 %v5294_v59, %v880_v60 }
 0x4bc   :  { %v3043_v2 = vpop.f32.mrb[14].mxu1 }
 0x4bd   :  { %v3044_v3 = vpop.f32.mrb[15].mxu1 }
 0x4be   :  { %v5300_v4 = vadd.f32 %v3044_v3, %v3043_v2 }
 0x4c0   :  { %v3046_v5 = vpop.f32.mrb[16].mxu1 }
 0x4c1   :  { %v3047_v6 = vpop.f32.mrb[17].mxu1 }
 0x4c2   :  { %v5302_v7 = vadd.f32 %v3047_v6, %v3046_v5 }
 0x4c4   :  { %v3049_v8 = vpop.f32.mrb[18].mxu1 }
 0x4c5   :  { %v3050_v9 = vpop.f32.mrb[19].mxu1 }
 0x4c6   :  { %v5304_v10 = vadd.f32 %v3050_v9, %v3049_v8  ;;  %v885_v8 = vpop.permute.xlu1 %884 }
 0x4c8   :  { %v3052_v11 = vpop.f32.mrb[20].mxu1 }
 0x4c9   :  { %v3053_v12 = vpop.f32.mrb[21].mxu1 }
 0x4ca   :  { %v5306_v13 = vadd.f32 %v3053_v12, %v3052_v11  ;;  %v1029_v11 = vadd.f32 %v5296_v62, %v885_v8 }
 0x4cc   :  { %v3055_v14 = vpop.f32.mrb[22].mxu1 }
 0x4cd   :  { %v3056_v15 = vpop.f32.mrb[23].mxu1 }
 0x4ce   :  { %v5308_v16 = vadd.f32 %v3056_v15, %v3055_v14  ;;  %v890_v15 = vpop.permute.xlu0 %889 }
 0x4d0   :  { %v3058_v17 = vpop.f32.mrb[24].mxu1 }
 0x4d1   :  { %v3059_v18 = vpop.f32.mrb[25].mxu1 }
 0x4d2   :  { %v5310_v19 = vadd.f32 %v3059_v18, %v3058_v17  ;;  %v1034_v18 = vadd.f32 %v5298_v1, %v890_v15 }
 0x4d4   :  { %v3061_v20 = vpop.f32.mrb[26].mxu1 }
 0x4d5   :  { %v3062_v21 = vpop.f32.mrb[27].mxu1 }
 0x4d6   :  { %v5312_v22 = vadd.f32 %v3062_v21, %v3061_v20 }
 0x4d8   :  { %v3064_v23 = vpop.f32.mrb[28].mxu1 }
 0x4d9   :  { %v3065_v24 = vpop.f32.mrb[29].mxu1 }
 0x4da   :  { %v5314_v25 = vadd.f32 %v3065_v24, %v3064_v23 }
 0x4dc   :  { %v3067_v26 = vpop.f32.mrb[30].mxu1 }
 0x4dd   :  { %v3068_v27 = vpop.f32.mrb[31].mxu1 }
 0x4de   :  { %v5316_v28 = vadd.f32 %v3068_v27, %v3067_v26  ;;  %v895_v27 = vpop.permute.xlu1 %894 }
 0x4df   :  { %v1039_v30 = vadd.f32 %v5300_v4, %v895_v27 }
 0x4e0   :  { %v3102_v29 = vpop.f32.mrb[32].mxu1 }
 0x4e1   :  { %v3103_v31 = vpop.f32.mrb[33].mxu1 }
 0x4e2   :  { %v3104_v33 = vadd.f32 %v3103_v31, %v3102_v29 }
 0x4e4   :  { %v1149_v34 = vadd.f32 %v3104_v33, %v1004_v32  ;;  %v3105_v35 = vpop.f32.mrb[34].mxu1  ;;  %v900_v33 = vpop.permute.xlu0 %899 }
 0x4e5   :  { %v3106_v37 = vpop.f32.mrb[35].mxu1 }
 0x4e6   :  { %v3107_v39 = vadd.f32 %v3106_v37, %v3105_v35  ;;  %v1227_v45 = vmax.f32 %v1149_v34, 0.0  ;;  %v1044_v35 = vadd.f32 %v5302_v7, %v900_v33  ;;  %v1245_v33 = vld [vmem:[%s6154_s8 + $0x10] sm:$0xff] }
 0x4e8   :  { %v1154_v40 = vadd.f32 %v3107_v39, %v1009_v38  ;;  %v3108_v41 = vpop.f32.mrb[36].mxu1 }
 0x4e9   :  { %v3109_v43 = vpop.f32.mrb[37].mxu1 }
 0x4ea   :  { %v1228_v47 = vmax.f32 %v1154_v40, 0.0  ;;  %v3110_v48 = vadd.f32 %v3109_v43, %v3108_v41  ;;  %v905_v41 = vpop.permute.xlu1 %904 }
 0x4eb   :  { %v1049_v43 = vadd.f32 %v5304_v10, %v905_v41  ;;  %v1255_v41 = vld [vmem:[%s6154_s8 + $0x60] sm:$0xff] }
 0x4ec   :  { %v1159_v50 = vadd.f32 %v3110_v48, %v1014_v44  ;;  %v3111_v51 = vpop.f32.mrb[38].mxu1  ;;  %v3700_v52 = vpack.c.bf16 %v1228_v47, %v1227_v45  ;;  %v910_v47 = vpop.permute.xlu0 %909 }
 0x4ed   :  { %v3112_v46 = vpop.f32.mrb[39].mxu1 }
 0x4ee   :  { %v3113_v57 = vadd.f32 %v3112_v46, %v3111_v51  ;;  %3701 = vmatprep.subr.bf16.mxu0 %v3700_v52  ;;  %v1229_v0 = vmax.f32 %v1159_v50, 0.0  ;;  %v1054_v50 = vadd.f32 %v5306_v13, %v910_v47  ;;  %v1533_v47 = vld [vmem:[%s6156_s10 + $0x8] sm:$0xff] }
 0x4ef   :  { %3703 = vmatpush3.bf16.msra.mxu0 %v3700_v52  ;;  %1852 = vmatprep.mubr.f32.mxu1 %v1533_v47 }
 0x4f0   :  { %v1164_v58 = vadd.f32 %v3113_v57, %v1019_v55  ;;  %v3114_v49 = vpop.f32.mrb[40].mxu1  ;;  %v915_v57 = vpop.permute.xlu1 %914 }
 0x4f1   :  { %v3115_v61 = vpop.f32.mrb[41].mxu1 }
 0x4f2   :  { %v1230_v53 = vmax.f32 %v1164_v58, 0.0  ;;  %v3116_v2 = vadd.f32 %v3115_v61, %v3114_v49  ;;  %v1059_v49 = vadd.f32 %v5308_v16, %v915_v57 }
 0x4f4   :  { %v1169_v3 = vadd.f32 %v3116_v2, %v1024_v63  ;;  %v3117_v5 = vpop.f32.mrb[42].mxu1  ;;  %v3704_v6 = vpack.c.bf16 %v1230_v53, %v1229_v0  ;;  %v920_v63 = vpop.permute.xlu0 %919 }
 0x4f5   :  { %v3118_v9 = vpop.f32.mrb[43].mxu1  ;;  %v1064_v53 = vadd.f32 %v5310_v19, %v920_v63 }
 0x4f6   :  { %v3119_v56 = vadd.f32 %v3118_v9, %v3117_v5  ;;  %3705 = vmatprep.subr.bf16.mxu0 %v3704_v6  ;;  %v1231_v59 = vmax.f32 %v1169_v3, 0.0  ;;  %v925_v9 = vpop.permute.xlu1 %924 }
 0x4f7   :  { %3707 = vmatpush3.bf16.msra.mxu0 %v3704_v6 }
 0x4f8   :  { %v1174_v12 = vadd.f32 %v3119_v56, %v1029_v11  ;;  %v3120_v14 = vpop.f32.mrb[44].mxu1  ;;  %v1069_v56 = vadd.f32 %v5312_v22, %v925_v9  ;;  %v930_v15 = vpop.permute.xlu0 %929 }
 0x4f9   :  { %v3121_v17 = vpop.f32.mrb[45].mxu1 }
 0x4fa   :  { %v1232_v20 = vmax.f32 %v1174_v12, 0.0  ;;  %v3122_v21 = vadd.f32 %v3121_v17, %v3120_v14 }
 0x4fc   :  { %v1179_v23 = vadd.f32 %v3122_v21, %v1034_v18  ;;  %v3123_v24 = vpop.f32.mrb[46].mxu1  ;;  %v3708_v26 = vpack.c.bf16 %v1232_v20, %v1231_v59  ;;  %v1074_v18 = vadd.f32 %v5314_v25, %v930_v15  ;;  %v1244_v25 = vld [vmem:[%s6154_s8 + $0x8] sm:$0xff] }
 0x4fd   :  { %v3124_v29 = vpop.f32.mrb[47].mxu1 }
 0x4fe   :  { %v3125_v62 = vadd.f32 %v3124_v29, %v3123_v24  ;;  %3709 = vmatprep.subr.bf16.mxu0 %v3708_v26  ;;  %v1233_v1 = vmax.f32 %v1179_v23, 0.0 }
 0x4ff   :  { %3711 = vmatpush3.bf16.msra.mxu0 %v3708_v26  ;;  %v935_v26 = vpop.permute.xlu1 %934 }
 0x500   :  { %v1184_v31 = vadd.f32 %v3125_v62, %v1039_v30  ;;  %v3126_v32 = vpop.f32.mrb[48].mxu1  ;;  %v1079_v29 = vadd.f32 %v5316_v28, %v935_v26  ;;  %v1246_v28 = vld [vmem:[%s6154_s8 + $0x18] sm:$0xff] }
 0x501   :  { %v3127_v34 = vpop.f32.mrb[49].mxu1 }
 0x502   :  { %v1234_v36 = vmax.f32 %v1184_v31, 0.0  ;;  %v3128_v37 = vadd.f32 %v3127_v34, %v3126_v32  ;;  %v1247_v34 = vld [vmem:[%s6154_s8 + $0x20] sm:$0xff] }
 0x504   :  { %v1189_v38 = vadd.f32 %v3128_v37, %v1044_v35  ;;  %v3129_v39 = vpop.f32.mrb[50].mxu1  ;;  %v3712_v40 = vpack.c.bf16 %v1234_v36, %v1233_v1  ;;  %v1248_v35 = vld [vmem:[%s6154_s8 + $0x28] sm:$0xff]  ;;  %v1249_v1 = vld [vmem:[%s6154_s8 + $0x30] sm:$0xff]  ;;  %v1250_v36 = vld [vmem:[%s6154_s8 + $0x38] sm:$0xff] }
 0x505   :  { %v3130_v42 = vpop.f32.mrb[51].mxu1  ;;  %v1251_v37 = vld [vmem:[%s6154_s8 + $0x40] sm:$0xff] }
 0x506   :  { %v3131_v4 = vadd.f32 %v3130_v42, %v3129_v39  ;;  %3713 = vmatprep.subr.bf16.mxu0 %v3712_v40  ;;  %v1235_v7 = vmax.f32 %v1189_v38, 0.0  ;;  %v1252_v38 = vld [vmem:[%s6154_s8 + $0x48] sm:$0xff]  ;;  %v1253_v39 = vld [vmem:[%s6154_s8 + $0x50] sm:$0xff] }
 0x507   :  { %3715 = vmatpush3.bf16.msra.mxu0 %v3712_v40  ;;  %v1254_v40 = vld [vmem:[%s6154_s8 + $0x58] sm:$0xff]  ;;  %v1256_v42 = vld [vmem:[%s6154_s8 + $0x68] sm:$0xff] }
 0x508   :  { %v1194_v44 = vadd.f32 %v3131_v4, %v1049_v43  ;;  %v3132_v45 = vpop.f32.mrb[52].mxu1  ;;  %v1257_v43 = vld [vmem:[%s6154_s8 + $0x70] sm:$0xff]  ;;  %v1258_v4 = vld [vmem:[%s6154_s8 + $0x78] sm:$0xff] }
 0x509   :  { %v3133_v48 = vpop.f32.mrb[53].mxu1 }
 0x50a   :  { %v1236_v51 = vmax.f32 %v1194_v44, 0.0  ;;  %v3134_v52 = vadd.f32 %v3133_v48, %v3132_v45  ;;  %v6166_v44 = vmov 0.0|0.0   ;;  %v2205_v45 = vld [vmem:[%s6155_s12] sm:$0xff]  ;;  %v1283_v48 = vpop.permute.xlu1 %1282 }
 0x50b   :  { %3732 = vmatprep.subr.bf16.mxu1 %v6166_v44 }
 0x50c   :  { %v1199_v54 = vadd.f32 %v3134_v52, %v1054_v50  ;;  %v3135_v46 = vpop.f32.mrb[54].mxu1  ;;  %v3716_v55 = vpack.c.bf16 %v1236_v51, %v1235_v7  ;;  %v1278_v50 = vpop.permute.xlu0 %1277 }
 0x50d   :  { %v3136_v58 = vpop.f32.mrb[55].mxu1 }
 0x50e   :  { %v3137_v10 = vadd.f32 %v3136_v58, %v3135_v46  ;;  %3717 = vmatprep.subr.bf16.mxu0 %v3716_v55  ;;  %v1237_v13 = vmax.f32 %v1199_v54, 0.0  ;;  %v1293_v7 = vpop.permute.xlu1 %1292 }
 0x50f   :  { %3719 = vmatpush3.bf16.msra.mxu0 %v3716_v55 }
 0x510   :  { %v1204_v60 = vadd.f32 %v3137_v10, %v1059_v49  ;;  %v3138_v61 = vpop.f32.mrb[56].mxu1  ;;  %v1288_v51 = vpop.permute.xlu0 %1287 }
 0x511   :  { %v3139_v0 = vpop.f32.mrb[57].mxu1 }
 0x512   :  { %v1238_v2 = vmax.f32 %v1204_v60, 0.0  ;;  %v3140_v3 = vadd.f32 %v3139_v0, %v3138_v61  ;;  %v1303_v52 = vpop.permute.xlu1 %1302 }
 0x514   :  { %v1209_v5 = vadd.f32 %v3140_v3, %v1064_v53  ;;  %v3141_v6 = vpop.f32.mrb[58].mxu1  ;;  %v3720_v8 = vpack.c.bf16 %v1238_v2, %v1237_v13  ;;  %v1298_v54 = vpop.permute.xlu0 %1297 }
 0x515   :  { %v3142_v11 = vpop.f32.mrb[59].mxu1 }
 0x516   :  { %v3143_v16 = vadd.f32 %v3142_v11, %v3141_v6  ;;  %3721 = vmatprep.subr.bf16.mxu0 %v3720_v8  ;;  %v1239_v19 = vmax.f32 %v1209_v5, 0.0  ;;  %v1313_v10 = vpop.permute.xlu1 %1312 }
 0x517   :  { %3723 = vmatpush3.bf16.msra.mxu0 %v3720_v8 }
 0x518   :  { %v1214_v12 = vadd.f32 %v3143_v16, %v1069_v56  ;;  %v3144_v14 = vpop.f32.mrb[60].mxu1  ;;  %v1308_v63 = vpop.permute.xlu0 %1307 }
 0x519   :  { %v3145_v17 = vpop.f32.mrb[61].mxu1 }
 0x51a   :  { %v1240_v59 = vmax.f32 %v1214_v12, 0.0  ;;  %v3146_v20 = vadd.f32 %v3145_v17, %v3144_v14  ;;  %v1323_v11 = vpop.permute.xlu1 %1322 }
 0x51c   :  { %v1219_v21 = vadd.f32 %v3146_v20, %v1074_v18  ;;  %v3147_v23 = vpop.f32.mrb[62].mxu1  ;;  %v3724_v24 = vpack.c.bf16 %v1240_v59, %v1239_v19  ;;  %v1318_v12 = vpop.permute.xlu0 %1317 }
 0x51d   :  { %v3148_v27 = vpop.f32.mrb[63].mxu1 }
 0x51e   :  { %v3149_v22 = vadd.f32 %v3148_v27, %v3147_v23  ;;  %3725 = vmatprep.subr.bf16.mxu0 %v3724_v24  ;;  %v1241_v62 = vmax.f32 %v1219_v21, 0.0  ;;  %v1333_v23 = vpop.permute.xlu1 %1332 }
 0x51f   :  { %3727 = vmatpush3.bf16.msra.mxu0 %v3724_v24 }
 0x520   :  { %v1224_v30 = vadd.f32 %v3149_v22, %v1079_v29  ;;  %v1328_v27 = vpop.permute.xlu0 %1327 }
 0x522   :  { %v1242_v31 = vmax.f32 %v1224_v30, 0.0 }
 0x524   :  { %v3728_v32 = vpack.c.bf16 %v1242_v31, %v1241_v62 }
 0x526   :  { %3729 = vmatprep.subr.bf16.mxu0 %v3728_v32 }
 0x527   :  { %3731 = vmatpush3.bf16.msra.mxu0 %v3728_v32 }
 0x52a   :  { %3334 = vmatmul.mubr.f32.vlgmr.msra.gmra.mrb[12].mxu0 %v1244_v25 }
 0x52b   :  { %3336 = vmatprep.mubr.f32.mxu0 %v1245_v33 }
 0x52e   :  { %3337 = vmatmul.mubr.f32.gmra.mrb[14].mxu0 %v1246_v28 }
 0x52f   :  { %3339 = vmatprep.mubr.f32.mxu0 %v1247_v34  ;;  %v1343_v34 = vpop.permute.xlu1 %1342 }
 0x532   :  { %3340 = vmatmul.mubr.f32.gmra.mrb[16].mxu0 %v1248_v35 }
 0x533   :  { %3342 = vmatprep.mubr.f32.mxu0 %v1249_v1 }
 0x536   :  { %3343 = vmatmul.mubr.f32.gmra.mrb[18].mxu0 %v1250_v36  ;;  %v1338_v36 = vpop.permute.xlu0 %1337 }
 0x537   :  { %3345 = vmatprep.mubr.f32.mxu0 %v1251_v37 }
 0x53a   :  { %3346 = vmatmul.mubr.f32.gmra.mrb[20].mxu0 %v1252_v38 }
 0x53b   :  { %3348 = vmatprep.mubr.f32.mxu0 %v1253_v39 }
 0x53e   :  { %3349 = vmatmul.mubr.f32.gmra.mrb[22].mxu0 %v1254_v40 }
 0x53f   :  { %3351 = vmatprep.mubr.f32.mxu0 %v1255_v41 }
 0x542   :  { %3352 = vmatmul.mubr.f32.gmra.mrb[24].mxu0 %v1256_v42 }
 0x543   :  { %3354 = vmatprep.mubr.f32.mxu0 %v1257_v43 }
 0x546   :  { %3355 = vmatmul.mubr.f32.gmra.mrb[26].mxu0 %v1258_v4 }
 0x547   :  { %3389 = vmatprep.mubr.f32.mxu0 %v2205_v45  ;;  %v1353_v45 = vpop.permute.xlu1 %1352 }
 0x5fd   :  { %v3335_v46 = vpop.f32.mrb[12].mxu0 }
 0x5fe   :  { %v1427_v55 = vadd.f32 %v3335_v46, %v1283_v48  ;;  %v1421_v57 = vpop.f32.mrb[13].mxu0 }
 0x5ff   :  { %v1422_v58 = vadd.f32 %v1421_v57, %v1278_v50  ;;  %v1348_v50 = vpop.permute.xlu0 %1347  ;;  %v1517_v57 = vld [vmem:[%s6157_s1 + $0x8] sm:$0xff] }
 0x600   :  { %v1501_v49 = vmax.f32 %v1427_v55, 0.0  ;;  %v1516_v55 = vld [vmem:[%s6157_s1] sm:$0xff] }
 0x601   :  { %v1500_v60 = vmax.f32 %v1422_v58, 0.0  ;;  %v3338_v61 = vpop.f32.mrb[14].mxu0 }
 0x602   :  { %v1437_v0 = vadd.f32 %v3338_v61, %v1293_v7  ;;  %v1431_v53 = vpop.f32.mrb[15].mxu0  ;;  %v1519_v61 = vld [vmem:[%s6157_s1 + $0x18] sm:$0xff] }
 0x603   :  { %v3733_v13 = vpack.c.bf16 %v1501_v49, %v1500_v60  ;;  %v1432_v2 = vadd.f32 %v1431_v53, %v1288_v51  ;;  %v1518_v60 = vld [vmem:[%s6157_s1 + $0x10] sm:$0xff] }
 0x604   :  { %v1503_v3 = vmax.f32 %v1437_v0, 0.0  ;;  %v3760_v0 = vpack.c.bf16 %v1519_v61, %v1518_v60  ;;  %v2207_v53 = vld [vmem:[%s6155_s12 + $0x10] sm:$0xff]  ;;  %v1547_v60 = vld [vmem:[%s6156_s10 + $0x78] sm:$0xff] }
 0x605   :  { %v1502_v5 = vmax.f32 %v1432_v2, 0.0  ;;  %v3341_v6 = vpop.f32.mrb[16].mxu0  ;;  %3734 = vmatpush1.bf16.msra.mxu1 %v3733_v13  ;;  %3781 = vmatprep.subr.bf16.mxu0 %v3733_v13  ;;  %v1521_v2 = vld [vmem:[%s6157_s1 + $0x28] sm:$0xff]  ;;  %v2476_v61 = vld [vmem:[%s6158_s14 + $0x70] sm:$0xff] }
 0x606   :  { %v1447_v8 = vadd.f32 %v3341_v6, %v1303_v52  ;;  %v1441_v9 = vpop.f32.mrb[17].mxu0  ;;  %3783 = vmatpush3.bf16.msra.mxu0 %v3733_v13  ;;  %3735 = vmatprep.subr.bf16.mxu1 %v6166_v44  ;;  %v1520_v13 = vld [vmem:[%s6157_s1 + $0x20] sm:$0xff] }
 0x607   :  { %v3736_v56 = vpack.c.bf16 %v1503_v3, %v1502_v5  ;;  %v1442_v16 = vadd.f32 %v1441_v9, %v1298_v54  ;;  %v2208_v3 = vld [vmem:[%s6155_s12 + $0x18] sm:$0xff]  ;;  %v3763_v5 = vpack.c.bf16 %v1521_v2, %v1520_v13  ;;  %v2209_v6 = vld [vmem:[%s6155_s12 + $0x20] sm:$0xff] }
 0x608   :  { %v1505_v14 = vmax.f32 %v1447_v8, 0.0  ;;  %v1522_v8 = vld [vmem:[%s6157_s1 + $0x30] sm:$0xff]  ;;  %v1523_v9 = vld [vmem:[%s6157_s1 + $0x38] sm:$0xff]  ;;  %v1548_v13 = vld [vmem:[%s6156_s10 + $0x80] sm:$0xff] }
 0x609   :  { %v1504_v15 = vmax.f32 %v1442_v16, 0.0  ;;  %v3344_v17 = vpop.f32.mrb[18].mxu0  ;;  %3737 = vmatpush1.bf16.msra.mxu1 %v3736_v56  ;;  %3785 = vmatprep.subr.bf16.mxu0 %v3736_v56  ;;  %v2211_v16 = vld [vmem:[%s6155_s12 + $0x30] sm:$0xff]  ;;  %v1551_v2 = vld [vmem:[%s6156_s10 + $0x98] sm:$0xff] }
 0x60a   :  { %v1457_v18 = vadd.f32 %v3344_v17, %v1313_v10  ;;  %v1451_v19 = vpop.f32.mrb[19].mxu0  ;;  %3787 = vmatpush3.bf16.msra.mxu0 %v3736_v56  ;;  %3738 = vmatprep.subr.bf16.mxu1 %v6166_v44  ;;  %v3757_v10 = vpack.c.bf16 %v1517_v57, %v1516_v55  ;;  %v3766_v56 = vpack.c.bf16 %v1523_v9, %v1522_v8  ;;  %v2473_v55 = vld [vmem:[%s6158_s14 + $0x58] sm:$0xff]  ;;  %v1545_v57 = vld [vmem:[%s6156_s10 + $0x68] sm:$0xff]  ;;  %v1554_v9 = vld [vmem:[%s6156_s10 + $0xb0] sm:$0xff] }
 0x60b   :  { %v3739_v59 = vpack.c.bf16 %v1505_v14, %v1504_v15  ;;  %v1452_v20 = vadd.f32 %v1451_v19, %v1308_v63  ;;  %v2206_v63 = vld [vmem:[%s6155_s12 + $0x8] sm:$0xff]  ;;  %v2212_v15 = vld [vmem:[%s6155_s12 + $0x38] sm:$0xff]  ;;  %v1526_v19 = vld [vmem:[%s6157_s1 + $0x50] sm:$0xff] }
 0x60c   :  { %v1507_v21 = vmax.f32 %v1457_v18, 0.0  ;;  %v1525_v14 = vld [vmem:[%s6157_s1 + $0x48] sm:$0xff]  ;;  %v2213_v18 = vld [vmem:[%s6155_s12 + $0x40] sm:$0xff]  ;;  %v1555_v8 = vld [vmem:[%s6156_s10 + $0xb8] sm:$0xff] }
 0x60d   :  { %v1506_v24 = vmax.f32 %v1452_v20, 0.0  ;;  %v3347_v26 = vpop.f32.mrb[20].mxu0  ;;  %3740 = vmatpush1.bf16.msra.mxu1 %v3739_v59  ;;  %3789 = vmatprep.subr.bf16.mxu0 %v3739_v59  ;;  %v2214_v20 = vld [vmem:[%s6155_s12 + $0x48] sm:$0xff] }
 0x60e   :  { %v1467_v29 = vadd.f32 %v3347_v26, %v1323_v11  ;;  %v1461_v22 = vpop.f32.mrb[21].mxu0  ;;  %3791 = vmatpush3.bf16.msra.mxu0 %v3739_v59  ;;  %3741 = vmatprep.subr.bf16.mxu1 %v6166_v44  ;;  %v2210_v11 = vld [vmem:[%s6155_s12 + $0x28] sm:$0xff]  ;;  %v1527_v59 = vld [vmem:[%s6157_s1 + $0x58] sm:$0xff] }
 0x60f   :  { %v3742_v30 = vpack.c.bf16 %v1507_v21, %v1506_v24  ;;  %v1462_v62 = vadd.f32 %v1461_v22, %v1318_v12  ;;  %v1524_v12 = vld [vmem:[%s6157_s1 + $0x40] sm:$0xff]  ;;  %v3772_v21 = vpack.c.bf16 %v1527_v59, %v1526_v19  ;;  %v1529_v26 = vld [vmem:[%s6157_s1 + $0x68] sm:$0xff] }
 0x610   :  { %v1509_v31 = vmax.f32 %v1467_v29, 0.0  ;;  %v3769_v17 = vpack.c.bf16 %v1525_v14, %v1524_v12  ;;  %v1528_v24 = vld [vmem:[%s6157_s1 + $0x60] sm:$0xff]  ;;  %v1558_v12 = vld [vmem:[%s6156_s10 + $0xd0] sm:$0xff]  ;;  %v1561_v14 = vld [vmem:[%s6156_s10 + $0xe8] sm:$0xff] }
 0x611   :  { %v1508_v32 = vmax.f32 %v1462_v62, 0.0  ;;  %v3350_v25 = vpop.f32.mrb[22].mxu0  ;;  %3743 = vmatpush1.bf16.msra.mxu1 %v3742_v30  ;;  %3793 = vmatprep.subr.bf16.mxu0 %v3742_v30  ;;  %v3775_v29 = vpack.c.bf16 %v1529_v26, %v1528_v24  ;;  %v2217_v22 = vld [vmem:[%s6155_s12 + $0x60] sm:$0xff]  ;;  %v1531_v62 = vld [vmem:[%s6157_s1 + $0x78] sm:$0xff]  ;;  %v1565_v19 = vld [vmem:[%s6156_s10 + $0x108] sm:$0xff] }
 0x612   :  { %v1477_v33 = vadd.f32 %v3350_v25, %v1333_v23  ;;  %v1471_v28 = vpop.f32.mrb[23].mxu0  ;;  %3795 = vmatpush3.bf16.msra.mxu0 %v3742_v30  ;;  %3744 = vmatprep.subr.bf16.mxu1 %v6166_v44  ;;  %v2215_v23 = vld [vmem:[%s6155_s12 + $0x50] sm:$0xff]  ;;  %v1564_v59 = vld [vmem:[%s6156_s10 + $0x100] sm:$0xff]  ;;  %v1571_v26 = vld [vmem:[%s6156_s10 + $0x138] sm:$0xff] }
 0x613   :  { %v3745_v35 = vpack.c.bf16 %v1509_v31, %v1508_v32  ;;  %v1472_v1 = vadd.f32 %v1471_v28, %v1328_v27  ;;  %v2216_v27 = vld [vmem:[%s6155_s12 + $0x58] sm:$0xff]  ;;  %v1530_v30 = vld [vmem:[%s6157_s1 + $0x70] sm:$0xff]  ;;  %v2218_v31 = vld [vmem:[%s6155_s12 + $0x68] sm:$0xff] }
 0x614   :  { %v1511_v37 = vmax.f32 %v1477_v33, 0.0  ;;  %v3778_v32 = vpack.c.bf16 %v1531_v62, %v1530_v30  ;;  %v2219_v25 = vld [vmem:[%s6155_s12 + $0x70] sm:$0xff]  ;;  %v2220_v33 = vld [vmem:[%s6155_s12 + $0x78] sm:$0xff]  ;;  %v2462_v28 = vld [vmem:[%s6158_s14] sm:$0xff] }
 0x615   :  { %v1510_v38 = vmax.f32 %v1472_v1, 0.0  ;;  %v3353_v39 = vpop.f32.mrb[24].mxu0  ;;  %3746 = vmatpush1.bf16.msra.mxu1 %v3745_v35  ;;  %3797 = vmatprep.subr.bf16.mxu0 %v3745_v35  ;;  %v1535_v1 = vld [vmem:[%s6156_s10 + $0x18] sm:$0xff]  ;;  %v1568_v24 = vld [vmem:[%s6156_s10 + $0x120] sm:$0xff]  ;;  %v1574_v62 = vld [vmem:[%s6156_s10 + $0x150] sm:$0xff] }
 0x616   :  { %v1487_v40 = vadd.f32 %v3353_v39, %v1343_v34  ;;  %v1481_v41 = vpop.f32.mrb[25].mxu0  ;;  %3799 = vmatpush3.bf16.msra.mxu0 %v3745_v35  ;;  %3747 = vmatprep.subr.bf16.mxu1 %v6166_v44  ;;  %v1532_v34 = vld [vmem:[%s6156_s10] sm:$0xff]  ;;  %v2463_v35 = vld [vmem:[%s6158_s14 + $0x8] sm:$0xff]  ;;  %v1575_v30 = vld [vmem:[%s6156_s10 + $0x158] sm:$0xff] }
 0x617   :  { %v3748_v42 = vpack.c.bf16 %v1511_v37, %v1510_v38  ;;  %v1482_v43 = vadd.f32 %v1481_v41, %v1338_v36  ;;  %v2464_v36 = vld [vmem:[%s6158_s14 + $0x10] sm:$0xff]  ;;  %v2465_v38 = vld [vmem:[%s6158_s14 + $0x18] sm:$0xff]  ;;  %v1537_v39 = vld [vmem:[%s6156_s10 + $0x28] sm:$0xff] }
 0x618   :  { %v1513_v4 = vmax.f32 %v1487_v40, 0.0  ;;  %v1534_v37 = vld [vmem:[%s6156_s10 + $0x10] sm:$0xff]  ;;  %v2466_v40 = vld [vmem:[%s6158_s14 + $0x20] sm:$0xff] }
 0x619   :  { %v1512_v47 = vmax.f32 %v1482_v43, 0.0  ;;  %v3356_v48 = vpop.f32.mrb[26].mxu0  ;;  %3749 = vmatpush1.bf16.msra.mxu1 %v3748_v42  ;;  %3801 = vmatprep.subr.bf16.mxu0 %v3748_v42  ;;  %v1536_v41 = vld [vmem:[%s6156_s10 + $0x20] sm:$0xff]  ;;  %v1539_v43 = vld [vmem:[%s6156_s10 + $0x38] sm:$0xff] }
 0x61a   :  { %v1497_v7 = vadd.f32 %v3356_v48, %v1353_v45  ;;  %v1491_v51 = vpop.f32.mrb[27].mxu0  ;;  %3803 = vmatpush3.bf16.msra.mxu0 %v3748_v42  ;;  %3750 = vmatprep.subr.bf16.mxu1 %v6166_v44  ;;  %v2467_v42 = vld [vmem:[%s6158_s14 + $0x28] sm:$0xff]  ;;  %v1538_v45 = vld [vmem:[%s6156_s10 + $0x30] sm:$0xff] }
 0x61b   :  { %v3751_v52 = vpack.c.bf16 %v1513_v4, %v1512_v47  ;;  %v1492_v54 = vadd.f32 %v1491_v51, %v1348_v50  ;;  %v2468_v4 = vld [vmem:[%s6158_s14 + $0x30] sm:$0xff]  ;;  %v2469_v47 = vld [vmem:[%s6158_s14 + $0x38] sm:$0xff]  ;;  %v1541_v48 = vld [vmem:[%s6156_s10 + $0x48] sm:$0xff] }
 0x61c   :  { %v1515_v46 = vmax.f32 %v1497_v7, 0.0  ;;  %v2470_v50 = vld [vmem:[%s6158_s14 + $0x40] sm:$0xff]  ;;  %v2471_v51 = vld [vmem:[%s6158_s14 + $0x48] sm:$0xff] }
 0x61d   :  { %v1514_v58 = vmax.f32 %v1492_v54, 0.0  ;;  %3752 = vmatpush1.bf16.msra.mxu1 %v3751_v52  ;;  %3805 = vmatprep.subr.bf16.mxu0 %v3751_v52  ;;  %v1540_v7 = vld [vmem:[%s6156_s10 + $0x40] sm:$0xff]  ;;  %v2472_v54 = vld [vmem:[%s6158_s14 + $0x50] sm:$0xff] }
 0x61e   :  { %3807 = vmatpush3.bf16.msra.mxu0 %v3751_v52  ;;  %3753 = vmatprep.subr.bf16.mxu1 %v6166_v44  ;;  %v1543_v52 = vld [vmem:[%s6156_s10 + $0x58] sm:$0xff] }
 0x61f   :  { %v3754_v49 = vpack.c.bf16 %v1515_v46, %v1514_v58  ;;  %v1542_v46 = vld [vmem:[%s6156_s10 + $0x50] sm:$0xff]  ;;  %v2474_v58 = vld [vmem:[%s6158_s14 + $0x60] sm:$0xff] }
 0x621   :  { %3755 = vmatpush1.bf16.msra.mxu1 %v3754_v49  ;;  %3809 = vmatprep.subr.bf16.mxu0 %v3754_v49 }
 0x622   :  { %3811 = vmatpush3.bf16.msra.mxu0 %v3754_v49  ;;  %3756 = vmatprep.subr.bf16.mxu1 %v6166_v44  ;;  %v1544_v49 = vld [vmem:[%s6156_s10 + $0x60] sm:$0xff] }
 0x623   :  { %3813 = vmatprep.subr.bf16.mxu0 %v3757_v10 }
 0x625   :  { %3758 = vmatpush1.bf16.msra.mxu1 %v3757_v10  ;;  %3390 = vmatmul.mubr.f32.vlgmr.msra.gmra.mrb[28].mxu0 %v2206_v63  ;;  %v1546_v63 = vld [vmem:[%s6156_s10 + $0x70] sm:$0xff] }
 0x626   :  { %3815 = vmatpush3.bf16.msra.mxu0 %v3757_v10  ;;  %3759 = vmatprep.subr.bf16.mxu1 %v6166_v44  ;;  %v2475_v10 = vld [vmem:[%s6158_s14 + $0x68] sm:$0xff] }
 0x627   :  { %3392 = vmatprep.mubr.f32.mxu0 %v2207_v53  ;;  %3817 = vmatprep.subr.bf16.mxu0 %v3760_v0  ;;  %v1549_v53 = vld [vmem:[%s6156_s10 + $0x88] sm:$0xff] }
 0x629   :  { %3761 = vmatpush1.bf16.msra.mxu1 %v3760_v0  ;;  %3393 = vmatmul.mubr.f32.gmra.mrb[30].mxu0 %v2208_v3  ;;  %v1550_v3 = vld [vmem:[%s6156_s10 + $0x90] sm:$0xff] }
 0x62a   :  { %3819 = vmatpush3.bf16.msra.mxu0 %v3760_v0  ;;  %3762 = vmatprep.subr.bf16.mxu1 %v6166_v44  ;;  %v2477_v0 = vld [vmem:[%s6158_s14 + $0x78] sm:$0xff] }
 0x62b   :  { %3395 = vmatprep.mubr.f32.mxu0 %v2209_v6  ;;  %3821 = vmatprep.subr.bf16.mxu0 %v3763_v5  ;;  %v1552_v6 = vld [vmem:[%s6156_s10 + $0xa0] sm:$0xff] }
 0x62d   :  { %3764 = vmatpush1.bf16.msra.mxu1 %v3763_v5  ;;  %3396 = vmatmul.mubr.f32.gmra.mrb[32].mxu0 %v2210_v11  ;;  %v1557_v11 = vld [vmem:[%s6156_s10 + $0xc8] sm:$0xff] }
 0x62e   :  { %3823 = vmatpush3.bf16.msra.mxu0 %v3763_v5  ;;  %3765 = vmatprep.subr.bf16.mxu1 %v6166_v44  ;;  %v1553_v5 = vld [vmem:[%s6156_s10 + $0xa8] sm:$0xff] }
 0x62f   :  { %3398 = vmatprep.mubr.f32.mxu0 %v2211_v16  ;;  %3825 = vmatprep.subr.bf16.mxu0 %v3766_v56  ;;  %v1559_v16 = vld [vmem:[%s6156_s10 + $0xd8] sm:$0xff] }
 0x631   :  { %3767 = vmatpush1.bf16.msra.mxu1 %v3766_v56  ;;  %3399 = vmatmul.mubr.f32.gmra.mrb[34].mxu0 %v2212_v15  ;;  %v1560_v15 = vld [vmem:[%s6156_s10 + $0xe0] sm:$0xff] }
 0x632   :  { %3827 = vmatpush3.bf16.msra.mxu0 %v3766_v56  ;;  %3768 = vmatprep.subr.bf16.mxu1 %v6166_v44  ;;  %v1556_v56 = vld [vmem:[%s6156_s10 + $0xc0] sm:$0xff] }
 0x633   :  { %3401 = vmatprep.mubr.f32.mxu0 %v2213_v18  ;;  %3829 = vmatprep.subr.bf16.mxu0 %v3769_v17  ;;  %v1562_v18 = vld [vmem:[%s6156_s10 + $0xf0] sm:$0xff] }
 0x635   :  { %3770 = vmatpush1.bf16.msra.mxu1 %v3769_v17  ;;  %3402 = vmatmul.mubr.f32.gmra.mrb[36].mxu0 %v2214_v20  ;;  %v1567_v20 = vld [vmem:[%s6156_s10 + $0x118] sm:$0xff] }
 0x636   :  { %3831 = vmatpush3.bf16.msra.mxu0 %v3769_v17  ;;  %3771 = vmatprep.subr.bf16.mxu1 %v6166_v44  ;;  %v1563_v17 = vld [vmem:[%s6156_s10 + $0xf8] sm:$0xff] }
 0x637   :  { %3404 = vmatprep.mubr.f32.mxu0 %v2215_v23  ;;  %3833 = vmatprep.subr.bf16.mxu0 %v3772_v21  ;;  %v1569_v23 = vld [vmem:[%s6156_s10 + $0x128] sm:$0xff] }
 0x639   :  { %3773 = vmatpush1.bf16.msra.mxu1 %v3772_v21  ;;  %3405 = vmatmul.mubr.f32.gmra.mrb[38].mxu0 %v2216_v27  ;;  %v1570_v27 = vld [vmem:[%s6156_s10 + $0x130] sm:$0xff] }
 0x63a   :  { %3835 = vmatpush3.bf16.msra.mxu0 %v3772_v21  ;;  %3774 = vmatprep.subr.bf16.mxu1 %v6166_v44  ;;  %v1566_v21 = vld [vmem:[%s6156_s10 + $0x110] sm:$0xff] }
 0x63b   :  { %3407 = vmatprep.mubr.f32.mxu0 %v2217_v22  ;;  %3837 = vmatprep.subr.bf16.mxu0 %v3775_v29  ;;  %v1572_v22 = vld [vmem:[%s6156_s10 + $0x140] sm:$0xff] }
 0x63d   :  { %3776 = vmatpush1.bf16.msra.mxu1 %v3775_v29  ;;  %3408 = vmatmul.mubr.f32.gmra.mrb[40].mxu0 %v2218_v31  ;;  %v1577_v31 = vld [vmem:[%s6156_s10 + $0x168] sm:$0xff] }
 0x63e   :  { %3839 = vmatpush3.bf16.msra.mxu0 %v3775_v29  ;;  %3777 = vmatprep.subr.bf16.mxu1 %v6166_v44  ;;  %v1573_v29 = vld [vmem:[%s6156_s10 + $0x148] sm:$0xff] }
 0x63f   :  { %3410 = vmatprep.mubr.f32.mxu0 %v2219_v25  ;;  %3841 = vmatprep.subr.bf16.mxu0 %v3778_v32  ;;  %v1579_v25 = vld [vmem:[%s6156_s10 + $0x178] sm:$0xff] }
 0x641   :  { %3779 = vmatpush1.bf16.msra.mxu1 %v3778_v32  ;;  %3411 = vmatmul.mubr.f32.gmra.mrb[42].mxu0 %v2220_v33  ;;  %v1578_v33 = vld [vmem:[%s6156_s10 + $0x170] sm:$0xff] }
 0x642   :  { %3843 = vmatpush3.bf16.msra.mxu0 %v3778_v32  ;;  %3445 = vmatprep.mubr.f32.mxu0 %v2462_v28  ;;  %v1576_v32 = vld [vmem:[%s6156_s10 + $0x160] sm:$0xff]  ;;  %v1581_v28 = vld [vmem:[%s6156_s10 + $0x188] sm:$0xff] }
 0x643   :  { %3844 = vmatprep.subr.bf16.mxu0 %v6166_v44 }
 0x644   :  { %1853 = vmatmul.mubr.f32.vlgmr.msra.gmra.mrb[64].mxu1 %v1532_v34  ;;  %v1580_v34 = vld [vmem:[%s6156_s10 + $0x180] sm:$0xff] }
 0x645   :  { %3446 = vmatmul.mubr.f32.vlgmr.msra.gmra.mrb[44].mxu0 %v2463_v35  ;;  %1857 = vmatprep.mubr.f32.mxu1 %v1535_v1  ;;  %v1583_v35 = vld [vmem:[%s6156_s10 + $0x198] sm:$0xff]  ;;  %v1582_v1 = vld [vmem:[%s6156_s10 + $0x190] sm:$0xff] }
 0x646   :  { %3448 = vmatprep.mubr.f32.mxu0 %v2464_v36  ;;  %v1585_v36 = vld [vmem:[%s6156_s10 + $0x1a8] sm:$0xff] }
 0x648   :  { %1858 = vmatmul.mubr.f32.gmra.mrb[66].mxu1 %v1534_v37  ;;  %v1584_v37 = vld [vmem:[%s6156_s10 + $0x1a0] sm:$0xff] }
 0x649   :  { %3449 = vmatmul.mubr.f32.gmra.mrb[46].mxu0 %v2465_v38  ;;  %1862 = vmatprep.mubr.f32.mxu1 %v1537_v39  ;;  %v1587_v38 = vld [vmem:[%s6156_s10 + $0x1b8] sm:$0xff]  ;;  %v1586_v39 = vld [vmem:[%s6156_s10 + $0x1b0] sm:$0xff] }
 0x64a   :  { %3451 = vmatprep.mubr.f32.mxu0 %v2466_v40  ;;  %v1589_v40 = vld [vmem:[%s6156_s10 + $0x1c8] sm:$0xff] }
 0x64c   :  { %1863 = vmatmul.mubr.f32.gmra.mrb[68].mxu1 %v1536_v41  ;;  %v5707_v41 = vpop.permute.xlu0 %1630 }
 0x64d   :  { %3452 = vmatmul.mubr.f32.gmra.mrb[48].mxu0 %v2467_v42  ;;  %1867 = vmatprep.mubr.f32.mxu1 %v1539_v43  ;;  %v1588_v42 = vld [vmem:[%s6156_s10 + $0x1c0] sm:$0xff]  ;;  %v1591_v43 = vld [vmem:[%s6156_s10 + $0x1d8] sm:$0xff] }
 0x64e   :  { %3454 = vmatprep.mubr.f32.mxu0 %v2468_v4  ;;  %v5715_v4 = vpop.permute.xlu1 %1635 }
 0x650   :  { %1868 = vmatmul.mubr.f32.gmra.mrb[70].mxu1 %v1538_v45  ;;  %v1590_v45 = vld [vmem:[%s6156_s10 + $0x1d0] sm:$0xff] }
 0x651   :  { %3455 = vmatmul.mubr.f32.gmra.mrb[50].mxu0 %v2469_v47  ;;  %1872 = vmatprep.mubr.f32.mxu1 %v1541_v48  ;;  %v1593_v47 = vld [vmem:[%s6156_s10 + $0x1e8] sm:$0xff]  ;;  %v5723_v48 = vpop.permute.xlu0 %1640 }
 0x652   :  { %3457 = vmatprep.mubr.f32.mxu0 %v2470_v50  ;;  %v1592_v50 = vld [vmem:[%s6156_s10 + $0x1e0] sm:$0xff] }
 0x654   :  { %1873 = vmatmul.mubr.f32.gmra.mrb[72].mxu1 %v1540_v7  ;;  %v1595_v7 = vld [vmem:[%s6156_s10 + $0x1f8] sm:$0xff] }
 0x655   :  { %3458 = vmatmul.mubr.f32.gmra.mrb[52].mxu0 %v2471_v51  ;;  %1877 = vmatprep.mubr.f32.mxu1 %v1543_v52  ;;  %v5731_v51 = vpop.permute.xlu1 %1645  ;;  %v5733_v52 = vpop.permute.xlu0 %1650 }
 0x656   :  { %3460 = vmatprep.mubr.f32.mxu0 %v2472_v54  ;;  %v1594_v54 = vld [vmem:[%s6156_s10 + $0x1f0] sm:$0xff] }
 0x658   :  { %1878 = vmatmul.mubr.f32.gmra.mrb[74].mxu1 %v1542_v46 }
 0x659   :  { %3461 = vmatmul.mubr.f32.gmra.mrb[54].mxu0 %v2473_v55  ;;  %1882 = vmatprep.mubr.f32.mxu1 %v1545_v57  ;;  %v5738_v46 = vpop.permute.xlu1 %1655  ;;  %v5740_v55 = vpop.permute.xlu0 %1660 }
 0x65a   :  { %3463 = vmatprep.mubr.f32.mxu0 %v2474_v58 }
 0x65c   :  { %1883 = vmatmul.mubr.f32.gmra.mrb[76].mxu1 %v1544_v49 }
 0x65d   :  { %3464 = vmatmul.mubr.f32.gmra.mrb[56].mxu0 %v2475_v10  ;;  %1887 = vmatprep.mubr.f32.mxu1 %v1547_v60  ;;  %v5742_v57 = vpop.permute.xlu1 %1665  ;;  %v5744_v58 = vpop.permute.xlu0 %1710 }
 0x65e   :  { %3466 = vmatprep.mubr.f32.mxu0 %v2476_v61 }
 0x660   :  { %1888 = vmatmul.mubr.f32.gmra.mrb[78].mxu1 %v1546_v63 }
 0x661   :  { %3467 = vmatmul.mubr.f32.gmra.mrb[58].mxu0 %v2477_v0  ;;  %1892 = vmatprep.mubr.f32.mxu1 %v1549_v53  ;;  %v5746_v49 = vpop.permute.xlu1 %1715  ;;  %v5748_v10 = vpop.permute.xlu0 %1670 }
 0x664   :  { %1893 = vmatmul.mubr.f32.gmra.mrb[80].mxu1 %v1548_v13 }
 0x665   :  { %1897 = vmatprep.mubr.f32.mxu1 %v1551_v2  ;;  %v5750_v60 = vpop.permute.xlu1 %1675  ;;  %v5752_v61 = vpop.permute.xlu0 %1720 }
 0x668   :  { %1898 = vmatmul.mubr.f32.gmra.mrb[82].mxu1 %v1550_v3 }
 0x669   :  { %1902 = vmatprep.mubr.f32.mxu1 %v1553_v5  ;;  %v5754_v63 = vpop.permute.xlu1 %1725  ;;  %v5756_v0 = vpop.permute.xlu0 %1680 }
 0x66a   :  { %6176 = vst [vmem:[#allocation2_spill] sm:$0xff] %v5754_v63 }
 0x66c   :  { %1903 = vmatmul.mubr.f32.gmra.mrb[84].mxu1 %v1552_v6 }
 0x66d   :  { %1907 = vmatprep.mubr.f32.mxu1 %v1555_v8  ;;  %v5758_v53 = vpop.permute.xlu1 %1685  ;;  %v5760_v13 = vpop.permute.xlu0 %1730 }
 0x66e   :  { %6177 = vst [vmem:[#allocation3_spill] sm:$0xff] %v5760_v13 }
 0x670   :  { %1908 = vmatmul.mubr.f32.gmra.mrb[86].mxu1 %v1554_v9 }
 0x671   :  { %1912 = vmatprep.mubr.f32.mxu1 %v1557_v11  ;;  %v5762_v2 = vpop.permute.xlu1 %1735  ;;  %v5764_v3 = vpop.permute.xlu0 %1690 }
 0x672   :  { %6178 = vst [vmem:[#allocation4_spill] sm:$0xff] %v5762_v2 }
 0x674   :  { %1913 = vmatmul.mubr.f32.gmra.mrb[88].mxu1 %v1556_v56 }
 0x675   :  { %1917 = vmatprep.mubr.f32.mxu1 %v1559_v16  ;;  %v5766_v5 = vpop.permute.xlu1 %1695  ;;  %v5768_v6 = vpop.permute.xlu0 %1740 }
 0x676   :  { %6179 = vst [vmem:[#allocation5_spill] sm:$0xff] %v5768_v6 }
 0x678   :  { %1918 = vmatmul.mubr.f32.gmra.mrb[90].mxu1 %v1558_v12 }
 0x679   :  { %1922 = vmatprep.mubr.f32.mxu1 %v1561_v14  ;;  %v5770_v8 = vpop.permute.xlu1 %1745  ;;  %v5772_v9 = vpop.permute.xlu0 %2496 }
 0x67a   :  { %6180 = vst [vmem:[#allocation6_spill] sm:$0xff] %v5770_v8 }
 0x67c   :  { %1923 = vmatmul.mubr.f32.gmra.mrb[92].mxu1 %v1560_v15 }
 0x67d   :  { %1927 = vmatprep.mubr.f32.mxu1 %v1563_v17  ;;  %v5774_v11 = vpop.permute.xlu1 %2501  ;;  %v5778_v16 = vpop.permute.xlu0 %1700 }
 0x680   :  { %1928 = vmatmul.mubr.f32.gmra.mrb[94].mxu1 %v1562_v18 }
 0x681   :  { %1932 = vmatprep.mubr.f32.mxu1 %v1565_v19  ;;  %v5784_v15 = vpop.permute.xlu1 %1705  ;;  %v5788_v18 = vpop.permute.xlu0 %2239 }
 0x684   :  { %1933 = vmatmul.mubr.f32.gmra.mrb[96].mxu1 %v1564_v59 }
 0x685   :  { %1937 = vmatprep.mubr.f32.mxu1 %v1567_v20  ;;  %v5794_v20 = vpop.permute.xlu1 %2244 }
 0x688   :  { %1938 = vmatmul.mubr.f32.gmra.mrb[98].mxu1 %v1566_v21 }
 0x689   :  { %1942 = vmatprep.mubr.f32.mxu1 %v1569_v23  ;;  %v5798_v23 = vpop.permute.xlu0 %1750 }
 0x68a   :  { %6181 = vst [vmem:[#allocation7_spill] sm:$0xff] %v5798_v23 }
 0x68c   :  { %1943 = vmatmul.mubr.f32.gmra.mrb[100].mxu1 %v1568_v24 }
 0x68d   :  { %1947 = vmatprep.mubr.f32.mxu1 %v1571_v26 }
 0x690   :  { %1948 = vmatmul.mubr.f32.gmra.mrb[102].mxu1 %v1570_v27  ;;  %v5804_v27 = vpop.permute.xlu1 %1755 }
 0x691   :  { %1952 = vmatprep.mubr.f32.mxu1 %v1573_v29  ;;  %6182 = vst [vmem:[#allocation8_spill] sm:$0xff] %v5804_v27 }
 0x694   :  { %1953 = vmatmul.mubr.f32.gmra.mrb[104].mxu1 %v1572_v22  ;;  %v5808_v22 = vpop.permute.xlu0 %2506 }
 0x695   :  { %1957 = vmatprep.mubr.f32.mxu1 %v1575_v30 }
 0x698   :  { %1958 = vmatmul.mubr.f32.gmra.mrb[106].mxu1 %v1574_v62 }
 0x699   :  { %1962 = vmatprep.mubr.f32.mxu1 %v1577_v31  ;;  %v5814_v31 = vpop.permute.xlu1 %2511 }
 0x69c   :  { %1963 = vmatmul.mubr.f32.gmra.mrb[108].mxu1 %v1576_v32 }
 0x69d   :  { %1967 = vmatprep.mubr.f32.mxu1 %v1579_v25  ;;  %v5818_v25 = vpop.permute.xlu0 %2249 }
 0x6a0   :  { %1968 = vmatmul.mubr.f32.gmra.mrb[110].mxu1 %v1578_v33 }
 0x6a1   :  { %1972 = vmatprep.mubr.f32.mxu1 %v1581_v28 }
 0x6a4   :  { %1973 = vmatmul.mubr.f32.gmra.mrb[112].mxu1 %v1580_v34  ;;  %v5824_v34 = vpop.permute.xlu1 %2254 }
 0x6a5   :  { %1977 = vmatprep.mubr.f32.mxu1 %v1583_v35 }
 0x6a8   :  { %1978 = vmatmul.mubr.f32.gmra.mrb[114].mxu1 %v1582_v1  ;;  %v5828_v1 = vpop.permute.xlu0 %1760 }
 0x6a9   :  { %1982 = vmatprep.mubr.f32.mxu1 %v1585_v36  ;;  %6188 = vst [vmem:[#allocation14_spill] sm:$0xff] %v5828_v1 }
 0x6ac   :  { %1983 = vmatmul.mubr.f32.gmra.mrb[116].mxu1 %v1584_v37 }
 0x6ad   :  { %1987 = vmatprep.mubr.f32.mxu1 %v1587_v38 }
 0x6b0   :  { %1988 = vmatmul.mubr.f32.gmra.mrb[118].mxu1 %v1586_v39 }
 0x6b1   :  { %1992 = vmatprep.mubr.f32.mxu1 %v1589_v40 }
 0x6b4   :  { %1993 = vmatmul.mubr.f32.gmra.mrb[120].mxu1 %v1588_v42 }
 0x6b5   :  { %1997 = vmatprep.mubr.f32.mxu1 %v1591_v43  ;;  %v5833_v43 = vpop.permute.xlu1 %1765 }
 0x6b6   :  { %6189 = vst [vmem:[#allocation15_spill] sm:$0xff] %v5833_v43 }
 0x6b8   :  { %1998 = vmatmul.mubr.f32.gmra.mrb[122].mxu1 %v1590_v45 }
 0x6b9   :  { %2002 = vmatprep.mubr.f32.mxu1 %v1593_v47  ;;  %v5845_v43 = vpop.permute.xlu1 %2521 }
 0x6bc   :  { %2003 = vmatmul.mubr.f32.gmra.mrb[124].mxu1 %v1592_v50 }
 0x6bd   :  { %2007 = vmatprep.mubr.f32.mxu1 %v1595_v7 }
 0x6c0   :  { %2008 = vmatmul.mubr.f32.gmra.mrb[126].mxu1 %v1594_v54  ;;  %v5838_v54 = vpop.permute.xlu0 %2516 }
 0x6f8   :  { %v5776_v56 = vpop.f32.mrb[28].mxu0 }
 0x6f9   :  { %v5780_v12 = vpop.f32.mrb[29].mxu0 }
 0x6fc   :  { %v5782_v14 = vpop.f32.mrb[30].mxu0 }
 0x6fd   :  { %v5786_v17 = vpop.f32.mrb[31].mxu0 }
 0x700   :  { %v5790_v19 = vpop.f32.mrb[32].mxu0 }
 0x701   :  { %v5792_v59 = vpop.f32.mrb[33].mxu0 }
 0x704   :  { %v5796_v21 = vpop.f32.mrb[34].mxu0 }
 0x705   :  { %v5800_v24 = vpop.f32.mrb[35].mxu0 }
 0x708   :  { %v5802_v26 = vpop.f32.mrb[36].mxu0 }
 0x709   :  { %v5806_v29 = vpop.f32.mrb[37].mxu0 }
 0x70c   :  { %v5810_v30 = vpop.f32.mrb[38].mxu0 }
 0x70d   :  { %6183 = vst [vmem:[#allocation9_spill] sm:$0xff] %v5810_v30  ;;  %v5812_v62 = vpop.f32.mrb[39].mxu0 }
 0x710   :  { %v5816_v32 = vpop.f32.mrb[40].mxu0 }
 0x711   :  { %6184 = vst [vmem:[#allocation10_spill] sm:$0xff] %v5816_v32  ;;  %v5820_v33 = vpop.f32.mrb[41].mxu0 }
 0x712   :  { %6185 = vst [vmem:[#allocation11_spill] sm:$0xff] %v5820_v33 }
 0x714   :  { %v5822_v28 = vpop.f32.mrb[42].mxu0 }
 0x715   :  { %6186 = vst [vmem:[#allocation12_spill] sm:$0xff] %v5822_v28  ;;  %v5826_v35 = vpop.f32.mrb[43].mxu0 }
 0x716   :  { %6187 = vst [vmem:[#allocation13_spill] sm:$0xff] %v5826_v35 }
 0x717   :  { %v1854_v36 = vpop.f32.mrb[64].mxu1 }
 0x718   :  { %v1855_v37 = vadd.f32 %v1854_v36, %v5707_v41  ;;  %v1856_v38 = vpop.f32.mrb[65].mxu1  ;;  %v5831_v39 = vpop.f32.mrb[44].mxu0 }
 0x719   :  { %v2640_v40 = vpop.f32.mrb[45].mxu0 }
 0x71a   :  { %v2938_v42 = vmul.f32 -1.442695, %v1855_v37 }
 0x71b   :  { %v1859_v45 = vpop.f32.mrb[66].mxu1 }
 0x71c   :  { %4106 = vpow2.f32 %v2938_v42  ;;  %v1860_v47 = vadd.f32 %v1859_v45, %v5715_v4  ;;  %v1861_v50 = vpop.f32.mrb[67].mxu1  ;;  %v5836_v7 = vpop.f32.mrb[46].mxu0 }
 0x71d   :  { %v5840_v44 = vpop.f32.mrb[47].mxu0  ;;  %v5849_v45 = vpop.permute.xlu0 %2259 }
 0x71e   :  { %v2939_v1 = vmul.f32 -1.442695, %v1860_v47 }
 0x71f   :  { %v1864_v41 = vpop.f32.mrb[68].mxu1 }
 0x720   :  { %4108 = vpow2.f32 %v2939_v1  ;;  %v1865_v36 = vadd.f32 %v1864_v41, %v5723_v48  ;;  %v1866_v38 = vpop.f32.mrb[69].mxu1  ;;  %v5843_v37 = vpop.f32.mrb[48].mxu0 }
 0x721   :  { %v5847_v42 = vpop.f32.mrb[49].mxu0  ;;  %v5856_v38 = vpop.permute.xlu1 %2264 }
 0x722   :  { %v2940_v4 = vmul.f32 -1.442695, %v1865_v36 }
 0x723   :  { %v1869_v50 = vpop.f32.mrb[70].mxu1 }
 0x724   :  { %4110 = vpow2.f32 %v2940_v4  ;;  %v1870_v27 = vadd.f32 %v1869_v50, %v5731_v51  ;;  %v1871_v23 = vpop.f32.mrb[71].mxu1  ;;  %v5852_v47 = vpop.f32.mrb[50].mxu0 }
 0x725   :  { %v5854_v1 = vpop.f32.mrb[51].mxu0  ;;  %v5861_v4 = vpop.permute.xlu0 %1770 }
 0x726   :  { %v4107_v48 = vpop.eup %4106  ;;  %v2941_v41 = vmul.f32 -1.442695, %v1870_v27  ;;  %6190 = vst [vmem:[#allocation16_spill] sm:$0xff] %v5861_v4 }
 0x727   :  { %v2109_v8 = vadd.f32 1.0, %v4107_v48  ;;  %v1874_v6 = vpop.f32.mrb[72].mxu1 }
 0x728   :  { %4112 = vpow2.f32 %v2941_v41  ;;  %v1875_v36 = vadd.f32 %v1874_v6, %v5733_v52  ;;  %v1876_v28 = vpop.f32.mrb[73].mxu1  ;;  %v5859_v35 = vpop.f32.mrb[52].mxu0 }
 0x729   :  { %4114 = vrcp.f32 %v2109_v8  ;;  %v5863_v51 = vpop.f32.mrb[53].mxu0  ;;  %v5868_v41 = vpop.permute.xlu1 %1775 }
 0x72a   :  { %v4109_v23 = vpop.eup %4108  ;;  %v2942_v50 = vmul.f32 -1.442695, %v1875_v36  ;;  %6191 = vst [vmem:[#allocation17_spill] sm:$0xff] %v5868_v41  ;;  %v5872_v8 = vpop.permute.xlu0 %2526 }
 0x72b   :  { %v2110_v2 = vadd.f32 1.0, %v4109_v23  ;;  %v1879_v32 = vpop.f32.mrb[74].mxu1 }
 0x72c   :  { %4116 = vpow2.f32 %v2942_v50  ;;  %v1880_v27 = vadd.f32 %v1879_v32, %v5738_v46  ;;  %v1881_v48 = vpop.f32.mrb[75].mxu1  ;;  %v5866_v13 = vpop.f32.mrb[54].mxu0 }
 0x72d   :  { %4118 = vrcp.f32 %v2110_v2  ;;  %v5870_v52 = vpop.f32.mrb[55].mxu0  ;;  %v2641_v2 = vadd.f32 %v2640_v40, %v5772_v9  ;;  %v5880_v63 = vpop.permute.xlu1 %2531 }
 0x72e   :  { %v4111_v6 = vpop.eup %4110  ;;  %v2943_v28 = vmul.f32 -1.442695, %v1880_v27  ;;  %v5889_v40 = vpop.permute.xlu0 %2269 }
 0x72f   :  { %v2111_v4 = vadd.f32 1.0, %v4111_v6  ;;  %v1884_v33 = vpop.f32.mrb[76].mxu1  ;;  %v2384_v6 = vadd.f32 %v5780_v12, %v5788_v18 }
 0x730   :  { %4120 = vpow2.f32 %v2943_v28  ;;  %v1885_v36 = vadd.f32 %v1884_v33, %v5740_v55  ;;  %v1886_v23 = vpop.f32.mrb[77].mxu1  ;;  %v5875_v50 = vpop.f32.mrb[56].mxu0 }
 0x731   :  { %6192 = vst [vmem:[#allocation18_spill] sm:$0xff] %v5875_v50  ;;  %4122 = vrcp.f32 %v2111_v4  ;;  %v5877_v46 = vpop.f32.mrb[57].mxu0 }
 0x732   :  { %v4113_v32 = vpop.eup %4112  ;;  %v2944_v48 = vmul.f32 -1.442695, %v1885_v36  ;;  %v2646_v36 = vadd.f32 %v5831_v39, %v5774_v11  ;;  %v2651_v11 = vadd.f32 %v5840_v44, %v5808_v22  ;;  %v2656_v44 = vadd.f32 %v5836_v7, %v5814_v31 }
 0x733   :  { %v4115_v41 = vpop.eup %4114  ;;  %v2112_v27 = vadd.f32 1.0, %v4113_v32  ;;  %v1889_v30 = vpop.f32.mrb[78].mxu1  ;;  %v2661_v31 = vadd.f32 %v5847_v42, %v5838_v54  ;;  %v2666_v54 = vadd.f32 %v5843_v37, %v5845_v43  ;;  %v2671_v43 = vadd.f32 %v5854_v1, %v5872_v8 }
 0x734   :  { %v2719_v28 = vmul.f32 %v4115_v41, %v2641_v2  ;;  %4124 = vpow2.f32 %v2944_v48  ;;  %v1890_v55 = vadd.f32 %v1889_v30, %v5742_v57  ;;  %v1891_v33 = vpop.f32.mrb[79].mxu1  ;;  %v5885_v4 = vpop.f32.mrb[58].mxu0  ;;  %v2389_v57 = vadd.f32 %v5776_v56, %v5794_v20 }
 0x735   :  { %6193 = vst [vmem:[#allocation19_spill] sm:$0xff] %v5885_v4  ;;  %4126 = vrcp.f32 %v2112_v27  ;;  %v5887_v23 = vpop.f32.mrb[59].mxu0  ;;  %v5898_v27 = vpop.permute.xlu1 %2274 }
 0x736   :  { %v4117_v9 = vpop.eup %4116  ;;  %v5893_v32 = vadd.f32 %v2719_v28, %v2384_v6  ;;  %v2945_v50 = vmul.f32 -1.442695, %v1890_v55  ;;  %v4301_v6 = vmov 0.0   ;;  %v5904_v55 = vpop.permute.xlu0 %1780 }
 0x737   :  { %v4119_v12 = vpop.eup %4118  ;;  %v2113_v18 = vadd.f32 1.0, %v4117_v9  ;;  %v1894_v41 = vpop.f32.mrb[80].mxu1  ;;  %3501 = vmatprep.mubr.msk.f32.mxu0 %vm4300_vm1, %v4301_v6 }
 0x738   :  { %v2720_v30 = vmul.f32 %v4119_v12, %v2646_v36  ;;  %v1895_v2 = vadd.f32 %v1894_v41, %v5748_v10  ;;  %v1896_v48 = vpop.f32.mrb[81].mxu1  ;;  %v2394_v10 = vadd.f32 %v5786_v17, %v5818_v25  ;;  %v2399_v17 = vadd.f32 %v5782_v14, %v5824_v34 }
 0x739   :  { %4128 = vrcp.f32 %v2113_v18 }
 0x73a   :  { %v4121_v33 = vpop.eup %4120  ;;  %v5900_v4 = vadd.f32 %v2720_v30, %v2389_v57  ;;  %4130 = vpow2.f32 %v2945_v50  ;;  %v2946_v39 = vmul.f32 -1.442695, %v1895_v2  ;;  %v5913_v57 = vpop.permute.xlu1 %1785 }
 0x73b   :  { %v4123_v28 = vpop.eup %4122  ;;  %v2114_v56 = vadd.f32 1.0, %v4121_v33  ;;  %v1899_v20 = vpop.f32.mrb[82].mxu1 }
 0x73c   :  { %v2721_v9 = vmul.f32 %v4123_v28, %v2651_v11  ;;  %v1900_v36 = vadd.f32 %v1899_v20, %v5750_v60  ;;  %v1901_v12 = vpop.f32.mrb[83].mxu1  ;;  %v2537_v33 = vpop.permute.xlu0 %2536 }
 0x73d   :  { %4132 = vrcp.f32 %v2114_v56  ;;  %v2404_v56 = vadd.f32 %v5792_v59, %v5849_v45  ;;  %v2409_v59 = vadd.f32 %v5790_v19, %v5856_v38  ;;  %v2414_v19 = vadd.f32 %v5800_v24, %v5889_v40 }
 0x73e   :  { %v4125_v18 = vpop.eup %4124  ;;  %v5911_v22 = vadd.f32 %v2721_v9, %v2394_v10  ;;  %4134 = vpow2.f32 %v2946_v39  ;;  %v2947_v50 = vmul.f32 -1.442695, %v1900_v36  ;;  %v5925_v20 = vpop.permute.xlu1 %2541 }
 0x73f   :  { %v4127_v41 = vpop.eup %4126  ;;  %v2115_v30 = vadd.f32 1.0, %v4125_v18  ;;  %v1904_v2 = vpop.f32.mrb[84].mxu1 }
 0x740   :  { %v2722_v25 = vmul.f32 %v4127_v41, %v2656_v44  ;;  %v1905_v60 = vadd.f32 %v1904_v2, %v5756_v0  ;;  %v1906_v48 = vpop.f32.mrb[85].mxu1  ;;  %v2280_v44 = vpop.permute.xlu0 %2279 }
 0x741   :  { %4136 = vrcp.f32 %v2115_v30 }
 0x742   :  { %v5920_v7 = vadd.f32 %v2722_v25, %v2399_v17  ;;  %4138 = vpow2.f32 %v2947_v50  ;;  %v2948_v11 = vmul.f32 -1.442695, %v1905_v60  ;;  %v2285_v17 = vpop.permute.xlu1 %2284 }
 0x743   :  { %v4129_v39 = vpop.eup %4128  ;;  %v1909_v6 = vpop.f32.mrb[86].mxu1 }
 0x744   :  { %v4131_v28 = vpop.eup %4130  ;;  %v2723_v14 = vmul.f32 %v4129_v39, %v2661_v31  ;;  %v1910_v34 = vadd.f32 %v1909_v6, %v5758_v53  ;;  %v1911_v0 = vpop.f32.mrb[87].mxu1  ;;  %4140 = vpow2.f32 %v2948_v11 }
 0x745   :  { %v2116_v10 = vadd.f32 1.0, %v4131_v28  ;;  %v2547_v11 = vpop.permute.xlu0 %2546  ;;  %v2676_v28 = vadd.f32 %v5852_v47, %v5880_v63 }
 0x746   :  { %v5929_v42 = vadd.f32 %v2723_v14, %v2404_v56  ;;  %v2949_v9 = vmul.f32 -1.442695, %v1910_v34  ;;  %v2552_v34 = vpop.permute.xlu1 %2551 }
 0x747   :  { %v4133_v36 = vpop.eup %4132  ;;  %4142 = vrcp.f32 %v2116_v10  ;;  %v1914_v12 = vpop.f32.mrb[88].mxu1 }
 0x748   :  { %v4135_v18 = vpop.eup %4134  ;;  %v2724_v53 = vmul.f32 %v4133_v36, %v2666_v54  ;;  %v1915_v45 = vadd.f32 %v1914_v12, %v5764_v3  ;;  %v1916_v50 = vpop.f32.mrb[89].mxu1  ;;  %4144 = vpow2.f32 %v2949_v9  ;;  %v2681_v9 = vadd.f32 %v5863_v51, %v2537_v33 }
 0x749   :  { %v2117_v41 = vadd.f32 1.0, %v4135_v18  ;;  %v2290_v12 = vpop.permute.xlu0 %2289 }
 0x74a   :  { %v5936_v37 = vadd.f32 %v2724_v53, %v2409_v59  ;;  %v2950_v30 = vmul.f32 -1.442695, %v1915_v45  ;;  %v2424_v53 = vadd.f32 %v5806_v29, %v2280_v44  ;;  %v2295_v50 = vpop.permute.xlu1 %2294  ;;  %v2429_v29 = vadd.f32 %v5802_v26, %v2285_v17 }
 0x74b   :  { %v4137_v2 = vpop.eup %4136  ;;  %4146 = vrcp.f32 %v2117_v41  ;;  %v1919_v25 = vpop.f32.mrb[90].mxu1  ;;  %v2686_v41 = vadd.f32 %v5859_v35, %v5925_v20 }
 0x74c   :  { %v4139_v60 = vpop.eup %4138  ;;  %v2725_v38 = vmul.f32 %v4137_v2, %v2671_v43  ;;  %v1920_v3 = vadd.f32 %v1919_v25, %v5766_v5  ;;  %v1921_v48 = vpop.f32.mrb[91].mxu1  ;;  %4148 = vpow2.f32 %v2950_v30  ;;  %v2419_v5 = vadd.f32 %v5796_v21, %v5898_v27 }
 0x74d   :  { %v2118_v31 = vadd.f32 1.0, %v4139_v60  ;;  %v2557_v25 = vpop.permute.xlu0 %2556 }
 0x74e   :  { %v5941_v39 = vadd.f32 %v2725_v38, %v2414_v19  ;;  %v2951_v1 = vmul.f32 -1.442695, %v1920_v3  ;;  %v4141_v8 = vpop.eup %4140  ;;  %v2691_v38 = vadd.f32 %v5870_v52, %v2547_v11 }
 0x74f   :  { %4150 = vrcp.f32 %v2118_v31  ;;  %v1924_v6 = vpop.f32.mrb[92].mxu1  ;;  %v2119_v56 = vadd.f32 1.0, %v4141_v8  ;;  %v2434_v8 = vadd.f32 %v5812_v62, %v2290_v12 }
 0x750   :  { %v1925_v14 = vadd.f32 %v1924_v6, %v5778_v16  ;;  %v1926_v24 = vpop.f32.mrb[93].mxu1  ;;  %4152 = vpow2.f32 %v2951_v1  ;;  %v2562_v1 = vpop.permute.xlu1 %2561 }
 0x751   :  { %v4143_v40 = vpop.eup %4142  ;;  %4154 = vrcp.f32 %v2119_v56  ;;  %v2300_v56 = vpop.permute.xlu0 %2299 }
 0x752   :  { %v2726_v0 = vmul.f32 %v4143_v40, %v2676_v28  ;;  %v2952_v10 = vmul.f32 -1.442695, %v1925_v14  ;;  %v4145_v54 = vpop.eup %4144  ;;  %v2696_v14 = vadd.f32 %v5866_v13, %v2552_v34  ;;  %v6195_v13 = vld [vmem:[#allocation2_spill] sm:$0xff] }
 0x753   :  { %v1929_v36 = vpop.f32.mrb[94].mxu1  ;;  %v2120_v63 = vadd.f32 1.0, %v4145_v54 }
 0x754   :  { %v5949_v18 = vadd.f32 %v2726_v0, %v2419_v5  ;;  %4156 = vpow2.f32 %v2952_v10  ;;  %v1930_v16 = vadd.f32 %v1929_v36, %v5784_v15  ;;  %v1931_v47 = vpop.f32.mrb[95].mxu1  ;;  %v6194_v0 = vld [vmem:[#allocation9_spill] sm:$0xff] }
 0x755   :  { %v4147_v59 = vpop.eup %4146  ;;  %4158 = vrcp.f32 %v2120_v63  ;;  %v2439_v10 = vadd.f32 %v6194_v0, %v2295_v50  ;;  %v2701_v63 = vadd.f32 %v5877_v46, %v2557_v25  ;;  %v6198_v46 = vld [vmem:[#allocation3_spill] sm:$0xff] }
 0x756   :  { %v2727_v45 = vmul.f32 %v4147_v59, %v2681_v9  ;;  %v2953_v21 = vmul.f32 -1.442695, %v1930_v16  ;;  %v4149_v27 = vpop.eup %4148  ;;  %v2305_v9 = vpop.permute.xlu1 %2304 }
 0x757   :  { %v1934_v51 = vpop.f32.mrb[96].mxu1  ;;  %v2121_v43 = vadd.f32 1.0, %v4149_v27 }
 0x758   :  { %v5955_v33 = vadd.f32 %v2727_v45, %v2424_v53  ;;  %4160 = vpow2.f32 %v2953_v21  ;;  %v1935_v30 = vadd.f32 %v1934_v51, %v5744_v58  ;;  %v1936_v15 = vpop.f32.mrb[97].mxu1  ;;  %v2567_v53 = vpop.permute.xlu0 %2566  ;;  %v6196_v45 = vld [vmem:[#allocation11_spill] sm:$0xff] }
 0x759   :  { %v4151_v2 = vpop.eup %4150  ;;  %4162 = vrcp.f32 %v2121_v43  ;;  %v2444_v21 = vadd.f32 %v6196_v45, %v2300_v56  ;;  %v6197_v43 = vld [vmem:[#allocation18_spill] sm:$0xff] }
 0x75a   :  { %v2728_v44 = vmul.f32 %v4151_v2, %v2686_v41  ;;  %v2954_v60 = vmul.f32 -1.442695, %v1935_v30  ;;  %v4153_v19 = vpop.eup %4152  ;;  %v2706_v30 = vadd.f32 %v6197_v43, %v2562_v1 }
 0x75b   :  { %v1939_v35 = vpop.f32.mrb[98].mxu1  ;;  %v4155_v20 = vpop.eup %4154  ;;  %v2122_v48 = vadd.f32 1.0, %v4153_v19  ;;  %v6199_v19 = vld [vmem:[#allocation10_spill] sm:$0xff] }
 0x75c   :  { %v5960_v3 = vadd.f32 %v2728_v44, %v2429_v29  ;;  %4164 = vpow2.f32 %v2954_v60  ;;  %v1940_v31 = vadd.f32 %v1939_v35, %v5746_v49  ;;  %v1941_v58 = vpop.f32.mrb[99].mxu1  ;;  %v2729_v6 = vmul.f32 %v4155_v20, %v2691_v38  ;;  %v2572_v44 = vpop.permute.xlu1 %2571 }
 0x75d   :  { %4166 = vrcp.f32 %v2122_v48  ;;  %v2449_v38 = vadd.f32 %v6199_v19, %v2305_v9  ;;  %v2711_v48 = vadd.f32 %v5887_v23, %v2567_v53 }
 0x75e   :  { %v4157_v26 = vpop.eup %4156  ;;  %v2955_v17 = vmul.f32 -1.442695, %v1940_v31  ;;  %v5964_v28 = vadd.f32 %v2729_v6, %v2434_v8  ;;  %v2310_v8 = vpop.permute.xlu0 %2309 }
 0x75f   :  { %v2123_v52 = vadd.f32 1.0, %v4157_v26  ;;  %v1944_v11 = vpop.f32.mrb[100].mxu1  ;;  %v4159_v49 = vpop.eup %4158  ;;  %v6200_v26 = vld [vmem:[#allocation4_spill] sm:$0xff] }
 0x760   :  { %4168 = vpow2.f32 %v2955_v17  ;;  %v1945_v24 = vadd.f32 %v1944_v11, %v5752_v61  ;;  %v1946_v40 = vpop.f32.mrb[101].mxu1  ;;  %v2730_v62 = vmul.f32 %v4159_v49, %v2696_v14  ;;  %v6201_v11 = vld [vmem:[#allocation13_spill] sm:$0xff]  ;;  %v2315_v23 = vpop.permute.xlu1 %2314 }
 0x761   :  { %4170 = vrcp.f32 %v2123_v52  ;;  %v2454_v56 = vadd.f32 %v6201_v11, %v2310_v8  ;;  %v6202_v40 = vld [vmem:[#allocation19_spill] sm:$0xff] }
 0x762   :  { %v4161_v5 = vpop.eup %4160  ;;  %v2956_v54 = vmul.f32 -1.442695, %v1945_v24  ;;  %v5970_v16 = vadd.f32 %v2730_v62, %v2439_v10  ;;  %v2716_v49 = vadd.f32 %v6202_v40, %v2572_v44  ;;  %v6206_v44 = vld [vmem:[#allocation7_spill] sm:$0xff] }
 0x763   :  { %v2124_v36 = vadd.f32 1.0, %v4161_v5  ;;  %v1949_v12 = vpop.f32.mrb[102].mxu1  ;;  %v4163_v61 = vpop.eup %4162 }
 0x764   :  { %4172 = vpow2.f32 %v2956_v54  ;;  %v1950_v34 = vadd.f32 %v1949_v12, %v6195_v13  ;;  %v1951_v47 = vpop.f32.mrb[103].mxu1  ;;  %v2731_v27 = vmul.f32 %v4163_v61, %v2701_v63  ;;  %v6203_v54 = vld [vmem:[#allocation12_spill] sm:$0xff]  ;;  %v6204_v12 = vld [vmem:[#allocation5_spill] sm:$0xff] }
 0x765   :  { %4174 = vrcp.f32 %v2124_v36  ;;  %v2459_v9 = vadd.f32 %v6203_v54, %v2315_v23 }
 0x766   :  { %v4165_v59 = vpop.eup %4164  ;;  %v2957_v50 = vmul.f32 -1.442695, %v1950_v34  ;;  %v5975_v15 = vadd.f32 %v2731_v27, %v2444_v21 }
 0x767   :  { %v2125_v41 = vadd.f32 1.0, %v4165_v59  ;;  %v1954_v51 = vpop.f32.mrb[104].mxu1  ;;  %v4167_v29 = vpop.eup %4166 }
 0x768   :  { %4176 = vpow2.f32 %v2957_v50  ;;  %v1955_v2 = vadd.f32 %v1954_v51, %v6198_v46  ;;  %v1956_v25 = vpop.f32.mrb[105].mxu1  ;;  %v2732_v35 = vmul.f32 %v4167_v29, %v2706_v30  ;;  %v4266_v29 = vld [vmem:[%s6157_s1] sm:$0xff] }
 0x769   :  { %4178 = vrcp.f32 %v2125_v41 }
 0x76a   :  { %v4169_v60 = vpop.eup %4168  ;;  %v2958_v20 = vmul.f32 -1.442695, %v1955_v2  ;;  %4180 = vtanh.f32 %v5893_v32  ;;  %v5981_v6 = vadd.f32 %v2732_v35, %v2449_v38 }
 0x76b   :  { %v2126_v31 = vadd.f32 1.0, %v4169_v60  ;;  %v1959_v58 = vpop.f32.mrb[106].mxu1  ;;  %v4171_v1 = vpop.eup %4170 }
 0x76c   :  { %4182 = vpow2.f32 %v2958_v20  ;;  %v1960_v17 = vadd.f32 %v1959_v58, %v6200_v26  ;;  %v1961_v52 = vpop.f32.mrb[107].mxu1  ;;  %v2733_v14 = vmul.f32 %v4171_v1, %v2711_v48 }
 0x76d   :  { %4184 = vrcp.f32 %v2126_v31  ;;  %v6207_v52 = vld [vmem:[#allocation8_spill] sm:$0xff] }
 0x76e   :  { %v4173_v24 = vpop.eup %4172  ;;  %v2959_v32 = vmul.f32 -1.442695, %v1960_v17  ;;  %4186 = vtanh.f32 %v5900_v4  ;;  %v5987_v0 = vadd.f32 %v2733_v14, %v2454_v56  ;;  %v6205_v4 = vld [vmem:[#allocation6_spill] sm:$0xff] }
 0x76f   :  { %v4175_v5 = vpop.eup %4174  ;;  %v2127_v10 = vadd.f32 1.0, %v4173_v24  ;;  %v1964_v62 = vpop.f32.mrb[108].mxu1 }
 0x770   :  { %v2734_v36 = vmul.f32 %v4175_v5, %v2716_v49  ;;  %4188 = vpow2.f32 %v2959_v32  ;;  %v1965_v63 = vadd.f32 %v1964_v62, %v6204_v12  ;;  %v1966_v13 = vpop.f32.mrb[109].mxu1 }
 0x771   :  { %4190 = vrcp.f32 %v2127_v10 }
 0x772   :  { %v4177_v34 = vpop.eup %4176  ;;  %v5991_v47 = vadd.f32 %v2734_v36, %v2459_v9  ;;  %v2960_v61 = vmul.f32 -1.442695, %v1965_v63  ;;  %4192 = vtanh.f32 %v5911_v22  ;;  %v6208_v9 = vld [vmem:[#allocation14_spill] sm:$0xff] }
 0x773   :  { %v4179_v59 = vpop.eup %4178  ;;  %v2128_v53 = vadd.f32 1.0, %v4177_v34  ;;  %v1969_v45 = vpop.f32.mrb[110].mxu1 }
 0x774   :  { %v1970_v21 = vadd.f32 %v1969_v45, %v6205_v4  ;;  %v1971_v27 = vpop.f32.mrb[111].mxu1  ;;  %v2767_v50 = vsub.f32 1.0, %v4179_v59  ;;  %v4181_v41 = vpop.eup %4180  ;;  %v2799_v22 = vmul.f32 %v4266_v29, %v4179_v59 }
 0x775   :  { %4194 = vrcp.f32 %v2128_v53 }
 0x776   :  { %v4183_v51 = vpop.eup %4182  ;;  %4196 = vpow2.f32 %v2960_v61  ;;  %v2961_v43 = vmul.f32 -1.442695, %v1970_v21  ;;  %v2783_v30 = vmul.f32 %v4181_v41, %v2767_v50  ;;  %v6209_v61 = vmov 0.0|0.0  }
 0x777   :  { %v4185_v46 = vpop.eup %4184  ;;  %4198 = vtanh.f32 %v5920_v7  ;;  %v2129_v2 = vadd.f32 1.0, %v4183_v51  ;;  %v1974_v25 = vpop.f32.mrb[112].mxu1  ;;  %v4267_v7 = vld [vmem:[%s6157_s1 + $0x8] sm:$0xff] }
 0x778   :  { %4200 = vpow2.f32 %v2961_v43  ;;  %v1975_v60 = vadd.f32 %v1974_v25, %v6206_v44  ;;  %v1976_v19 = vpop.f32.mrb[113].mxu1  ;;  %v2768_v38 = vsub.f32 1.0, %v4185_v46  ;;  %v4187_v35 = vpop.eup %4186  ;;  %v2815_v20 = vadd.f32 %v2799_v22, %v2783_v30  ;;  %v6210_v51 = vld [vmem:[#allocation15_spill] sm:$0xff] }
 0x779   :  { %4202 = vrcp.f32 %v2129_v2  ;;  %v2800_v1 = vmul.f32 %v4267_v7, %v4185_v46 }
 0x77a   :  { %v4189_v48 = vpop.eup %4188  ;;  %v2962_v31 = vmul.f32 -1.442695, %v1975_v60  ;;  %v2784_v58 = vmul.f32 %v4187_v35, %v2768_v38  ;;  %4204 = vtanh.f32 %v5929_v42  ;;  %2910 = vst.msk [vmem:[%s6159_s19] sm:$0xff] %vm2908_vm2, %v2815_v20 }
 0x77b   :  { %v2130_v8 = vadd.f32 1.0, %v4189_v48  ;;  %v1979_v26 = vpop.f32.mrb[114].mxu1  ;;  %v4191_v17 = vpop.eup %4190  ;;  %v6211_v48 = vld [vmem:[#allocation16_spill] sm:$0xff] }
 0x77c   :  { %4206 = vpow2.f32 %v2962_v31  ;;  %v1980_v11 = vadd.f32 %v1979_v26, %v6207_v52  ;;  %v1981_v56 = vpop.f32.mrb[115].mxu1  ;;  %v2816_v14 = vadd.f32 %v2800_v1, %v2784_v58  ;;  %v2769_v24 = vsub.f32 1.0, %v4191_v17  ;;  %v4193_v40 = vpop.eup %4192 }
 0x77d   :  { %4208 = vrcp.f32 %v2130_v8 }
 0x77e   :  { %v2963_v49 = vmul.f32 -1.442695, %v1980_v11  ;;  %v3845_v32 = vpack.c.bf16 %v2816_v14, %v2815_v20  ;;  %2911 = vst.msk [vmem:[%s6159_s19 + $0x8] sm:$0xff] %vm2908_vm2, %v2816_v14  ;;  %4210 = vtanh.f32 %v5936_v37  ;;  %v2785_v23 = vmul.f32 %v4193_v40, %v2769_v24  ;;  %v6212_v40 = vld [vmem:[#allocation17_spill] sm:$0xff] }
 0x77f   :  { %v4195_v42 = vpop.eup %4194  ;;  %v1984_v5 = vpop.f32.mrb[116].mxu1 }
 0x780   :  { %v4197_v54 = vpop.eup %4196  ;;  %4212 = vpow2.f32 %v2963_v49  ;;  %v1985_v36 = vadd.f32 %v1984_v5, %v6208_v9  ;;  %v1986_v12 = vpop.f32.mrb[117].mxu1  ;;  %3846 = vmatpush3.bf16.msra.mxu0 %v3845_v32  ;;  %v2770_v63 = vsub.f32 1.0, %v4195_v42 }
 0x781   :  { %v4199_v13 = vpop.eup %4198  ;;  %v2131_v34 = vadd.f32 1.0, %v4197_v54  ;;  %3847 = vmatprep.subr.bf16.mxu0 %v6209_v61  ;;  %4214 = vtanh.f32 %v5941_v39 }
 0x782   :  { %v4201_v37 = vpop.eup %4200  ;;  %v2964_v53 = vmul.f32 -1.442695, %v1985_v36  ;;  %v2786_v45 = vmul.f32 %v4199_v13, %v2770_v63 }
 0x783   :  { %v4203_v27 = vpop.eup %4202  ;;  %4216 = vrcp.f32 %v2131_v34  ;;  %v2132_v50 = vadd.f32 1.0, %v4201_v37  ;;  %v1989_v41 = vpop.f32.mrb[118].mxu1 }
 0x784   :  { %4218 = vpow2.f32 %v2964_v53  ;;  %v1990_v43 = vadd.f32 %v1989_v41, %v6210_v51  ;;  %v1991_v39 = vpop.f32.mrb[119].mxu1  ;;  %v2771_v46 = vsub.f32 1.0, %v4203_v27  ;;  %v4205_v2 = vpop.eup %4204 }
 0x785   :  { %v4268_v10 = vld [vmem:[%s6157_s1 + $0x10] sm:$0xff]  ;;  %v4269_v4 = vld [vmem:[%s6157_s1 + $0x18] sm:$0xff]  ;;  %4220 = vrcp.f32 %v2132_v50 }
 0x786   :  { %v2801_v62 = vmul.f32 %v4268_v10, %v4191_v17  ;;  %v2802_v21 = vmul.f32 %v4269_v4, %v4195_v42  ;;  %v4207_v25 = vpop.eup %4206  ;;  %v2965_v29 = vmul.f32 -1.442695, %v1990_v43  ;;  %v2787_v44 = vmul.f32 %v4205_v2, %v2771_v46 }
 0x787   :  { %v4209_v60 = vpop.eup %4208  ;;  %4222 = vtanh.f32 %v5949_v18  ;;  %v2133_v19 = vadd.f32 1.0, %v4207_v25  ;;  %v1994_v38 = vpop.f32.mrb[120].mxu1 }
 0x788   :  { %v2817_v59 = vadd.f32 %v2801_v62, %v2785_v23  ;;  %v2818_v30 = vadd.f32 %v2802_v21, %v2786_v45  ;;  %4224 = vpow2.f32 %v2965_v29  ;;  %v1995_v31 = vadd.f32 %v1994_v38, %v6211_v48  ;;  %v1996_v58 = vpop.f32.mrb[121].mxu1  ;;  %v4211_v1 = vpop.eup %4210 }
 0x789   :  { %v2772_v7 = vsub.f32 1.0, %v4209_v60  ;;  %4226 = vrcp.f32 %v2133_v19 }
 0x78a   :  { %2912 = vst.msk [vmem:[%s6159_s19 + $0x10] sm:$0xff] %vm2908_vm2, %v2817_v59  ;;  %v3848_v22 = vpack.c.bf16 %v2818_v30, %v2817_v59  ;;  %2913 = vst.msk [vmem:[%s6159_s19 + $0x18] sm:$0xff] %vm2908_vm2, %v2818_v30  ;;  %v4213_v26 = vpop.eup %4212  ;;  %v2966_v18 = vmul.f32 -1.442695, %v1995_v31  ;;  %4228 = vtanh.f32 %v5955_v33 }
 0x78b   :  { %v2788_v17 = vmul.f32 %v4211_v1, %v2772_v7  ;;  %v2134_v56 = vadd.f32 1.0, %v4213_v26  ;;  %v1999_v14 = vpop.f32.mrb[122].mxu1  ;;  %v4215_v24 = vpop.eup %4214 }
 0x78c   :  { %3849 = vmatpush3.bf16.msra.mxu0 %v3848_v22  ;;  %4230 = vpow2.f32 %v2966_v18  ;;  %v2000_v49 = vadd.f32 %v1999_v14, %v6212_v40  ;;  %v2001_v32 = vpop.f32.mrb[123].mxu1 }
 0x78d   :  { %3850 = vmatprep.subr.bf16.mxu0 %v6209_v61  ;;  %v4217_v5 = vpop.eup %4216  ;;  %4232 = vrcp.f32 %v2134_v56 }
 0x78e   :  { %v4219_v23 = vpop.eup %4218  ;;  %v2967_v10 = vmul.f32 -1.442695, %v2000_v49  ;;  %v2773_v33 = vsub.f32 1.0, %v4217_v5  ;;  %4234 = vtanh.f32 %v5960_v3 }
 0x78f   :  { %v4221_v54 = vpop.eup %4220  ;;  %v2135_v9 = vadd.f32 1.0, %v4219_v23  ;;  %v2004_v36 = vpop.f32.mrb[124].mxu1 }
 0x790   :  { %4236 = vpow2.f32 %v2967_v10  ;;  %v2005_v13 = vadd.f32 %v2004_v36, %v5904_v55  ;;  %v2006_v34 = vpop.f32.mrb[125].mxu1  ;;  %v2774_v59 = vsub.f32 1.0, %v4221_v54  ;;  %v2789_v37 = vmul.f32 %v4215_v24, %v2773_v33 }
 0x791   :  { %v4270_v35 = vld [vmem:[%s6157_s1 + $0x20] sm:$0xff]  ;;  %v4271_v52 = vld [vmem:[%s6157_s1 + $0x28] sm:$0xff]  ;;  %v4223_v53 = vpop.eup %4222  ;;  %4238 = vrcp.f32 %v2135_v9 }
 0x792   :  { %v2803_v20 = vmul.f32 %v4270_v35, %v4203_v27  ;;  %v2804_v11 = vmul.f32 %v4271_v52, %v4209_v60  ;;  %v4225_v45 = vpop.eup %4224  ;;  %v2968_v3 = vmul.f32 -1.442695, %v2005_v13  ;;  %v2790_v4 = vmul.f32 %v4223_v53, %v2774_v59 }
 0x793   :  { %v4227_v41 = vpop.eup %4226  ;;  %4240 = vtanh.f32 %v5964_v28  ;;  %v2136_v55 = vadd.f32 1.0, %v4225_v45  ;;  %v2009_v51 = vpop.f32.mrb[126].mxu1 }
 0x794   :  { %v2819_v8 = vadd.f32 %v2803_v20, %v2787_v44  ;;  %v2820_v42 = vadd.f32 %v2804_v11, %v2788_v17  ;;  %4242 = vpow2.f32 %v2968_v3  ;;  %v2010_v43 = vadd.f32 %v2009_v51, %v5913_v57  ;;  %v2011_v39 = vpop.f32.mrb[127].mxu1  ;;  %v4229_v2 = vpop.eup %4228 }
 0x795   :  { %v2775_v46 = vsub.f32 1.0, %v4227_v41  ;;  %4244 = vrcp.f32 %v2136_v55 }
 0x796   :  { %2914 = vst.msk [vmem:[%s6159_s19 + $0x20] sm:$0xff] %vm2908_vm2, %v2819_v8  ;;  %v3851_v62 = vpack.c.bf16 %v2820_v42, %v2819_v8  ;;  %2915 = vst.msk [vmem:[%s6159_s19 + $0x28] sm:$0xff] %vm2908_vm2, %v2820_v42  ;;  %v4231_v25 = vpop.eup %4230  ;;  %v2969_v29 = vmul.f32 -1.442695, %v2010_v43  ;;  %4246 = vtanh.f32 %v5970_v16 }
 0x797   :  { %v2791_v28 = vmul.f32 %v4229_v2, %v2775_v46  ;;  %v4233_v60 = vpop.eup %4232  ;;  %v2137_v19 = vadd.f32 1.0, %v4231_v25 }
 0x798   :  { %3852 = vmatpush3.bf16.msra.mxu0 %v3851_v62  ;;  %4248 = vpow2.f32 %v2969_v29  ;;  %v2776_v38 = vsub.f32 1.0, %v4233_v60  ;;  %v4235_v20 = vpop.eup %4234 }
 0x799   :  { %3853 = vmatprep.subr.bf16.mxu0 %v6209_v61  ;;  %4250 = vrcp.f32 %v2137_v19 }
 0x79a   :  { %v4237_v48 = vpop.eup %4236  ;;  %v2792_v31 = vmul.f32 %v4235_v20, %v2776_v38  ;;  %4252 = vtanh.f32 %v5975_v15 }
 0x79b   :  { %v4239_v16 = vpop.eup %4238  ;;  %v2138_v1 = vadd.f32 1.0, %v4237_v48 }
 0x79c   :  { %v2777_v26 = vsub.f32 1.0, %v4239_v16 }
 0x79d   :  { %v4272_v12 = vld [vmem:[%s6157_s1 + $0x30] sm:$0xff]  ;;  %v4273_v21 = vld [vmem:[%s6157_s1 + $0x38] sm:$0xff]  ;;  %v4241_v18 = vpop.eup %4240  ;;  %4254 = vrcp.f32 %v2138_v1 }
 0x79e   :  { %v2805_v63 = vmul.f32 %v4272_v12, %v4217_v5  ;;  %v2806_v27 = vmul.f32 %v4273_v21, %v4221_v54  ;;  %v4243_v17 = vpop.eup %4242  ;;  %v2793_v11 = vmul.f32 %v4241_v18, %v2777_v26  ;;  %4256 = vtanh.f32 %v5981_v6 }
 0x79f   :  { %v4245_v24 = vpop.eup %4244  ;;  %v2139_v15 = vadd.f32 1.0, %v4243_v17 }
 0x7a0   :  { %v2821_v50 = vadd.f32 %v2805_v63, %v2789_v37  ;;  %v2822_v30 = vadd.f32 %v2806_v27, %v2790_v4  ;;  %v2778_v40 = vsub.f32 1.0, %v4245_v24  ;;  %v4247_v32 = vpop.eup %4246 }
 0x7a1   :  { %4258 = vrcp.f32 %v2139_v15 }
 0x7a2   :  { %2916 = vst.msk [vmem:[%s6159_s19 + $0x30] sm:$0xff] %vm2908_vm2, %v2821_v50  ;;  %v3854_v22 = vpack.c.bf16 %v2822_v30, %v2821_v50  ;;  %2917 = vst.msk [vmem:[%s6159_s19 + $0x38] sm:$0xff] %vm2908_vm2, %v2822_v30  ;;  %v4249_v42 = vpop.eup %4248  ;;  %v2794_v5 = vmul.f32 %v4247_v32, %v2778_v40  ;;  %4260 = vtanh.f32 %v5987_v0 }
 0x7a3   :  { %v4251_v6 = vpop.eup %4250  ;;  %v2140_v62 = vadd.f32 1.0, %v4249_v42 }
 0x7a4   :  { %3855 = vmatpush3.bf16.msra.mxu0 %v3854_v22  ;;  %v2779_v54 = vsub.f32 1.0, %v4251_v6  ;;  %v4253_v9 = vpop.eup %4252 }
 0x7a5   :  { %3856 = vmatprep.subr.bf16.mxu0 %v6209_v61  ;;  %4262 = vrcp.f32 %v2140_v62 }
 0x7a6   :  { %v2795_v12 = vmul.f32 %v4253_v9, %v2779_v54  ;;  %4264 = vtanh.f32 %v5991_v47 }
 0x7a7   :  { %v4255_v34 = vpop.eup %4254 }
 0x7a8   :  { %v2780_v0 = vsub.f32 1.0, %v4255_v34  ;;  %v4257_v37 = vpop.eup %4256 }
 0x7a9   :  { %v4274_v57 = vld [vmem:[%s6157_s1 + $0x40] sm:$0xff]  ;;  %v4275_v58 = vld [vmem:[%s6157_s1 + $0x48] sm:$0xff] }
 0x7aa   :  { %v2807_v44 = vmul.f32 %v4274_v57, %v4227_v41  ;;  %v2808_v7 = vmul.f32 %v4275_v58, %v4233_v60  ;;  %v2796_v53 = vmul.f32 %v4257_v37, %v2780_v0  ;;  %v2836_v57 = vpop.permute.xlu0 %2835 }
 0x7ab   :  { %v4259_v4 = vpop.eup %4258 }
 0x7ac   :  { %v2823_v35 = vadd.f32 %v2807_v44, %v2791_v28  ;;  %v2824_v8 = vadd.f32 %v2808_v7, %v2792_v31  ;;  %v2781_v47 = vsub.f32 1.0, %v4259_v4  ;;  %v4261_v27 = vpop.eup %4260 }
 0x7ae   :  { %2918 = vst.msk [vmem:[%s6159_s19 + $0x40] sm:$0xff] %vm2908_vm2, %v2823_v35  ;;  %v3857_v52 = vpack.c.bf16 %v2824_v8, %v2823_v35  ;;  %2919 = vst.msk [vmem:[%s6159_s19 + $0x48] sm:$0xff] %vm2908_vm2, %v2824_v8  ;;  %v2797_v41 = vmul.f32 %v4261_v27, %v2781_v47 }
 0x7af   :  { %v4263_v43 = vpop.eup %4262 }
 0x7b0   :  { %3858 = vmatpush3.bf16.msra.mxu0 %v3857_v52  ;;  %v2782_v39 = vsub.f32 1.0, %v4263_v43  ;;  %v4265_v46 = vpop.eup %4264 }
 0x7b1   :  { %3859 = vmatprep.subr.bf16.mxu0 %v6209_v61 }
 0x7b2   :  { %v2798_v2 = vmul.f32 %v4265_v46, %v2782_v39 }
 0x7b5   :  { %v4276_v56 = vld [vmem:[%s6157_s1 + $0x50] sm:$0xff]  ;;  %v4277_v23 = vld [vmem:[%s6157_s1 + $0x58] sm:$0xff] }
 0x7b6   :  { %v2809_v14 = vmul.f32 %v4276_v56, %v4239_v16  ;;  %v2810_v10 = vmul.f32 %v4277_v23, %v4245_v24 }
 0x7b8   :  { %v2825_v49 = vadd.f32 %v2809_v14, %v2793_v11  ;;  %v2826_v33 = vadd.f32 %v2810_v10, %v2794_v5 }
 0x7ba   :  { %2920 = vst.msk [vmem:[%s6159_s19 + $0x50] sm:$0xff] %vm2908_vm2, %v2825_v49  ;;  %v3860_v36 = vpack.c.bf16 %v2826_v33, %v2825_v49  ;;  %2921 = vst.msk [vmem:[%s6159_s19 + $0x58] sm:$0xff] %vm2908_vm2, %v2826_v33 }
 0x7bc   :  { %3861 = vmatpush3.bf16.msra.mxu0 %v3860_v36 }
 0x7bd   :  { %3862 = vmatprep.subr.bf16.mxu0 %v6209_v61 }
 0x7c1   :  { %v4278_v63 = vld [vmem:[%s6157_s1 + $0x60] sm:$0xff]  ;;  %v4279_v45 = vld [vmem:[%s6157_s1 + $0x68] sm:$0xff] }
 0x7c2   :  { %v2811_v13 = vmul.f32 %v4278_v63, %v4251_v6  ;;  %v2812_v3 = vmul.f32 %v4279_v45, %v4255_v34 }
 0x7c4   :  { %v2827_v59 = vadd.f32 %v2811_v13, %v2795_v12  ;;  %v2828_v21 = vadd.f32 %v2812_v3, %v2796_v53 }
 0x7c6   :  { %2922 = vst.msk [vmem:[%s6159_s19 + $0x60] sm:$0xff] %vm2908_vm2, %v2827_v59  ;;  %v3863_v50 = vpack.c.bf16 %v2828_v21, %v2827_v59  ;;  %2923 = vst.msk [vmem:[%s6159_s19 + $0x68] sm:$0xff] %vm2908_vm2, %v2828_v21 }
 0x7c8   :  { %3864 = vmatpush3.bf16.msra.mxu0 %v3863_v50 }
 0x7c9   :  { %3865 = vmatprep.subr.bf16.mxu0 %v6209_v61  ;;  %v2831_v61 = vld [vmem:[%s6160_s16] sm:$0xff] }
 0x7cd   :  { %v4280_v55 = vld [vmem:[%s6157_s1 + $0x70] sm:$0xff]  ;;  %v4281_v25 = vld [vmem:[%s6157_s1 + $0x78] sm:$0xff] }
 0x7ce   :  { %v2813_v51 = vmul.f32 %v4280_v55, %v4259_v4  ;;  %v2814_v29 = vmul.f32 %v4281_v25, %v4263_v43 }
 0x7d0   :  { %v2829_v30 = vadd.f32 %v2813_v51, %v2797_v41  ;;  %v2830_v22 = vadd.f32 %v2814_v29, %v2798_v2 }
 0x7d2   :  { %2924 = vst.msk [vmem:[%s6159_s19 + $0x70] sm:$0xff] %vm2908_vm2, %v2829_v30  ;;  %v3866_v28 = vpack.c.bf16 %v2830_v22, %v2829_v30  ;;  %2925 = vst.msk [vmem:[%s6159_s19 + $0x78] sm:$0xff] %vm2908_vm2, %v2830_v22 }
 0x7d4   :  { %3867 = vmatpush3.bf16.msra.mxu0 %v3866_v28 }
 0x7d7   :  { %3502 = vmatmul.mubr.f32.vlgmr.msra.gmra.mrb[60].mxu0 %v2831_v61 }
 0x8aa   :  { %v2904_v44 = vpop.f32.mrb[60].mxu0 }
 0x8ab   :  { %v2905_v60 = vadd.f32 %v2904_v44, %v2836_v57  ;;  %v3503_v19 = vpop.f32.mrb[61].mxu0 }
 0x8ad   :  { %2909 = vst.msk [vmem:[%s6161_s18] sm:$0xff] %vm2908_vm2, %v2905_v60 }

</bundles_post_ra>
